<compile_context>
chip_gen: v7x
topology: tpu7x:2x2x1
jax: 0.10.0
libtpu: 0.0.40
codegen_flags: <defaults>
</compile_context>

<pallas_src>
import jax
import jax.numpy as jnp
from jax.experimental import pallas as pl
from jax.experimental.pallas import tpu as pltpu

INPUT = 5        # LSTM input_size
IN_PAD = 16      # layer-0 input padded to one bf16 sublane tile
HIDDEN = 50      # LSTM hidden_size
HPAD = 128       # per-gate lane padding (one full lane group per gate)
G = 4 * HPAD     # one layer's gate block, order [i, f, o, g]
OUT = 32         # final head width
BP = 8           # padded batch rows (f32 sublane tile)

# -- weight slab column offsets (all multiples of 128) --
_W_REC = 0                 # (2*HPAD, 2*G)  stagger-fused [[whh0, wih1],[0, whh1]]
_W_IH0 = 2 * G             # (IN_PAD, G)    layer-0 input weight
_W_H1A = 3 * G             # (2*HPAD, HPAD) head1 Linear(100,50)
_W_FOLD = _W_H1A + HPAD    # (HPAD, HPAD)   head1[2] @ head[0] folded (50x40)
_W_HB = _W_FOLD + HPAD     # (HPAD, HPAD)   head Linear(40,32)
_W_COLS = _W_HB + HPAD     # 1920

# -- bias slab column offsets --
_B_0 = 0
_B_1 = G
_B_1A = 2 * G
_B_FOLD = 2 * G + HPAD
_B_HB = 2 * G + 2 * HPAD
_B_COLS = 2 * G + 3 * HPAD  # 1408

GATE_PERM = (0, 1, 3, 2)    # PyTorch order (i, f, g, o) -> kernel order (i, f, o, g)


def _lstm_net_kernel(m_ref, lens_ref, x_ref, w_ref, b_ref, out_ref, xproj_ref):
    T = m_ref.shape[0] // BP
    B, OUTD = out_ref.shape

    # ---- hoisted weight / bias views (static 128-aligned slices, loaded once) ----
    w_rec = w_ref[:, _W_REC:_W_REC + 2 * G]              # (256, 1024) bf16
    wih0 = w_ref[:IN_PAD, _W_IH0:_W_IH0 + G]             # (16, 512)  bf16
    w1a = w_ref[:, _W_H1A:_W_H1A + HPAD]                 # (256, 128) bf16
    wfold = w_ref[:HPAD, _W_FOLD:_W_FOLD + HPAD]         # (128, 128) bf16
    whb = w_ref[:HPAD, _W_HB:_W_HB + HPAD]               # (128, 128) bf16

    b0 = b_ref[:, _B_0:_B_0 + G]                         # (1, 512) f32
    b1 = jnp.broadcast_to(b_ref[:, _B_1:_B_1 + G], (BP, G))  # hoisted broadcast
    b1a = b_ref[:, _B_1A:_B_1A + HPAD]
    bfold = b_ref[:, _B_FOLD:_B_FOLD + HPAD]
    bhb = b_ref[:, _B_HB:_B_HB + HPAD]

    lens_v = lens_ref[...]                                # (BP, 1) int32
    # packed-sequence validity masks, hoisted out of the recurrence body
    valid = [jnp.broadcast_to(lens_v > t, (BP, HPAD)) for t in range(T)]

    # ---- layer-0 input projection hoisted out of the recurrence ----
    # one (T*BP, 16) @ (16, 512) MXU matmul with b0 folded in; sublane-aligned per-step rows
    xproj_ref[...] = (
        jnp.dot(m_ref[...], wih0, preferred_element_type=jnp.float32) + b0)

    def cell(pre, c):
        # gate order [i, f, o, g]; sigmoid as tanh so every gate is one EUP push
        sg = 0.5 * jnp.tanh(0.5 * pre[:, :3 * HPAD]) + 0.5
        i = sg[:, 0 * HPAD:1 * HPAD]
        f = sg[:, 1 * HPAD:2 * HPAD]
        o = sg[:, 2 * HPAD:3 * HPAD]
        g = jnp.tanh(pre[:, 3 * HPAD:4 * HPAD])           # zero-padded lanes stay 0
        c_new = f * c + i * g                             # f32 cell state
        h_new = (o * jnp.tanh(c_new)).astype(jnp.bfloat16)  # h carried in bf16
        return h_new, c_new

    zh = jnp.zeros((BP, HPAD), jnp.bfloat16)
    zc = jnp.zeros((BP, HPAD), jnp.float32)
    h0, c0, h1, c1 = zh, zc, zh, zc

    # ---- staggered recurrence (fully unrolled: T is small and static) ----
    # k = 0: layer-0 step 0 only; its recurrent contribution is exactly zero.
    h0n, c0n = cell(xproj_ref[0:BP, :], c0)
    h0 = jnp.where(valid[0], h0n, h0)
    c0 = jnp.where(valid[0], c0n, c0)

    # k = 1..T-1: ONE K=256 matmul yields pre0[k] (cols 0:512) and pre1[k-1] (cols 512:1024).
    for k in range(1, T):
        hcat = jnp.concatenate([h0, h1], axis=1)          # (BP, 256) bf16, 128-aligned concat
        pre_all = jnp.dot(hcat, w_rec, preferred_element_type=jnp.float32)
        # layer-1, step k-1
        h1n, c1n = cell(pre_all[:, G:2 * G] + b1, c1)
        h1 = jnp.where(valid[k - 1], h1n, h1)
        c1 = jnp.where(valid[k - 1], c1n, c1)
        # layer-0, step k (sublane-aligned xproj slice)
        h0n, c0n = cell(pre_all[:, 0:G] + xproj_ref[k * BP:(k + 1) * BP, :], c0)
        h0 = jnp.where(valid[k], h0n, h0)
        c0 = jnp.where(valid[k], c0n, c0)

    # drain (k = T): layer-1 step T-1; only c1 is needed afterwards.
    hcat = jnp.concatenate([h0, h1], axis=1)
    pre_all = jnp.dot(hcat, w_rec, preferred_element_type=jnp.float32)
    _, c1n = cell(pre_all[:, G:2 * G] + b1, c1)
    c1 = jnp.where(valid[T - 1], c1n, c1)

    # ---- heads: cat(c_n[0], c_n[1]) -> Lin(100,50) -> ReLU -> (Lin(50,50)·Lin(50,40) folded)
    #      -> ReLU -> Lin(40,32); then relu(1 + ·) * x ----
    feat = jnp.concatenate([c0.astype(jnp.bfloat16), c1.astype(jnp.bfloat16)], axis=1)
    z1 = jnp.maximum(jnp.dot(feat, w1a, preferred_element_type=jnp.float32) + b1a, 0.0)
    u = jnp.dot(z1.astype(jnp.bfloat16), wfold,
                preferred_element_type=jnp.float32) + bfold
    y = jnp.dot(jnp.maximum(u, 0.0).astype(jnp.bfloat16), whb,
                preferred_element_type=jnp.float32) + bhb
    out_ref[...] = jnp.maximum(1.0 + y[:B, :OUTD], 0.0) * x_ref[...]


def lstm_net_forward(x, m, lens, packed):
    w_all, b_all = packed
    B, T, _ = m.shape
    assert B <= BP
    # time-major; batch rows padded to the 8-row sublane tile; input cols padded to IN_PAD
    m_t = jnp.transpose(m, (1, 0, 2)).astype(jnp.float32)              # (T, B, 5)
    m_p = jnp.zeros((T, BP, IN_PAD), jnp.float32).at[:, :B, :INPUT].set(m_t)
    m2d = m_p.reshape(T * BP, IN_PAD).astype(jnp.bfloat16)
    lens_p = jnp.zeros((BP, 1), jnp.int32).at[:B, 0].set(lens.astype(jnp.int32))

    vmem = pl.BlockSpec(memory_space=pltpu.MemorySpace.VMEM)
    return pl.pallas_call(
        _lstm_net_kernel,
        out_shape=jax.ShapeDtypeStruct((B, OUT), jnp.float32),
        in_specs=[vmem] * 5,
        out_specs=vmem,
        scratch_shapes=[pltpu.VMEM((T * BP, G), jnp.float32)],
    )(m2d, lens_p, x.astype(jnp.float32), w_all, b_all)


def make_params(key):
    """Natural (PyTorch-like) parameter layout, used by the pure-JAX reference."""
    H = HIDDEN
    keys = jax.random.split(key, 16)

    def u(k, shape, fan_in):
        bound = 1.0 / jnp.sqrt(jnp.float32(fan_in))
        return jax.random.uniform(k, shape, jnp.float32, -bound, bound)

    # LSTM layer 0 (per-gate, pre-transposed: (4, in, H); gate order i, f, g, o)
    wih0 = u(keys[0], (4, INPUT, H), H)
    whh0 = u(keys[1], (4, H, H), H)
    b0 = u(keys[2], (4, 1, H), H) + u(keys[3], (4, 1, H), H)   # b_ih + b_hh
    # LSTM layer 1
    wih1 = u(keys[4], (4, H, H), H)
    whh1 = u(keys[5], (4, H, H), H)
    b1 = u(keys[6], (4, 1, H), H) + u(keys[7], (4, 1, H), H)
    # head1: Linear(100,50), Linear(50,50)
    w1a = u(keys[8], (2 * H, H), 2 * H); b1a = u(keys[9], (1, H), 2 * H)
    w1b = u(keys[10], (H, H), H);        b1b = u(keys[11], (1, H), H)
    # head: Linear(50,40), Linear(40,32)
    wha = u(keys[12], (H, 40), H);       bha = u(keys[13], (1, 40), H)
    whb = u(keys[14], (40, OUT), 40);    bhb = u(keys[15], (1, OUT), 40)
    return (wih0, whh0, b0, wih1, whh1, b1,
            w1a, b1a, w1b, b1b, wha, bha, whb, bhb)


def _gate_cols(w):
    """(4, n_in, H) PyTorch-gate-order -> (n_in, 4*HPAD) in kernel order [i,f,o,g]."""
    n_in = w.shape[1]
    out = jnp.zeros((n_in, G), jnp.float32)
    for p, src in enumerate(GATE_PERM):
        out = out.at[:, p * HPAD:p * HPAD + HIDDEN].set(w[src])
    return out


def pack_params(params):
    """Pack all params into one bf16 weight slab and one f32 bias slab."""
    (wih0, whh0, b0, wih1, whh1, b1,
     w1a, b1a, w1b, b1b, wha, bha, whb, bhb) = params
    H = HIDDEN

    w_all = jnp.zeros((2 * HPAD, _W_COLS), jnp.float32)
    # stagger-fused recurrent weight [[whh0, wih1], [0, whh1]]
    w_all = w_all.at[:H, _W_REC:_W_REC + G].set(_gate_cols(whh0))
    w_all = w_all.at[:H, _W_REC + G:_W_REC + 2 * G].set(_gate_cols(wih1))
    w_all = w_all.at[HPAD:HPAD + H, _W_REC + G:_W_REC + 2 * G].set(_gate_cols(whh1))
    # layer-0 input weight (rows beyond INPUT stay zero; m cols beyond INPUT are zero)
    w_all = w_all.at[:INPUT, _W_IH0:_W_IH0 + G].set(_gate_cols(wih0))
    # head1 Linear(100,50), rows split across the padded (c0 | c1) concat
    w_all = w_all.at[:H, _W_H1A:_W_H1A + H].set(w1a[:H])
    w_all = w_all.at[HPAD:HPAD + H, _W_H1A:_W_H1A + H].set(w1a[H:])
    # fold head1[2] @ head[0] offline in f32 (no ReLU between them): (50, 40)
    w_all = w_all.at[:H, _W_FOLD:_W_FOLD + 40].set(w1b @ wha)
    # head Linear(40,32)
    w_all = w_all.at[:40, _W_HB:_W_HB + OUT].set(whb)
    w_all = w_all.astype(jnp.bfloat16)

    b_all = jnp.zeros((1, _B_COLS), jnp.float32)
    b_all = b_all.at[:, _B_0:_B_0 + G].set(_gate_cols(b0))
    b_all = b_all.at[:, _B_1:_B_1 + G].set(_gate_cols(b1))
    b_all = b_all.at[:, _B_1A:_B_1A + H].set(b1a)
    b_all = b_all.at[:, _B_FOLD:_B_FOLD + 40].set(b1b @ wha + bha)   # folded bias
    b_all = b_all.at[:, _B_HB:_B_HB + OUT].set(bhb)
    return (w_all, b_all)


def reference_forward(x, m, lens, params):
    (wih0, whh0, b0, wih1, whh1, b1,
     w1a, b1a, w1b, b1b, wha, bha, whb, bhb) = params
    B, T, _ = m.shape
    H = HIDDEN

    def cell(x_in, h, c, wih, whh, b):
        i = jax.nn.sigmoid(x_in @ wih[0] + h @ whh[0] + b[0])
        f = jax.nn.sigmoid(x_in @ wih[1] + h @ whh[1] + b[1])
        g = jnp.tanh(x_in @ wih[2] + h @ whh[2] + b[2])
        o = jax.nn.sigmoid(x_in @ wih[3] + h @ whh[3] + b[3])
        cn = f * c + i * g
        return o * jnp.tanh(cn), cn

    h0 = c0 = h1 = c1 = jnp.zeros((B, H), jnp.float32)
    for t in range(T):
        valid = lens.reshape(B, 1) > t
        h0n, c0n = cell(m[:, t, :], h0, c0, wih0, whh0, b0)
        h0 = jnp.where(valid, h0n, h0); c0 = jnp.where(valid, c0n, c0)
        h1n, c1n = cell(h0, h1, c1, wih1, whh1, b1)
        h1 = jnp.where(valid, h1n, h1); c1 = jnp.where(valid, c1n, c1)
    feat = jnp.concatenate([c0, c1], axis=1)
    z = jnp.maximum(feat @ w1a + b1a, 0.0) @ w1b + b1b
    y = jnp.maximum(z @ wha + bha, 0.0) @ whb + bhb
    return jnp.maximum(1.0 + y, 0.0) * x


if __name__ == "__main__":
    key = jax.random.PRNGKey(0)
    kp, kx, km = jax.random.split(key, 3)
    B, T = 2, 8
    params = make_params(kp)
    packed = pack_params(params)
    x = jax.random.normal(kx, (B, OUT), jnp.float32)
    m = jax.random.normal(km, (B, T, INPUT), jnp.float32)
    lens = jnp.array([8, 5], dtype=jnp.int32)   # variable lengths (packed-seq semantics)

    out = jax.block_until_ready(lstm_net_forward(x, m, lens, packed))
    ref = reference_forward(x, m, lens, params)

    assert out.shape == (B, OUT) and out.dtype == jnp.float32
    assert jnp.allclose(out, ref, rtol=5e-2, atol=5e-2)
    print("KERNEL_OK")
</pallas_src>

<mosaic_0001>
module attributes {stable_mosaic.version = 11 : i64} {
  func.func @_lstm_net_kernel(%arg0: memref<64x16xbf16, #tpu.memory_space<vmem>>, %arg1: memref<8x1xi32, #tpu.memory_space<vmem>>, %arg2: memref<2x32xf32, #tpu.memory_space<vmem>>, %arg3: memref<256x1920xbf16, #tpu.memory_space<vmem>>, %arg4: memref<1x1408xf32, #tpu.memory_space<vmem>>, %arg5: memref<2x32xf32, #tpu.memory_space<vmem>>, %arg6: memref<64x512xf32, #tpu.memory_space<vmem>>) attributes {dimension_semantics = [], scalar_prefetch = 0 : i64, scratch_operands = 1 : i64, tpu.core_type = #tpu.core_type<tc>} {
    %c0 = arith.constant 0 : index
    %c0_0 = arith.constant 0 : index
    %0 = vector.load %arg3[%c0, %c0_0] : memref<256x1920xbf16, #tpu.memory_space<vmem>>, vector<256x1024xbf16>
    %c0_1 = arith.constant 0 : index
    %c1024 = arith.constant 1024 : index
    %1 = vector.load %arg3[%c0_1, %c1024] : memref<256x1920xbf16, #tpu.memory_space<vmem>>, vector<16x512xbf16>
    %c0_2 = arith.constant 0 : index
    %c1536 = arith.constant 1536 : index
    %2 = vector.load %arg3[%c0_2, %c1536] : memref<256x1920xbf16, #tpu.memory_space<vmem>>, vector<256x128xbf16>
    %c0_3 = arith.constant 0 : index
    %c1664 = arith.constant 1664 : index
    %3 = vector.load %arg3[%c0_3, %c1664] : memref<256x1920xbf16, #tpu.memory_space<vmem>>, vector<128x128xbf16>
    %c0_4 = arith.constant 0 : index
    %c1792 = arith.constant 1792 : index
    %4 = vector.load %arg3[%c0_4, %c1792] : memref<256x1920xbf16, #tpu.memory_space<vmem>>, vector<128x128xbf16>
    %c0_5 = arith.constant 0 : index
    %c0_6 = arith.constant 0 : index
    %5 = vector.load %arg4[%c0_5, %c0_6] : memref<1x1408xf32, #tpu.memory_space<vmem>>, vector<1x512xf32>
    %c0_7 = arith.constant 0 : index
    %c512 = arith.constant 512 : index
    %6 = vector.load %arg4[%c0_7, %c512] : memref<1x1408xf32, #tpu.memory_space<vmem>>, vector<1x512xf32>
    %7 = vector.shape_cast %6 : vector<1x512xf32> to vector<1x512xf32>
    %8 = vector.broadcast %7 : vector<1x512xf32> to vector<8x512xf32>
    %c0_8 = arith.constant 0 : index
    %c1024_9 = arith.constant 1024 : index
    %9 = vector.load %arg4[%c0_8, %c1024_9] : memref<1x1408xf32, #tpu.memory_space<vmem>>, vector<1x128xf32>
    %c0_10 = arith.constant 0 : index
    %c1152 = arith.constant 1152 : index
    %10 = vector.load %arg4[%c0_10, %c1152] : memref<1x1408xf32, #tpu.memory_space<vmem>>, vector<1x128xf32>
    %c0_11 = arith.constant 0 : index
    %c1280 = arith.constant 1280 : index
    %11 = vector.load %arg4[%c0_11, %c1280] : memref<1x1408xf32, #tpu.memory_space<vmem>>, vector<1x128xf32>
    %c0_12 = arith.constant 0 : index
    %c0_13 = arith.constant 0 : index
    %12 = vector.load %arg1[%c0_12, %c0_13] : memref<8x1xi32, #tpu.memory_space<vmem>>, vector<8x1xi32>
    %c0_i32 = arith.constant 0 : i32
    %13 = vector.broadcast %c0_i32 : i32 to vector<8x1xi32>
    %14 = arith.cmpi sgt, %12, %13 : vector<8x1xi32>
    %15 = vector.shape_cast %14 : vector<8x1xi1> to vector<8x1xi1>
    %16 = vector.broadcast %15 : vector<8x1xi1> to vector<8x128xi1>
    %c1_i32 = arith.constant 1 : i32
    %17 = vector.broadcast %c1_i32 : i32 to vector<8x1xi32>
    %18 = arith.cmpi sgt, %12, %17 : vector<8x1xi32>
    %19 = vector.shape_cast %18 : vector<8x1xi1> to vector<8x1xi1>
    %20 = vector.broadcast %19 : vector<8x1xi1> to vector<8x128xi1>
    %c2_i32 = arith.constant 2 : i32
    %21 = vector.broadcast %c2_i32 : i32 to vector<8x1xi32>
    %22 = arith.cmpi sgt, %12, %21 : vector<8x1xi32>
    %23 = vector.shape_cast %22 : vector<8x1xi1> to vector<8x1xi1>
    %24 = vector.broadcast %23 : vector<8x1xi1> to vector<8x128xi1>
    %c3_i32 = arith.constant 3 : i32
    %25 = vector.broadcast %c3_i32 : i32 to vector<8x1xi32>
    %26 = arith.cmpi sgt, %12, %25 : vector<8x1xi32>
    %27 = vector.shape_cast %26 : vector<8x1xi1> to vector<8x1xi1>
    %28 = vector.broadcast %27 : vector<8x1xi1> to vector<8x128xi1>
    %c4_i32 = arith.constant 4 : i32
    %29 = vector.broadcast %c4_i32 : i32 to vector<8x1xi32>
    %30 = arith.cmpi sgt, %12, %29 : vector<8x1xi32>
    %31 = vector.shape_cast %30 : vector<8x1xi1> to vector<8x1xi1>
    %32 = vector.broadcast %31 : vector<8x1xi1> to vector<8x128xi1>
    %c5_i32 = arith.constant 5 : i32
    %33 = vector.broadcast %c5_i32 : i32 to vector<8x1xi32>
    %34 = arith.cmpi sgt, %12, %33 : vector<8x1xi32>
    %35 = vector.shape_cast %34 : vector<8x1xi1> to vector<8x1xi1>
    %36 = vector.broadcast %35 : vector<8x1xi1> to vector<8x128xi1>
    %c6_i32 = arith.constant 6 : i32
    %37 = vector.broadcast %c6_i32 : i32 to vector<8x1xi32>
    %38 = arith.cmpi sgt, %12, %37 : vector<8x1xi32>
    %39 = vector.shape_cast %38 : vector<8x1xi1> to vector<8x1xi1>
    %40 = vector.broadcast %39 : vector<8x1xi1> to vector<8x128xi1>
    %c7_i32 = arith.constant 7 : i32
    %41 = vector.broadcast %c7_i32 : i32 to vector<8x1xi32>
    %42 = arith.cmpi sgt, %12, %41 : vector<8x1xi32>
    %43 = vector.shape_cast %42 : vector<8x1xi1> to vector<8x1xi1>
    %44 = vector.broadcast %43 : vector<8x1xi1> to vector<8x128xi1>
    %c0_14 = arith.constant 0 : index
    %c0_15 = arith.constant 0 : index
    %45 = vector.load %arg0[%c0_14, %c0_15] : memref<64x16xbf16, #tpu.memory_space<vmem>>, vector<64x16xbf16>
    %cst = arith.constant dense<0.000000e+00> : vector<64x512xf32>
    %46 = tpu.matmul %45, %1, %cst {dimension_numbers = #tpu.dot_dimension_numbers<[1], [0], [0], [1], [0, 0, 1, 1], [], []>} : vector<64x16xbf16>, vector<16x512xbf16>, vector<64x512xf32> -> vector<64x512xf32>
    %47 = vector.broadcast %5 : vector<1x512xf32> to vector<64x512xf32>
    %48 = arith.addf %46, %47 : vector<64x512xf32>
    %c0_16 = arith.constant 0 : index
    %c0_17 = arith.constant 0 : index
    %49 = vector.load %arg6[%c0_16, %c0_17] : memref<64x512xf32, #tpu.memory_space<vmem>>, vector<64x512xf32>
    tpu.vector_store %arg6[%c0_16, %c0_17], %48 {strides = array<i32>} : memref<64x512xf32, #tpu.memory_space<vmem>>, vector<64x512xf32>,
    %cst_18 = arith.constant 0.000000e+00 : bf16
    %50 = vector.broadcast %cst_18 : bf16 to vector<8x128xbf16>
    %cst_19 = arith.constant 0.000000e+00 : f32
    %51 = vector.broadcast %cst_19 : f32 to vector<8x128xf32>
    %c0_20 = arith.constant 0 : index
    %c0_21 = arith.constant 0 : index
    %52 = vector.load %arg6[%c0_20, %c0_21] : memref<64x512xf32, #tpu.memory_space<vmem>>, vector<8x512xf32>
    %53 = vector.extract_strided_slice %52 {offsets = [0, 0], sizes = [8, 384], strides = [1, 1]} : vector<8x512xf32> to vector<8x384xf32>
    %cst_22 = arith.constant 5.000000e-01 : f32
    %54 = vector.broadcast %cst_22 : f32 to vector<8x384xf32>
    %55 = arith.mulf %54, %53 : vector<8x384xf32>
    %56 = math.tanh %55 : vector<8x384xf32>
    %cst_23 = arith.constant 5.000000e-01 : f32
    %57 = vector.broadcast %cst_23 : f32 to vector<8x384xf32>
    %58 = arith.mulf %57, %56 : vector<8x384xf32>
    %cst_24 = arith.constant 5.000000e-01 : f32
    %59 = vector.broadcast %cst_24 : f32 to vector<8x384xf32>
    %60 = arith.addf %58, %59 : vector<8x384xf32>
    %61 = vector.extract_strided_slice %60 {offsets = [0, 0], sizes = [8, 128], strides = [1, 1]} : vector<8x384xf32> to vector<8x128xf32>
    %62 = vector.extract_strided_slice %60 {offsets = [0, 128], sizes = [8, 128], strides = [1, 1]} : vector<8x384xf32> to vector<8x128xf32>
    %63 = vector.extract_strided_slice %60 {offsets = [0, 256], sizes = [8, 128], strides = [1, 1]} : vector<8x384xf32> to vector<8x128xf32>
    %64 = vector.extract_strided_slice %52 {offsets = [0, 384], sizes = [8, 128], strides = [1, 1]} : vector<8x512xf32> to vector<8x128xf32>
    %65 = math.tanh %64 : vector<8x128xf32>
    %66 = arith.mulf %62, %51 : vector<8x128xf32>
    %67 = arith.mulf %61, %65 : vector<8x128xf32>
    %68 = arith.addf %66, %67 : vector<8x128xf32>
    %69 = math.tanh %68 : vector<8x128xf32>
    %70 = arith.mulf %63, %69 : vector<8x128xf32>
    %71 = arith.truncf %70 : vector<8x128xf32> to vector<8x128xbf16>
    %72 = arith.select %16, %71, %50 : vector<8x128xi1>, vector<8x128xbf16>
    %73 = arith.select %16, %68, %51 : vector<8x128xi1>, vector<8x128xf32>
    %74 = tpu.concatenate %72, %50 in 1 : vector<8x128xbf16>, vector<8x128xbf16> -> vector<8x256xbf16>
    %cst_25 = arith.constant dense<0.000000e+00> : vector<8x1024xf32>
    %75 = tpu.matmul %74, %0, %cst_25 {dimension_numbers = #tpu.dot_dimension_numbers<[1], [0], [0], [1], [0, 0, 1, 1], [], []>} : vector<8x256xbf16>, vector<256x1024xbf16>, vector<8x1024xf32> -> vector<8x1024xf32>
    %76 = vector.extract_strided_slice %75 {offsets = [0, 512], sizes = [8, 512], strides = [1, 1]} : vector<8x1024xf32> to vector<8x512xf32>
    %77 = arith.addf %76, %8 : vector<8x512xf32>
    %78 = vector.extract_strided_slice %77 {offsets = [0, 0], sizes = [8, 384], strides = [1, 1]} : vector<8x512xf32> to vector<8x384xf32>
    %cst_26 = arith.constant 5.000000e-01 : f32
    %79 = vector.broadcast %cst_26 : f32 to vector<8x384xf32>
    %80 = arith.mulf %79, %78 : vector<8x384xf32>
    %81 = math.tanh %80 : vector<8x384xf32>
    %cst_27 = arith.constant 5.000000e-01 : f32
    %82 = vector.broadcast %cst_27 : f32 to vector<8x384xf32>
    %83 = arith.mulf %82, %81 : vector<8x384xf32>
    %cst_28 = arith.constant 5.000000e-01 : f32
    %84 = vector.broadcast %cst_28 : f32 to vector<8x384xf32>
    %85 = arith.addf %83, %84 : vector<8x384xf32>
    %86 = vector.extract_strided_slice %85 {offsets = [0, 0], sizes = [8, 128], strides = [1, 1]} : vector<8x384xf32> to vector<8x128xf32>
    %87 = vector.extract_strided_slice %85 {offsets = [0, 128], sizes = [8, 128], strides = [1, 1]} : vector<8x384xf32> to vector<8x128xf32>
    %88 = vector.extract_strided_slice %85 {offsets = [0, 256], sizes = [8, 128], strides = [1, 1]} : vector<8x384xf32> to vector<8x128xf32>
    %89 = vector.extract_strided_slice %77 {offsets = [0, 384], sizes = [8, 128], strides = [1, 1]} : vector<8x512xf32> to vector<8x128xf32>
    %90 = math.tanh %89 : vector<8x128xf32>
    %91 = arith.mulf %87, %51 : vector<8x128xf32>
    %92 = arith.mulf %86, %90 : vector<8x128xf32>
    %93 = arith.addf %91, %92 : vector<8x128xf32>
    %94 = math.tanh %93 : vector<8x128xf32>
    %95 = arith.mulf %88, %94 : vector<8x128xf32>
    %96 = arith.truncf %95 : vector<8x128xf32> to vector<8x128xbf16>
    %97 = arith.select %16, %96, %50 : vector<8x128xi1>, vector<8x128xbf16>
    %98 = arith.select %16, %93, %51 : vector<8x128xi1>, vector<8x128xf32>
    %99 = vector.extract_strided_slice %75 {offsets = [0, 0], sizes = [8, 512], strides = [1, 1]} : vector<8x1024xf32> to vector<8x512xf32>
    %c8 = arith.constant 8 : index
    %c0_29 = arith.constant 0 : index
    %100 = vector.load %arg6[%c8, %c0_29] : memref<64x512xf32, #tpu.memory_space<vmem>>, vector<8x512xf32>
    %101 = arith.addf %99, %100 : vector<8x512xf32>
    %102 = vector.extract_strided_slice %101 {offsets = [0, 0], sizes = [8, 384], strides = [1, 1]} : vector<8x512xf32> to vector<8x384xf32>
    %cst_30 = arith.constant 5.000000e-01 : f32
    %103 = vector.broadcast %cst_30 : f32 to vector<8x384xf32>
    %104 = arith.mulf %103, %102 : vector<8x384xf32>
    %105 = math.tanh %104 : vector<8x384xf32>
    %cst_31 = arith.constant 5.000000e-01 : f32
    %106 = vector.broadcast %cst_31 : f32 to vector<8x384xf32>
    %107 = arith.mulf %106, %105 : vector<8x384xf32>
    %cst_32 = arith.constant 5.000000e-01 : f32
    %108 = vector.broadcast %cst_32 : f32 to vector<8x384xf32>
    %109 = arith.addf %107, %108 : vector<8x384xf32>
    %110 = vector.extract_strided_slice %109 {offsets = [0, 0], sizes = [8, 128], strides = [1, 1]} : vector<8x384xf32> to vector<8x128xf32>
    %111 = vector.extract_strided_slice %109 {offsets = [0, 128], sizes = [8, 128], strides = [1, 1]} : vector<8x384xf32> to vector<8x128xf32>
    %112 = vector.extract_strided_slice %109 {offsets = [0, 256], sizes = [8, 128], strides = [1, 1]} : vector<8x384xf32> to vector<8x128xf32>
    %113 = vector.extract_strided_slice %101 {offsets = [0, 384], sizes = [8, 128], strides = [1, 1]} : vector<8x512xf32> to vector<8x128xf32>
    %114 = math.tanh %113 : vector<8x128xf32>
    %115 = arith.mulf %111, %73 : vector<8x128xf32>
    %116 = arith.mulf %110, %114 : vector<8x128xf32>
    %117 = arith.addf %115, %116 : vector<8x128xf32>
    %118 = math.tanh %117 : vector<8x128xf32>
    %119 = arith.mulf %112, %118 : vector<8x128xf32>
    %120 = arith.truncf %119 : vector<8x128xf32> to vector<8x128xbf16>
    %121 = arith.select %20, %120, %72 : vector<8x128xi1>, vector<8x128xbf16>
    %122 = arith.select %20, %117, %73 : vector<8x128xi1>, vector<8x128xf32>
    %123 = tpu.concatenate %121, %97 in 1 : vector<8x128xbf16>, vector<8x128xbf16> -> vector<8x256xbf16>
    %cst_33 = arith.constant dense<0.000000e+00> : vector<8x1024xf32>
    %124 = tpu.matmul %123, %0, %cst_33 {dimension_numbers = #tpu.dot_dimension_numbers<[1], [0], [0], [1], [0, 0, 1, 1], [], []>} : vector<8x256xbf16>, vector<256x1024xbf16>, vector<8x1024xf32> -> vector<8x1024xf32>
    %125 = vector.extract_strided_slice %124 {offsets = [0, 512], sizes = [8, 512], strides = [1, 1]} : vector<8x1024xf32> to vector<8x512xf32>
    %126 = arith.addf %125, %8 : vector<8x512xf32>
    %127 = vector.extract_strided_slice %126 {offsets = [0, 0], sizes = [8, 384], strides = [1, 1]} : vector<8x512xf32> to vector<8x384xf32>
    %cst_34 = arith.constant 5.000000e-01 : f32
    %128 = vector.broadcast %cst_34 : f32 to vector<8x384xf32>
    %129 = arith.mulf %128, %127 : vector<8x384xf32>
    %130 = math.tanh %129 : vector<8x384xf32>
    %cst_35 = arith.constant 5.000000e-01 : f32
    %131 = vector.broadcast %cst_35 : f32 to vector<8x384xf32>
    %132 = arith.mulf %131, %130 : vector<8x384xf32>
    %cst_36 = arith.constant 5.000000e-01 : f32
    %133 = vector.broadcast %cst_36 : f32 to vector<8x384xf32>
    %134 = arith.addf %132, %133 : vector<8x384xf32>
    %135 = vector.extract_strided_slice %134 {offsets = [0, 0], sizes = [8, 128], strides = [1, 1]} : vector<8x384xf32> to vector<8x128xf32>
    %136 = vector.extract_strided_slice %134 {offsets = [0, 128], sizes = [8, 128], strides = [1, 1]} : vector<8x384xf32> to vector<8x128xf32>
    %137 = vector.extract_strided_slice %134 {offsets = [0, 256], sizes = [8, 128], strides = [1, 1]} : vector<8x384xf32> to vector<8x128xf32>
    %138 = vector.extract_strided_slice %126 {offsets = [0, 384], sizes = [8, 128], strides = [1, 1]} : vector<8x512xf32> to vector<8x128xf32>
    %139 = math.tanh %138 : vector<8x128xf32>
    %140 = arith.mulf %136, %98 : vector<8x128xf32>
    %141 = arith.mulf %135, %139 : vector<8x128xf32>
    %142 = arith.addf %140, %141 : vector<8x128xf32>
    %143 = math.tanh %142 : vector<8x128xf32>
    %144 = arith.mulf %137, %143 : vector<8x128xf32>
    %145 = arith.truncf %144 : vector<8x128xf32> to vector<8x128xbf16>
    %146 = arith.select %20, %145, %97 : vector<8x128xi1>, vector<8x128xbf16>
    %147 = arith.select %20, %142, %98 : vector<8x128xi1>, vector<8x128xf32>
    %148 = vector.extract_strided_slice %124 {offsets = [0, 0], sizes = [8, 512], strides = [1, 1]} : vector<8x1024xf32> to vector<8x512xf32>
    %c16 = arith.constant 16 : index
    %c0_37 = arith.constant 0 : index
    %149 = vector.load %arg6[%c16, %c0_37] : memref<64x512xf32, #tpu.memory_space<vmem>>, vector<8x512xf32>
    %150 = arith.addf %148, %149 : vector<8x512xf32>
    %151 = vector.extract_strided_slice %150 {offsets = [0, 0], sizes = [8, 384], strides = [1, 1]} : vector<8x512xf32> to vector<8x384xf32>
    %cst_38 = arith.constant 5.000000e-01 : f32
    %152 = vector.broadcast %cst_38 : f32 to vector<8x384xf32>
    %153 = arith.mulf %152, %151 : vector<8x384xf32>
    %154 = math.tanh %153 : vector<8x384xf32>
    %cst_39 = arith.constant 5.000000e-01 : f32
    %155 = vector.broadcast %cst_39 : f32 to vector<8x384xf32>
    %156 = arith.mulf %155, %154 : vector<8x384xf32>
    %cst_40 = arith.constant 5.000000e-01 : f32
    %157 = vector.broadcast %cst_40 : f32 to vector<8x384xf32>
    %158 = arith.addf %156, %157 : vector<8x384xf32>
    %159 = vector.extract_strided_slice %158 {offsets = [0, 0], sizes = [8, 128], strides = [1, 1]} : vector<8x384xf32> to vector<8x128xf32>
    %160 = vector.extract_strided_slice %158 {offsets = [0, 128], sizes = [8, 128], strides = [1, 1]} : vector<8x384xf32> to vector<8x128xf32>
    %161 = vector.extract_strided_slice %158 {offsets = [0, 256], sizes = [8, 128], strides = [1, 1]} : vector<8x384xf32> to vector<8x128xf32>
    %162 = vector.extract_strided_slice %150 {offsets = [0, 384], sizes = [8, 128], strides = [1, 1]} : vector<8x512xf32> to vector<8x128xf32>
    %163 = math.tanh %162 : vector<8x128xf32>
    %164 = arith.mulf %160, %122 : vector<8x128xf32>
    %165 = arith.mulf %159, %163 : vector<8x128xf32>
    %166 = arith.addf %164, %165 : vector<8x128xf32>
    %167 = math.tanh %166 : vector<8x128xf32>
    %168 = arith.mulf %161, %167 : vector<8x128xf32>
    %169 = arith.truncf %168 : vector<8x128xf32> to vector<8x128xbf16>
    %170 = arith.select %24, %169, %121 : vector<8x128xi1>, vector<8x128xbf16>
    %171 = arith.select %24, %166, %122 : vector<8x128xi1>, vector<8x128xf32>
    %172 = tpu.concatenate %170, %146 in 1 : vector<8x128xbf16>, vector<8x128xbf16> -> vector<8x256xbf16>
    %cst_41 = arith.constant dense<0.000000e+00> : vector<8x1024xf32>
    %173 = tpu.matmul %172, %0, %cst_41 {dimension_numbers = #tpu.dot_dimension_numbers<[1], [0], [0], [1], [0, 0, 1, 1], [], []>} : vector<8x256xbf16>, vector<256x1024xbf16>, vector<8x1024xf32> -> vector<8x1024xf32>
    %174 = vector.extract_strided_slice %173 {offsets = [0, 512], sizes = [8, 512], strides = [1, 1]} : vector<8x1024xf32> to vector<8x512xf32>
    %175 = arith.addf %174, %8 : vector<8x512xf32>
    %176 = vector.extract_strided_slice %175 {offsets = [0, 0], sizes = [8, 384], strides = [1, 1]} : vector<8x512xf32> to vector<8x384xf32>
    %cst_42 = arith.constant 5.000000e-01 : f32
    %177 = vector.broadcast %cst_42 : f32 to vector<8x384xf32>
    %178 = arith.mulf %177, %176 : vector<8x384xf32>
    %179 = math.tanh %178 : vector<8x384xf32>
    %cst_43 = arith.constant 5.000000e-01 : f32
    %180 = vector.broadcast %cst_43 : f32 to vector<8x384xf32>
    %181 = arith.mulf %180, %179 : vector<8x384xf32>
    %cst_44 = arith.constant 5.000000e-01 : f32
    %182 = vector.broadcast %cst_44 : f32 to vector<8x384xf32>
    %183 = arith.addf %181, %182 : vector<8x384xf32>
    %184 = vector.extract_strided_slice %183 {offsets = [0, 0], sizes = [8, 128], strides = [1, 1]} : vector<8x384xf32> to vector<8x128xf32>
    %185 = vector.extract_strided_slice %183 {offsets = [0, 128], sizes = [8, 128], strides = [1, 1]} : vector<8x384xf32> to vector<8x128xf32>
    %186 = vector.extract_strided_slice %183 {offsets = [0, 256], sizes = [8, 128], strides = [1, 1]} : vector<8x384xf32> to vector<8x128xf32>
    %187 = vector.extract_strided_slice %175 {offsets = [0, 384], sizes = [8, 128], strides = [1, 1]} : vector<8x512xf32> to vector<8x128xf32>
    %188 = math.tanh %187 : vector<8x128xf32>
    %189 = arith.mulf %185, %147 : vector<8x128xf32>
    %190 = arith.mulf %184, %188 : vector<8x128xf32>
    %191 = arith.addf %189, %190 : vector<8x128xf32>
    %192 = math.tanh %191 : vector<8x128xf32>
    %193 = arith.mulf %186, %192 : vector<8x128xf32>
    %194 = arith.truncf %193 : vector<8x128xf32> to vector<8x128xbf16>
    %195 = arith.select %24, %194, %146 : vector<8x128xi1>, vector<8x128xbf16>
    %196 = arith.select %24, %191, %147 : vector<8x128xi1>, vector<8x128xf32>
    %197 = vector.extract_strided_slice %173 {offsets = [0, 0], sizes = [8, 512], strides = [1, 1]} : vector<8x1024xf32> to vector<8x512xf32>
    %c24 = arith.constant 24 : index
    %c0_45 = arith.constant 0 : index
    %198 = vector.load %arg6[%c24, %c0_45] : memref<64x512xf32, #tpu.memory_space<vmem>>, vector<8x512xf32>
    %199 = arith.addf %197, %198 : vector<8x512xf32>
    %200 = vector.extract_strided_slice %199 {offsets = [0, 0], sizes = [8, 384], strides = [1, 1]} : vector<8x512xf32> to vector<8x384xf32>
    %cst_46 = arith.constant 5.000000e-01 : f32
    %201 = vector.broadcast %cst_46 : f32 to vector<8x384xf32>
    %202 = arith.mulf %201, %200 : vector<8x384xf32>
    %203 = math.tanh %202 : vector<8x384xf32>
    %cst_47 = arith.constant 5.000000e-01 : f32
    %204 = vector.broadcast %cst_47 : f32 to vector<8x384xf32>
    %205 = arith.mulf %204, %203 : vector<8x384xf32>
    %cst_48 = arith.constant 5.000000e-01 : f32
    %206 = vector.broadcast %cst_48 : f32 to vector<8x384xf32>
    %207 = arith.addf %205, %206 : vector<8x384xf32>
    %208 = vector.extract_strided_slice %207 {offsets = [0, 0], sizes = [8, 128], strides = [1, 1]} : vector<8x384xf32> to vector<8x128xf32>
    %209 = vector.extract_strided_slice %207 {offsets = [0, 128], sizes = [8, 128], strides = [1, 1]} : vector<8x384xf32> to vector<8x128xf32>
    %210 = vector.extract_strided_slice %207 {offsets = [0, 256], sizes = [8, 128], strides = [1, 1]} : vector<8x384xf32> to vector<8x128xf32>
    %211 = vector.extract_strided_slice %199 {offsets = [0, 384], sizes = [8, 128], strides = [1, 1]} : vector<8x512xf32> to vector<8x128xf32>
    %212 = math.tanh %211 : vector<8x128xf32>
    %213 = arith.mulf %209, %171 : vector<8x128xf32>
    %214 = arith.mulf %208, %212 : vector<8x128xf32>
    %215 = arith.addf %213, %214 : vector<8x128xf32>
    %216 = math.tanh %215 : vector<8x128xf32>
    %217 = arith.mulf %210, %216 : vector<8x128xf32>
    %218 = arith.truncf %217 : vector<8x128xf32> to vector<8x128xbf16>
    %219 = arith.select %28, %218, %170 : vector<8x128xi1>, vector<8x128xbf16>
    %220 = arith.select %28, %215, %171 : vector<8x128xi1>, vector<8x128xf32>
    %221 = tpu.concatenate %219, %195 in 1 : vector<8x128xbf16>, vector<8x128xbf16> -> vector<8x256xbf16>
    %cst_49 = arith.constant dense<0.000000e+00> : vector<8x1024xf32>
    %222 = tpu.matmul %221, %0, %cst_49 {dimension_numbers = #tpu.dot_dimension_numbers<[1], [0], [0], [1], [0, 0, 1, 1], [], []>} : vector<8x256xbf16>, vector<256x1024xbf16>, vector<8x1024xf32> -> vector<8x1024xf32>
    %223 = vector.extract_strided_slice %222 {offsets = [0, 512], sizes = [8, 512], strides = [1, 1]} : vector<8x1024xf32> to vector<8x512xf32>
    %224 = arith.addf %223, %8 : vector<8x512xf32>
    %225 = vector.extract_strided_slice %224 {offsets = [0, 0], sizes = [8, 384], strides = [1, 1]} : vector<8x512xf32> to vector<8x384xf32>
    %cst_50 = arith.constant 5.000000e-01 : f32
    %226 = vector.broadcast %cst_50 : f32 to vector<8x384xf32>
    %227 = arith.mulf %226, %225 : vector<8x384xf32>
    %228 = math.tanh %227 : vector<8x384xf32>
    %cst_51 = arith.constant 5.000000e-01 : f32
    %229 = vector.broadcast %cst_51 : f32 to vector<8x384xf32>
    %230 = arith.mulf %229, %228 : vector<8x384xf32>
    %cst_52 = arith.constant 5.000000e-01 : f32
    %231 = vector.broadcast %cst_52 : f32 to vector<8x384xf32>
    %232 = arith.addf %230, %231 : vector<8x384xf32>
    %233 = vector.extract_strided_slice %232 {offsets = [0, 0], sizes = [8, 128], strides = [1, 1]} : vector<8x384xf32> to vector<8x128xf32>
    %234 = vector.extract_strided_slice %232 {offsets = [0, 128], sizes = [8, 128], strides = [1, 1]} : vector<8x384xf32> to vector<8x128xf32>
    %235 = vector.extract_strided_slice %232 {offsets = [0, 256], sizes = [8, 128], strides = [1, 1]} : vector<8x384xf32> to vector<8x128xf32>
    %236 = vector.extract_strided_slice %224 {offsets = [0, 384], sizes = [8, 128], strides = [1, 1]} : vector<8x512xf32> to vector<8x128xf32>
    %237 = math.tanh %236 : vector<8x128xf32>
    %238 = arith.mulf %234, %196 : vector<8x128xf32>
    %239 = arith.mulf %233, %237 : vector<8x128xf32>
    %240 = arith.addf %238, %239 : vector<8x128xf32>
    %241 = math.tanh %240 : vector<8x128xf32>
    %242 = arith.mulf %235, %241 : vector<8x128xf32>
    %243 = arith.truncf %242 : vector<8x128xf32> to vector<8x128xbf16>
    %244 = arith.select %28, %243, %195 : vector<8x128xi1>, vector<8x128xbf16>
    %245 = arith.select %28, %240, %196 : vector<8x128xi1>, vector<8x128xf32>
    %246 = vector.extract_strided_slice %222 {offsets = [0, 0], sizes = [8, 512], strides = [1, 1]} : vector<8x1024xf32> to vector<8x512xf32>
    %c32 = arith.constant 32 : index
    %c0_53 = arith.constant 0 : index
    %247 = vector.load %arg6[%c32, %c0_53] : memref<64x512xf32, #tpu.memory_space<vmem>>, vector<8x512xf32>
    %248 = arith.addf %246, %247 : vector<8x512xf32>
    %249 = vector.extract_strided_slice %248 {offsets = [0, 0], sizes = [8, 384], strides = [1, 1]} : vector<8x512xf32> to vector<8x384xf32>
    %cst_54 = arith.constant 5.000000e-01 : f32
    %250 = vector.broadcast %cst_54 : f32 to vector<8x384xf32>
    %251 = arith.mulf %250, %249 : vector<8x384xf32>
    %252 = math.tanh %251 : vector<8x384xf32>
    %cst_55 = arith.constant 5.000000e-01 : f32
    %253 = vector.broadcast %cst_55 : f32 to vector<8x384xf32>
    %254 = arith.mulf %253, %252 : vector<8x384xf32>
    %cst_56 = arith.constant 5.000000e-01 : f32
    %255 = vector.broadcast %cst_56 : f32 to vector<8x384xf32>
    %256 = arith.addf %254, %255 : vector<8x384xf32>
    %257 = vector.extract_strided_slice %256 {offsets = [0, 0], sizes = [8, 128], strides = [1, 1]} : vector<8x384xf32> to vector<8x128xf32>
    %258 = vector.extract_strided_slice %256 {offsets = [0, 128], sizes = [8, 128], strides = [1, 1]} : vector<8x384xf32> to vector<8x128xf32>
    %259 = vector.extract_strided_slice %256 {offsets = [0, 256], sizes = [8, 128], strides = [1, 1]} : vector<8x384xf32> to vector<8x128xf32>
    %260 = vector.extract_strided_slice %248 {offsets = [0, 384], sizes = [8, 128], strides = [1, 1]} : vector<8x512xf32> to vector<8x128xf32>
    %261 = math.tanh %260 : vector<8x128xf32>
    %262 = arith.mulf %258, %220 : vector<8x128xf32>
    %263 = arith.mulf %257, %261 : vector<8x128xf32>
    %264 = arith.addf %262, %263 : vector<8x128xf32>
    %265 = math.tanh %264 : vector<8x128xf32>
    %266 = arith.mulf %259, %265 : vector<8x128xf32>
    %267 = arith.truncf %266 : vector<8x128xf32> to vector<8x128xbf16>
    %268 = arith.select %32, %267, %219 : vector<8x128xi1>, vector<8x128xbf16>
    %269 = arith.select %32, %264, %220 : vector<8x128xi1>, vector<8x128xf32>
    %270 = tpu.concatenate %268, %244 in 1 : vector<8x128xbf16>, vector<8x128xbf16> -> vector<8x256xbf16>
    %cst_57 = arith.constant dense<0.000000e+00> : vector<8x1024xf32>
    %271 = tpu.matmul %270, %0, %cst_57 {dimension_numbers = #tpu.dot_dimension_numbers<[1], [0], [0], [1], [0, 0, 1, 1], [], []>} : vector<8x256xbf16>, vector<256x1024xbf16>, vector<8x1024xf32> -> vector<8x1024xf32>
    %272 = vector.extract_strided_slice %271 {offsets = [0, 512], sizes = [8, 512], strides = [1, 1]} : vector<8x1024xf32> to vector<8x512xf32>
    %273 = arith.addf %272, %8 : vector<8x512xf32>
    %274 = vector.extract_strided_slice %273 {offsets = [0, 0], sizes = [8, 384], strides = [1, 1]} : vector<8x512xf32> to vector<8x384xf32>
    %cst_58 = arith.constant 5.000000e-01 : f32
    %275 = vector.broadcast %cst_58 : f32 to vector<8x384xf32>
    %276 = arith.mulf %275, %274 : vector<8x384xf32>
    %277 = math.tanh %276 : vector<8x384xf32>
    %cst_59 = arith.constant 5.000000e-01 : f32
    %278 = vector.broadcast %cst_59 : f32 to vector<8x384xf32>
    %279 = arith.mulf %278, %277 : vector<8x384xf32>
    %cst_60 = arith.constant 5.000000e-01 : f32
    %280 = vector.broadcast %cst_60 : f32 to vector<8x384xf32>
    %281 = arith.addf %279, %280 : vector<8x384xf32>
    %282 = vector.extract_strided_slice %281 {offsets = [0, 0], sizes = [8, 128], strides = [1, 1]} : vector<8x384xf32> to vector<8x128xf32>
    %283 = vector.extract_strided_slice %281 {offsets = [0, 128], sizes = [8, 128], strides = [1, 1]} : vector<8x384xf32> to vector<8x128xf32>
    %284 = vector.extract_strided_slice %281 {offsets = [0, 256], sizes = [8, 128], strides = [1, 1]} : vector<8x384xf32> to vector<8x128xf32>
    %285 = vector.extract_strided_slice %273 {offsets = [0, 384], sizes = [8, 128], strides = [1, 1]} : vector<8x512xf32> to vector<8x128xf32>
    %286 = math.tanh %285 : vector<8x128xf32>
    %287 = arith.mulf %283, %245 : vector<8x128xf32>
    %288 = arith.mulf %282, %286 : vector<8x128xf32>
    %289 = arith.addf %287, %288 : vector<8x128xf32>
    %290 = math.tanh %289 : vector<8x128xf32>
    %291 = arith.mulf %284, %290 : vector<8x128xf32>
    %292 = arith.truncf %291 : vector<8x128xf32> to vector<8x128xbf16>
    %293 = arith.select %32, %292, %244 : vector<8x128xi1>, vector<8x128xbf16>
    %294 = arith.select %32, %289, %245 : vector<8x128xi1>, vector<8x128xf32>
    %295 = vector.extract_strided_slice %271 {offsets = [0, 0], sizes = [8, 512], strides = [1, 1]} : vector<8x1024xf32> to vector<8x512xf32>
    %c40 = arith.constant 40 : index
    %c0_61 = arith.constant 0 : index
    %296 = vector.load %arg6[%c40, %c0_61] : memref<64x512xf32, #tpu.memory_space<vmem>>, vector<8x512xf32>
    %297 = arith.addf %295, %296 : vector<8x512xf32>
    %298 = vector.extract_strided_slice %297 {offsets = [0, 0], sizes = [8, 384], strides = [1, 1]} : vector<8x512xf32> to vector<8x384xf32>
    %cst_62 = arith.constant 5.000000e-01 : f32
    %299 = vector.broadcast %cst_62 : f32 to vector<8x384xf32>
    %300 = arith.mulf %299, %298 : vector<8x384xf32>
    %301 = math.tanh %300 : vector<8x384xf32>
    %cst_63 = arith.constant 5.000000e-01 : f32
    %302 = vector.broadcast %cst_63 : f32 to vector<8x384xf32>
    %303 = arith.mulf %302, %301 : vector<8x384xf32>
    %cst_64 = arith.constant 5.000000e-01 : f32
    %304 = vector.broadcast %cst_64 : f32 to vector<8x384xf32>
    %305 = arith.addf %303, %304 : vector<8x384xf32>
    %306 = vector.extract_strided_slice %305 {offsets = [0, 0], sizes = [8, 128], strides = [1, 1]} : vector<8x384xf32> to vector<8x128xf32>
    %307 = vector.extract_strided_slice %305 {offsets = [0, 128], sizes = [8, 128], strides = [1, 1]} : vector<8x384xf32> to vector<8x128xf32>
    %308 = vector.extract_strided_slice %305 {offsets = [0, 256], sizes = [8, 128], strides = [1, 1]} : vector<8x384xf32> to vector<8x128xf32>
    %309 = vector.extract_strided_slice %297 {offsets = [0, 384], sizes = [8, 128], strides = [1, 1]} : vector<8x512xf32> to vector<8x128xf32>
    %310 = math.tanh %309 : vector<8x128xf32>
    %311 = arith.mulf %307, %269 : vector<8x128xf32>
    %312 = arith.mulf %306, %310 : vector<8x128xf32>
    %313 = arith.addf %311, %312 : vector<8x128xf32>
    %314 = math.tanh %313 : vector<8x128xf32>
    %315 = arith.mulf %308, %314 : vector<8x128xf32>
    %316 = arith.truncf %315 : vector<8x128xf32> to vector<8x128xbf16>
    %317 = arith.select %36, %316, %268 : vector<8x128xi1>, vector<8x128xbf16>
    %318 = arith.select %36, %313, %269 : vector<8x128xi1>, vector<8x128xf32>
    %319 = tpu.concatenate %317, %293 in 1 : vector<8x128xbf16>, vector<8x128xbf16> -> vector<8x256xbf16>
    %cst_65 = arith.constant dense<0.000000e+00> : vector<8x1024xf32>
    %320 = tpu.matmul %319, %0, %cst_65 {dimension_numbers = #tpu.dot_dimension_numbers<[1], [0], [0], [1], [0, 0, 1, 1], [], []>} : vector<8x256xbf16>, vector<256x1024xbf16>, vector<8x1024xf32> -> vector<8x1024xf32>
    %321 = vector.extract_strided_slice %320 {offsets = [0, 512], sizes = [8, 512], strides = [1, 1]} : vector<8x1024xf32> to vector<8x512xf32>
    %322 = arith.addf %321, %8 : vector<8x512xf32>
    %323 = vector.extract_strided_slice %322 {offsets = [0, 0], sizes = [8, 384], strides = [1, 1]} : vector<8x512xf32> to vector<8x384xf32>
    %cst_66 = arith.constant 5.000000e-01 : f32
    %324 = vector.broadcast %cst_66 : f32 to vector<8x384xf32>
    %325 = arith.mulf %324, %323 : vector<8x384xf32>
    %326 = math.tanh %325 : vector<8x384xf32>
    %cst_67 = arith.constant 5.000000e-01 : f32
    %327 = vector.broadcast %cst_67 : f32 to vector<8x384xf32>
    %328 = arith.mulf %327, %326 : vector<8x384xf32>
    %cst_68 = arith.constant 5.000000e-01 : f32
    %329 = vector.broadcast %cst_68 : f32 to vector<8x384xf32>
    %330 = arith.addf %328, %329 : vector<8x384xf32>
    %331 = vector.extract_strided_slice %330 {offsets = [0, 0], sizes = [8, 128], strides = [1, 1]} : vector<8x384xf32> to vector<8x128xf32>
    %332 = vector.extract_strided_slice %330 {offsets = [0, 128], sizes = [8, 128], strides = [1, 1]} : vector<8x384xf32> to vector<8x128xf32>
    %333 = vector.extract_strided_slice %330 {offsets = [0, 256], sizes = [8, 128], strides = [1, 1]} : vector<8x384xf32> to vector<8x128xf32>
    %334 = vector.extract_strided_slice %322 {offsets = [0, 384], sizes = [8, 128], strides = [1, 1]} : vector<8x512xf32> to vector<8x128xf32>
    %335 = math.tanh %334 : vector<8x128xf32>
    %336 = arith.mulf %332, %294 : vector<8x128xf32>
    %337 = arith.mulf %331, %335 : vector<8x128xf32>
    %338 = arith.addf %336, %337 : vector<8x128xf32>
    %339 = math.tanh %338 : vector<8x128xf32>
    %340 = arith.mulf %333, %339 : vector<8x128xf32>
    %341 = arith.truncf %340 : vector<8x128xf32> to vector<8x128xbf16>
    %342 = arith.select %36, %341, %293 : vector<8x128xi1>, vector<8x128xbf16>
    %343 = arith.select %36, %338, %294 : vector<8x128xi1>, vector<8x128xf32>
    %344 = vector.extract_strided_slice %320 {offsets = [0, 0], sizes = [8, 512], strides = [1, 1]} : vector<8x1024xf32> to vector<8x512xf32>
    %c48 = arith.constant 48 : index
    %c0_69 = arith.constant 0 : index
    %345 = vector.load %arg6[%c48, %c0_69] : memref<64x512xf32, #tpu.memory_space<vmem>>, vector<8x512xf32>
    %346 = arith.addf %344, %345 : vector<8x512xf32>
    %347 = vector.extract_strided_slice %346 {offsets = [0, 0], sizes = [8, 384], strides = [1, 1]} : vector<8x512xf32> to vector<8x384xf32>
    %cst_70 = arith.constant 5.000000e-01 : f32
    %348 = vector.broadcast %cst_70 : f32 to vector<8x384xf32>
    %349 = arith.mulf %348, %347 : vector<8x384xf32>
    %350 = math.tanh %349 : vector<8x384xf32>
    %cst_71 = arith.constant 5.000000e-01 : f32
    %351 = vector.broadcast %cst_71 : f32 to vector<8x384xf32>
    %352 = arith.mulf %351, %350 : vector<8x384xf32>
    %cst_72 = arith.constant 5.000000e-01 : f32
    %353 = vector.broadcast %cst_72 : f32 to vector<8x384xf32>
    %354 = arith.addf %352, %353 : vector<8x384xf32>
    %355 = vector.extract_strided_slice %354 {offsets = [0, 0], sizes = [8, 128], strides = [1, 1]} : vector<8x384xf32> to vector<8x128xf32>
    %356 = vector.extract_strided_slice %354 {offsets = [0, 128], sizes = [8, 128], strides = [1, 1]} : vector<8x384xf32> to vector<8x128xf32>
    %357 = vector.extract_strided_slice %354 {offsets = [0, 256], sizes = [8, 128], strides = [1, 1]} : vector<8x384xf32> to vector<8x128xf32>
    %358 = vector.extract_strided_slice %346 {offsets = [0, 384], sizes = [8, 128], strides = [1, 1]} : vector<8x512xf32> to vector<8x128xf32>
    %359 = math.tanh %358 : vector<8x128xf32>
    %360 = arith.mulf %356, %318 : vector<8x128xf32>
    %361 = arith.mulf %355, %359 : vector<8x128xf32>
    %362 = arith.addf %360, %361 : vector<8x128xf32>
    %363 = math.tanh %362 : vector<8x128xf32>
    %364 = arith.mulf %357, %363 : vector<8x128xf32>
    %365 = arith.truncf %364 : vector<8x128xf32> to vector<8x128xbf16>
    %366 = arith.select %40, %365, %317 : vector<8x128xi1>, vector<8x128xbf16>
    %367 = arith.select %40, %362, %318 : vector<8x128xi1>, vector<8x128xf32>
    %368 = tpu.concatenate %366, %342 in 1 : vector<8x128xbf16>, vector<8x128xbf16> -> vector<8x256xbf16>
    %cst_73 = arith.constant dense<0.000000e+00> : vector<8x1024xf32>
    %369 = tpu.matmul %368, %0, %cst_73 {dimension_numbers = #tpu.dot_dimension_numbers<[1], [0], [0], [1], [0, 0, 1, 1], [], []>} : vector<8x256xbf16>, vector<256x1024xbf16>, vector<8x1024xf32> -> vector<8x1024xf32>
    %370 = vector.extract_strided_slice %369 {offsets = [0, 512], sizes = [8, 512], strides = [1, 1]} : vector<8x1024xf32> to vector<8x512xf32>
    %371 = arith.addf %370, %8 : vector<8x512xf32>
    %372 = vector.extract_strided_slice %371 {offsets = [0, 0], sizes = [8, 384], strides = [1, 1]} : vector<8x512xf32> to vector<8x384xf32>
    %cst_74 = arith.constant 5.000000e-01 : f32
    %373 = vector.broadcast %cst_74 : f32 to vector<8x384xf32>
    %374 = arith.mulf %373, %372 : vector<8x384xf32>
    %375 = math.tanh %374 : vector<8x384xf32>
    %cst_75 = arith.constant 5.000000e-01 : f32
    %376 = vector.broadcast %cst_75 : f32 to vector<8x384xf32>
    %377 = arith.mulf %376, %375 : vector<8x384xf32>
    %cst_76 = arith.constant 5.000000e-01 : f32
    %378 = vector.broadcast %cst_76 : f32 to vector<8x384xf32>
    %379 = arith.addf %377, %378 : vector<8x384xf32>
    %380 = vector.extract_strided_slice %379 {offsets = [0, 0], sizes = [8, 128], strides = [1, 1]} : vector<8x384xf32> to vector<8x128xf32>
    %381 = vector.extract_strided_slice %379 {offsets = [0, 128], sizes = [8, 128], strides = [1, 1]} : vector<8x384xf32> to vector<8x128xf32>
    %382 = vector.extract_strided_slice %379 {offsets = [0, 256], sizes = [8, 128], strides = [1, 1]} : vector<8x384xf32> to vector<8x128xf32>
    %383 = vector.extract_strided_slice %371 {offsets = [0, 384], sizes = [8, 128], strides = [1, 1]} : vector<8x512xf32> to vector<8x128xf32>
    %384 = math.tanh %383 : vector<8x128xf32>
    %385 = arith.mulf %381, %343 : vector<8x128xf32>
    %386 = arith.mulf %380, %384 : vector<8x128xf32>
    %387 = arith.addf %385, %386 : vector<8x128xf32>
    %388 = math.tanh %387 : vector<8x128xf32>
    %389 = arith.mulf %382, %388 : vector<8x128xf32>
    %390 = arith.truncf %389 : vector<8x128xf32> to vector<8x128xbf16>
    %391 = arith.select %40, %390, %342 : vector<8x128xi1>, vector<8x128xbf16>
    %392 = arith.select %40, %387, %343 : vector<8x128xi1>, vector<8x128xf32>
    %393 = vector.extract_strided_slice %369 {offsets = [0, 0], sizes = [8, 512], strides = [1, 1]} : vector<8x1024xf32> to vector<8x512xf32>
    %c56 = arith.constant 56 : index
    %c0_77 = arith.constant 0 : index
    %394 = vector.load %arg6[%c56, %c0_77] : memref<64x512xf32, #tpu.memory_space<vmem>>, vector<8x512xf32>
    %395 = arith.addf %393, %394 : vector<8x512xf32>
    %396 = vector.extract_strided_slice %395 {offsets = [0, 0], sizes = [8, 384], strides = [1, 1]} : vector<8x512xf32> to vector<8x384xf32>
    %cst_78 = arith.constant 5.000000e-01 : f32
    %397 = vector.broadcast %cst_78 : f32 to vector<8x384xf32>
    %398 = arith.mulf %397, %396 : vector<8x384xf32>
    %399 = math.tanh %398 : vector<8x384xf32>
    %cst_79 = arith.constant 5.000000e-01 : f32
    %400 = vector.broadcast %cst_79 : f32 to vector<8x384xf32>
    %401 = arith.mulf %400, %399 : vector<8x384xf32>
    %cst_80 = arith.constant 5.000000e-01 : f32
    %402 = vector.broadcast %cst_80 : f32 to vector<8x384xf32>
    %403 = arith.addf %401, %402 : vector<8x384xf32>
    %404 = vector.extract_strided_slice %403 {offsets = [0, 0], sizes = [8, 128], strides = [1, 1]} : vector<8x384xf32> to vector<8x128xf32>
    %405 = vector.extract_strided_slice %403 {offsets = [0, 128], sizes = [8, 128], strides = [1, 1]} : vector<8x384xf32> to vector<8x128xf32>
    %406 = vector.extract_strided_slice %403 {offsets = [0, 256], sizes = [8, 128], strides = [1, 1]} : vector<8x384xf32> to vector<8x128xf32>
    %407 = vector.extract_strided_slice %395 {offsets = [0, 384], sizes = [8, 128], strides = [1, 1]} : vector<8x512xf32> to vector<8x128xf32>
    %408 = math.tanh %407 : vector<8x128xf32>
    %409 = arith.mulf %405, %367 : vector<8x128xf32>
    %410 = arith.mulf %404, %408 : vector<8x128xf32>
    %411 = arith.addf %409, %410 : vector<8x128xf32>
    %412 = math.tanh %411 : vector<8x128xf32>
    %413 = arith.mulf %406, %412 : vector<8x128xf32>
    %414 = arith.truncf %413 : vector<8x128xf32> to vector<8x128xbf16>
    %415 = arith.select %44, %414, %366 : vector<8x128xi1>, vector<8x128xbf16>
    %416 = arith.select %44, %411, %367 : vector<8x128xi1>, vector<8x128xf32>
    %417 = tpu.concatenate %415, %391 in 1 : vector<8x128xbf16>, vector<8x128xbf16> -> vector<8x256xbf16>
    %cst_81 = arith.constant dense<0.000000e+00> : vector<8x1024xf32>
    %418 = tpu.matmul %417, %0, %cst_81 {dimension_numbers = #tpu.dot_dimension_numbers<[1], [0], [0], [1], [0, 0, 1, 1], [], []>} : vector<8x256xbf16>, vector<256x1024xbf16>, vector<8x1024xf32> -> vector<8x1024xf32>
    %419 = vector.extract_strided_slice %418 {offsets = [0, 512], sizes = [8, 512], strides = [1, 1]} : vector<8x1024xf32> to vector<8x512xf32>
    %420 = arith.addf %419, %8 : vector<8x512xf32>
    %421 = vector.extract_strided_slice %420 {offsets = [0, 0], sizes = [8, 384], strides = [1, 1]} : vector<8x512xf32> to vector<8x384xf32>
    %cst_82 = arith.constant 5.000000e-01 : f32
    %422 = vector.broadcast %cst_82 : f32 to vector<8x384xf32>
    %423 = arith.mulf %422, %421 : vector<8x384xf32>
    %424 = math.tanh %423 : vector<8x384xf32>
    %cst_83 = arith.constant 5.000000e-01 : f32
    %425 = vector.broadcast %cst_83 : f32 to vector<8x384xf32>
    %426 = arith.mulf %425, %424 : vector<8x384xf32>
    %cst_84 = arith.constant 5.000000e-01 : f32
    %427 = vector.broadcast %cst_84 : f32 to vector<8x384xf32>
    %428 = arith.addf %426, %427 : vector<8x384xf32>
    %429 = vector.extract_strided_slice %428 {offsets = [0, 0], sizes = [8, 128], strides = [1, 1]} : vector<8x384xf32> to vector<8x128xf32>
    %430 = vector.extract_strided_slice %428 {offsets = [0, 128], sizes = [8, 128], strides = [1, 1]} : vector<8x384xf32> to vector<8x128xf32>
    %431 = vector.extract_strided_slice %420 {offsets = [0, 384], sizes = [8, 128], strides = [1, 1]} : vector<8x512xf32> to vector<8x128xf32>
    %432 = math.tanh %431 : vector<8x128xf32>
    %433 = arith.mulf %430, %392 : vector<8x128xf32>
    %434 = arith.mulf %429, %432 : vector<8x128xf32>
    %435 = arith.addf %433, %434 : vector<8x128xf32>
    %436 = arith.select %44, %435, %392 : vector<8x128xi1>, vector<8x128xf32>
    %437 = arith.truncf %416 : vector<8x128xf32> to vector<8x128xbf16>
    %438 = arith.truncf %436 : vector<8x128xf32> to vector<8x128xbf16>
    %439 = tpu.concatenate %437, %438 in 1 : vector<8x128xbf16>, vector<8x128xbf16> -> vector<8x256xbf16>
    %cst_85 = arith.constant dense<0.000000e+00> : vector<8x128xf32>
    %440 = tpu.matmul %439, %2, %cst_85 {dimension_numbers = #tpu.dot_dimension_numbers<[1], [0], [0], [1], [0, 0, 1, 1], [], []>} : vector<8x256xbf16>, vector<256x128xbf16>, vector<8x128xf32> -> vector<8x128xf32>
    %441 = vector.broadcast %9 : vector<1x128xf32> to vector<8x128xf32>
    %442 = arith.addf %440, %441 : vector<8x128xf32>
    %cst_86 = arith.constant 0.000000e+00 : f32
    %443 = vector.broadcast %cst_86 : f32 to vector<8x128xf32>
    %444 = arith.maximumf %442, %443 : vector<8x128xf32>
    %445 = arith.truncf %444 : vector<8x128xf32> to vector<8x128xbf16>
    %cst_87 = arith.constant dense<0.000000e+00> : vector<8x128xf32>
    %446 = tpu.matmul %445, %3, %cst_87 {dimension_numbers = #tpu.dot_dimension_numbers<[1], [0], [0], [1], [0, 0, 1, 1], [], []>} : vector<8x128xbf16>, vector<128x128xbf16>, vector<8x128xf32> -> vector<8x128xf32>
    %447 = vector.broadcast %10 : vector<1x128xf32> to vector<8x128xf32>
    %448 = arith.addf %446, %447 : vector<8x128xf32>
    %cst_88 = arith.constant 0.000000e+00 : f32
    %449 = vector.broadcast %cst_88 : f32 to vector<8x128xf32>
    %450 = arith.maximumf %448, %449 : vector<8x128xf32>
    %451 = arith.truncf %450 : vector<8x128xf32> to vector<8x128xbf16>
    %cst_89 = arith.constant dense<0.000000e+00> : vector<8x128xf32>
    %452 = tpu.matmul %451, %4, %cst_89 {dimension_numbers = #tpu.dot_dimension_numbers<[1], [0], [0], [1], [0, 0, 1, 1], [], []>} : vector<8x128xbf16>, vector<128x128xbf16>, vector<8x128xf32> -> vector<8x128xf32>
    %453 = vector.broadcast %11 : vector<1x128xf32> to vector<8x128xf32>
    %454 = arith.addf %452, %453 : vector<8x128xf32>
    %455 = vector.extract_strided_slice %454 {offsets = [0, 0], sizes = [2, 32], strides = [1, 1]} : vector<8x128xf32> to vector<2x32xf32>
    %cst_90 = arith.constant 1.000000e+00 : f32
    %456 = vector.broadcast %cst_90 : f32 to vector<2x32xf32>
    %457 = arith.addf %456, %455 : vector<2x32xf32>
    %cst_91 = arith.constant 0.000000e+00 : f32
    %458 = vector.broadcast %cst_91 : f32 to vector<2x32xf32>
    %459 = arith.maximumf %457, %458 : vector<2x32xf32>
    %c0_92 = arith.constant 0 : index
    %c0_93 = arith.constant 0 : index
    %460 = vector.load %arg2[%c0_92, %c0_93] : memref<2x32xf32, #tpu.memory_space<vmem>>, vector<2x32xf32>
    %461 = arith.mulf %459, %460 : vector<2x32xf32>
    %c0_94 = arith.constant 0 : index
    %c0_95 = arith.constant 0 : index
    %462 = vector.load %arg5[%c0_94, %c0_95] : memref<2x32xf32, #tpu.memory_space<vmem>>, vector<2x32xf32>
    tpu.vector_store %arg5[%c0_94, %c0_95], %461 {strides = array<i32>} : memref<2x32xf32, #tpu.memory_space<vmem>>, vector<2x32xf32>,
    return
  }
}

</mosaic_0001>

<bundles_post_ra>
// kernel: tpu_custom_call.1
= control target key start
LH: loop header
LB: loop body
LE: loop exit
PB: predicated region body
PF: predicated region fallthrough
CT: control target
= control target key end

     0   :  { %10 = vsyncpa [#allocation4], 0  ;;  %s6465_s0 = inlined_call_operand.vmem [shape: bf16[64,16], index: 0, kind: input, shape index: {}]   ;;  %s6466_s1 = inlined_call_operand.vmem [shape: s32[8,1], index: 1, kind: input, shape index: {}]   ;;  %s6467_s2 = inlined_call_operand.vmem [shape: f32[2,32], index: 2, kind: input, shape index: {}]   ;;  %s6468_s3 = inlined_call_operand.hbm [shape: bf16[256,1920], index: 3, kind: input, shape index: {}]   ;;  %s6469_s4 = inlined_call_operand.vmem [shape: f32[1,1408], index: 4, kind: input, shape index: {}]   ;;  %s6470_s5 = inlined_call_operand.hbm [shape: f32[2,32], index: 5, kind: output, shape index: {}]  }
   0x1   :  { %11 = vsyncpa [#allocation5], 0  ;;  %s4183_s18 = smov [#allocation3]   ;;  %s4135_s22 = scalar_lea.hbm %s6468_s3, 30720 }
   0x2   :  { %s23_s19 = sshll.u32 %s4183_s18, 4  ;;  %p4136_p0 = scmp.ne.s32.totalorder %s6468_s3, %s4135_s22  ;;  %s24_s19 = int_to_ptr.vmem [resolvable:$true] %s23_s19 }
   0x3   :  { %p4139_p1 = scmp.lt.u32.totalorder %s4135_s22, %s6468_s3 }
   0x5   :  { %p4141_p2 = pnand %p4139_p1, %p4136_p0 }
   0x7   :  { %4144 = shalt.err (!%p4141_p2)
}
   0x8   :  { %s4145_s27 = scalar_lea.vmem %s24_s19, 30720  ;;  %p4150_p4 = scmp.lt.s32.totalorder %s24_s19, %s24_s19 }
   0x9   :  { %p4146_p3 = scmp.ne.s32.totalorder %s24_s19, %s4145_s27  ;;  %p4151_p5 = scmp.lt.s32.totalorder %s4145_s27, %s4145_s27 }
   0xb   :  { %p4152_p6 = por %p4151_p5, %p4150_p4 }
   0xd   :  { %p4153_p7 = pnand %p4152_p6, %p4146_p3 }
   0xf   :  { %4156 = shalt.err (!%p4153_p7)
}
  0x10   :  { %s4184_s28 = smov 960   ;;  %s4185_s29 = smov 60  }
  0x11   :  { %29 = dma.hbm_to_vmem [thread:$0]  %s6468_s3, 30720, %s24_s19, [#allocation4], %s4184_s28, %s4184_s28, %s4185_s29  }
  0x12   :  { %4179 = dma.done.wait [#allocation4], 30720  }
  0x13   :  { %4180 = vsyncadd [#allocation4], 4294936576  ;;  %v6473_v0 = vmov 0   ;;  %v3488_v1 = vld [vmem:[#allocation3 + $0x24] ss:$60 sps:$4 sm:$0xff]   ;;  %vm376_vm0 = vcmask 130048  }
  0x14   :  { %421 = vmatprep.mubr.bf16.mxu0 %v6473_v0  ;;  %494 = vmatprep.mubr.bf16.mxu1 %v6473_v0  ;;  %v3490_v2 = vld [vmem:[#allocation3 + $0x20] ss:$60 sps:$4 sm:$0xff]   ;;  %v3491_v3 = vld [vmem:[#allocation3 + $0x2c] ss:$60 sps:$4 sm:$0xff]   ;;  %v3505_v15 = vld [vmem:[#allocation3 + $0x78] ss:$60 sps:$4 sm:$0xff]  }
  0x15   :  { %3486 = vset.pattern.permute.xlu0 %v6473_v0  ;;  %3487 = vset.pattern.permute.xlu1 %v6473_v0  ;;  %v3493_v4 = vld [vmem:[%s6465_s0] sm:$0xff]   ;;  %v3497_v9 = vld [vmem:[#allocation3 + $0xc] ss:$60 sps:$4 sm:$0xff]   ;;  %v3501_v13 = vld [vmem:[#allocation3 + $0x7c] ss:$60 sps:$4 sm:$0xff]   ;;  %s4189_s28 = smov [#allocation6]  }
  0x16   :  { %389 = vmatprep.subr.bf16.mxu0 %v3488_v1  ;;  %v3494_v5 = vld [vmem:[#allocation3 + $0x28] ss:$60 sps:$4 sm:$0xff]   ;;  %462 = vmatprep.subr.bf16.mxu1 %v3491_v3  ;;  %v3499_v11 = vld [vmem:[#allocation3] ss:$60 sps:$4 sm:$0xff]   ;;  %v3507_v18 = vld [vmem:[#allocation3 + $0xf4] ss:$60 sps:$4 sm:$0xff]  }
  0x17   :  { %390 = vmatpush1.bf16.msra.mxu0 %v3490_v2  ;;  %v258_v6 = vld [vmem:[%s6466_s1] sm:$0xff]  ;;  %463 = vmatpush1.bf16.msra.mxu1 %v3494_v5  ;;  %v3509_v19 = vld [vmem:[#allocation3 + $0xfc] ss:$60 sps:$4 sm:$0xff]   ;;  %v3511_v20 = vld [vmem:[#allocation3 + $0xf0] ss:$60 sps:$4 sm:$0xff]   ;;  %s3211_s29 = sshll.u32 %s4189_s28, 4  ;;  %s3212_s29 = int_to_ptr.vmem [resolvable:$true] %s3211_s29 }
  0x18   :  { %vm259_vm1 = vcmp.gt.s32.totalorder %v258_v6, 0  ;;  %vm265_vm2 = vcmp.gt.s32.totalorder %v258_v6, 1  ;;  %v3495_v8 = vld [vmem:[#allocation3 + $0x4] ss:$60 sps:$4 sm:$0xff]   ;;  %vm283_vm3 = vcmp.gt.s32.totalorder %v258_v6, 4  ;;  %1274 = vmatprep.subr.bf16.mxu1 %v3497_v9  ;;  %vm295_vm4 = vcmp.gt.s32.totalorder %v258_v6, 6  ;;  %p4162_p9 = scmp.lt.s32.totalorder %s3212_s29, %s3212_s29 }
  0x19   :  { %v260_v7 = vsel %vm259_vm1, 1, %v6473_v0  ;;  %v266_v10 = vsel %vm265_vm2, 1, %v6473_v0  ;;  %1233 = vmatprep.subr.bf16.mxu0 %v3495_v8  ;;  %v3500_v12 = vld [vmem:[#allocation3 + $0x8] ss:$60 sps:$4 sm:$0xff]   ;;  %v3506_v16 = vld [vmem:[#allocation3 + $0x80] ss:$60 sps:$4 sm:$0xff]  }
  0x1a   :  { %3228 = vmatmul.mubr.msk.bf16.vlgmr.msra.gmra.mrb[0].mxu0 %vm376_vm0, %v3493_v4  ;;  %262 = vperm.xlu0 %3486, %v260_v7   ;;  %v3503_v14 = vld [vmem:[#allocation3 + $0x84] ss:$60 sps:$4 sm:$0xff]   ;;  %v284_v17 = vsel %vm283_vm3, 1, %v6473_v0  ;;  %v3512_v21 = vld [vmem:[#allocation3 + $0xf8] ss:$60 sps:$4 sm:$0xff]   ;;  %v296_v23 = vsel %vm295_vm4, 1, %v6473_v0 }
  0x1b   :  { %431 = vmatprep.mubr.bf16.mxu0 %v6473_v0  ;;  %3232 = vmatmul.mubr.msk.bf16.vlgmr.msra.gmra.mrb[0].mxu1 %vm376_vm0, %v3493_v4  ;;  %v3513_v22 = vld [vmem:[#allocation3 + $0x16c] ss:$60 sps:$4 sm:$0xff]   ;;  %v3515_v24 = vld [vmem:[#allocation3 + $0x174] ss:$60 sps:$4 sm:$0xff]   ;;  %v3519_v27 = vld [vmem:[#allocation3 + $0x1e4] ss:$60 sps:$4 sm:$0xff]  }
  0x1c   :  { %1234 = vmatpush1.bf16.msra.mxu0 %v3499_v11  ;;  %1275 = vmatpush1.bf16.msra.mxu1 %v3500_v12  ;;  %v3517_v25 = vld [vmem:[#allocation3 + $0x168] ss:$60 sps:$4 sm:$0xff]   ;;  %v3518_v26 = vld [vmem:[#allocation3 + $0x170] ss:$60 sps:$4 sm:$0xff]   ;;  %v3523_v29 = vld [vmem:[#allocation3 + $0x1e0] ss:$60 sps:$4 sm:$0xff]  }
  0x1d   :  { %1235 = vmatprep.subr.bf16.mxu0 %v3501_v13  ;;  %1276 = vmatprep.subr.bf16.mxu1 %v3503_v14  ;;  %v3521_v28 = vld [vmem:[#allocation3 + $0x1ec] ss:$60 sps:$4 sm:$0xff]   ;;  %v3525_v31 = vld [vmem:[#allocation3 + $0x25c] ss:$60 sps:$4 sm:$0xff]   ;;  %v4250_v32 = vld [vmem:[#allocation3 + $0x264] ss:$60 sps:$4 sm:$0xff]  }
  0x1e   :  { %268 = vperm.xlu0 %3486, %v266_v10   ;;  %504 = vmatprep.mubr.bf16.mxu1 %v6473_v0  ;;  %v3524_v30 = vld [vmem:[#allocation3 + $0x1e8] ss:$60 sps:$4 sm:$0xff]   ;;  %v4252_v33 = vld [vmem:[#allocation3 + $0x258] ss:$60 sps:$4 sm:$0xff]   ;;  %v4254_v34 = vld [vmem:[#allocation3 + $0x260] ss:$60 sps:$4 sm:$0xff]  }
  0x1f   :  { %v4259_v35 = vld [vmem:[#allocation3 + $0x2d4] ss:$60 sps:$4 sm:$0xff]   ;;  %v4261_v36 = vld [vmem:[#allocation3 + $0x2dc] ss:$60 sps:$4 sm:$0xff]   ;;  %v4271_v39 = vld [vmem:[#allocation3 + $0x34c] ss:$60 sps:$4 sm:$0xff]  }
  0x20   :  { %1236 = vmatpush1.bf16.msra.mxu0 %v3505_v15  ;;  %1277 = vmatpush1.bf16.msra.mxu1 %v3506_v16  ;;  %v4263_v37 = vld [vmem:[#allocation3 + $0x2d0] ss:$60 sps:$4 sm:$0xff]   ;;  %v4265_v38 = vld [vmem:[#allocation3 + $0x2d8] ss:$60 sps:$4 sm:$0xff]   ;;  %v4275_v41 = vld [vmem:[#allocation3 + $0x348] ss:$60 sps:$4 sm:$0xff]  }
  0x21   :  { %1237 = vmatprep.subr.bf16.mxu0 %v3507_v18  ;;  %1278 = vmatprep.subr.bf16.mxu1 %v3509_v19  ;;  %v4273_v40 = vld [vmem:[#allocation3 + $0x354] ss:$60 sps:$4 sm:$0xff]   ;;  %v4283_v43 = vld [vmem:[#allocation3 + $0x3c4] ss:$60 sps:$4 sm:$0xff]   ;;  %v4285_v44 = vld [vmem:[#allocation3 + $0x3cc] ss:$60 sps:$4 sm:$0xff]  }
  0x22   :  { %286 = vperm.xlu0 %3486, %v284_v17   ;;  %v4277_v42 = vld [vmem:[#allocation3 + $0x350] ss:$60 sps:$4 sm:$0xff]   ;;  %v4287_v45 = vld [vmem:[#allocation3 + $0x3c0] ss:$60 sps:$4 sm:$0xff]   ;;  %v4289_v46 = vld [vmem:[#allocation3 + $0x3c8] ss:$60 sps:$4 sm:$0xff]   ;;  %v235_v17 = vlaneseq }
  0x23   :  { %v4295_v47 = vld [vmem:[#allocation3 + $0x43c] ss:$60 sps:$4 sm:$0xff]   ;;  %v4297_v48 = vld [vmem:[#allocation3 + $0x444] ss:$60 sps:$4 sm:$0xff]   ;;  %v3555_v51 = vld [vmem:[%s6465_s0 + $0x8] sm:$0xff]   ;;  %s4157_s30 = scalar_lea.vmem %s3212_s29, 32 }
  0x24   :  { %1238 = vmatpush1.bf16.msra.mxu0 %v3511_v20  ;;  %1279 = vmatpush1.bf16.msra.mxu1 %v3512_v21  ;;  %v4299_v49 = vld [vmem:[#allocation3 + $0x438] ss:$60 sps:$4 sm:$0xff]   ;;  %v4301_v50 = vld [vmem:[#allocation3 + $0x440] ss:$60 sps:$4 sm:$0xff]   ;;  %v4316_v54 = vld [vmem:[#allocation3 + $0x4b0] ss:$60 sps:$4 sm:$0xff]   ;;  %p4158_p8 = scmp.ne.s32.totalorder %s3212_s29, %s4157_s30  ;;  %p4163_p10 = scmp.lt.s32.totalorder %s4157_s30, %s4157_s30 }
  0x25   :  { %1239 = vmatprep.subr.bf16.mxu0 %v3513_v22  ;;  %1280 = vmatprep.subr.bf16.mxu1 %v3515_v24  ;;  %v4311_v52 = vld [vmem:[#allocation3 + $0x4b4] ss:$60 sps:$4 sm:$0xff]   ;;  %v4313_v53 = vld [vmem:[#allocation3 + $0x4bc] ss:$60 sps:$4 sm:$0xff]   ;;  %v4326_v56 = vld [vmem:[#allocation3 + $0x52c] ss:$60 sps:$4 sm:$0xff]  }
  0x26   :  { %298 = vperm.xlu0 %3486, %v296_v23   ;;  %3229 = vmatmul.mubr.msk.bf16.gmra.mrb[4].mxu0 %vm376_vm0, %v3555_v51  ;;  %v4318_v55 = vld [vmem:[#allocation3 + $0x4b8] ss:$60 sps:$4 sm:$0xff]   ;;  %v4330_v58 = vld [vmem:[#allocation3 + $0x528] ss:$60 sps:$4 sm:$0xff]   ;;  %v4332_v59 = vld [vmem:[#allocation3 + $0x530] ss:$60 sps:$4 sm:$0xff]   ;;  %p4164_p11 = por %p4163_p10, %p4162_p9 }
  0x27   :  { %3233 = vmatmul.mubr.msk.bf16.gmra.mrb[4].mxu1 %vm376_vm0, %v3555_v51  ;;  %441 = vmatprep.mubr.bf16.mxu0 %v6473_v0  ;;  %v4328_v57 = vld [vmem:[#allocation3 + $0x534] ss:$60 sps:$4 sm:$0xff]   ;;  %v4342_v61 = vld [vmem:[#allocation3 + $0x5a4] ss:$60 sps:$4 sm:$0xff]   ;;  %v4344_v62 = vld [vmem:[#allocation3 + $0x5ac] ss:$60 sps:$4 sm:$0xff]  }
  0x28   :  { %1240 = vmatpush1.bf16.msra.mxu0 %v3517_v25  ;;  %1281 = vmatpush1.bf16.msra.mxu1 %v3518_v26  ;;  %v3568_v60 = vld [vmem:[%s6465_s0 + $0x10] sm:$0xff]   ;;  %v4347_v63 = vld [vmem:[#allocation3 + $0x5a0] ss:$60 sps:$4 sm:$0xff]   ;;  %v4349_v1 = vld [vmem:[#allocation3 + $0x5a8] ss:$60 sps:$4 sm:$0xff]   ;;  %v4406_v18 = vshrl.u32 %v235_v17, 7  ;;  %p4165_p12 = pnand %p4164_p11, %p4158_p8 }
  0x29   :  { %1241 = vmatprep.subr.bf16.mxu0 %v3519_v27  ;;  %1282 = vmatprep.subr.bf16.mxu1 %v3521_v28  ;;  %v4357_v2 = vld [vmem:[#allocation3 + $0x61c] ss:$60 sps:$4 sm:$0xff]   ;;  %v4359_v3 = vld [vmem:[#allocation3 + $0x624] ss:$60 sps:$4 sm:$0xff]   ;;  %v4373_v7 = vld [vmem:[#allocation3 + $0x694] ss:$60 sps:$4 sm:$0xff]  }
  0x2a   :  { %514 = vmatprep.mubr.bf16.mxu1 %v6473_v0  ;;  %v4361_v4 = vld [vmem:[#allocation3 + $0x618] ss:$60 sps:$4 sm:$0xff]   ;;  %v4363_v5 = vld [vmem:[#allocation3 + $0x620] ss:$60 sps:$4 sm:$0xff]   ;;  %v4378_v9 = vld [vmem:[#allocation3 + $0x690] ss:$60 sps:$4 sm:$0xff]  }
  0x2b   :  { %v3581_v6 = vld [vmem:[%s6465_s0 + $0x18] sm:$0xff]   ;;  %v4388_v11 = vld [vmem:[#allocation3 + $0x70c] ss:$60 sps:$4 sm:$0xff]   ;;  %v4390_v12 = vld [vmem:[#allocation3 + $0x714] ss:$60 sps:$4 sm:$0xff]   ;;  %6897 = vst [vmem:[#allocation9_spill] sm:$0xff] %v4406_v18 }
  0x2c   :  { %1242 = vmatpush1.bf16.msra.mxu0 %v3523_v29  ;;  %1283 = vmatpush1.bf16.msra.mxu1 %v3524_v30  ;;  %v4375_v8 = vld [vmem:[#allocation3 + $0x69c] ss:$60 sps:$4 sm:$0xff]   ;;  %v4392_v13 = vld [vmem:[#allocation3 + $0x708] ss:$60 sps:$4 sm:$0xff]   ;;  %v4394_v14 = vld [vmem:[#allocation3 + $0x710] ss:$60 sps:$4 sm:$0xff]  }
  0x2d   :  { %1243 = vmatprep.subr.bf16.mxu0 %v3525_v31  ;;  %1284 = vmatprep.subr.bf16.mxu1 %v4250_v32  ;;  %v4380_v10 = vld [vmem:[#allocation3 + $0x698] ss:$60 sps:$4 sm:$0xff]   ;;  %v6472_v19 = vsub.s32 0, %v4406_v18  ;;  %v232_v20 = vld [vmem:[%s6469_s4] sm:$0xf]  ;;  %v6471_v21 = vsub.s32 1, %v4406_v18 }
  0x2e   :  { %3230 = vmatmul.mubr.msk.bf16.gmra.mrb[8].mxu0 %vm376_vm0, %v3568_v60  ;;  %v4400_v15 = vld [vmem:[#allocation3 + $0x14] ss:$60 sps:$4 sm:$0xff]   ;;  %v4402_v16 = vld [vmem:[#allocation3 + $0x1c] ss:$60 sps:$4 sm:$0xff]   ;;  %v6475_v22 = vsub.s32 3, %v4406_v18  ;;  %v6484_v29 = vsub.s32 2, %v4406_v18 }
  0x2f   :  { %3234 = vmatmul.mubr.msk.bf16.gmra.mrb[8].mxu1 %vm376_vm0, %v3568_v60  ;;  %451 = vmatprep.mubr.bf16.mxu0 %v6473_v0  ;;  %v4416_v23 = vrot.slane %v232_v20, %v6472_v19  ;;  %v4420_v24 = vrot.slane %v232_v20, %v6471_v21 }
  0x30   :  { %1244 = vmatpush1.bf16.msra.mxu0 %v4252_v33  ;;  %1285 = vmatpush1.bf16.msra.mxu1 %v4254_v34  ;;  %v4424_v26 = vrot.slane %v232_v20, %v6475_v22 }
  0x31   :  { %1245 = vmatprep.subr.bf16.mxu0 %v4259_v35  ;;  %1286 = vmatprep.subr.bf16.mxu1 %v4261_v36  ;;  %6898 = vst [vmem:[#allocation10_spill] sm:$0xff] %v4416_v23  ;;  %6899 = vst [vmem:[#allocation11_spill] sm:$0xff] %v4420_v24 }
  0x32   :  { %524 = vmatprep.mubr.bf16.mxu1 %v6473_v0  ;;  %6900 = vst [vmem:[#allocation12_spill] sm:$0xff] %v4424_v26 }
  0x34   :  { %1246 = vmatpush1.bf16.msra.mxu0 %v4263_v37  ;;  %1287 = vmatpush1.bf16.msra.mxu1 %v4265_v38 }
  0x35   :  { %1247 = vmatprep.subr.bf16.mxu0 %v4271_v39  ;;  %1288 = vmatprep.subr.bf16.mxu1 %v4273_v40 }
  0x36   :  { %3231 = vmatmul.mubr.msk.bf16.gmra.mrb[12].mxu0 %vm376_vm0, %v3581_v6 }
  0x37   :  { %3235 = vmatmul.mubr.msk.bf16.gmra.mrb[12].mxu1 %vm376_vm0, %v3581_v6  ;;  %1265 = vmatprep.mubr.bf16.mxu0 %v6473_v0 }
  0x38   :  { %1248 = vmatpush1.bf16.msra.mxu0 %v4275_v41  ;;  %1289 = vmatpush1.bf16.msra.mxu1 %v4277_v42 }
  0x39   :  { %1249 = vmatprep.subr.bf16.mxu0 %v4283_v43  ;;  %1290 = vmatprep.subr.bf16.mxu1 %v4285_v44 }
  0x3a   :  { %1306 = vmatprep.mubr.bf16.mxu1 %v6473_v0 }
  0x3c   :  { %1250 = vmatpush1.bf16.msra.mxu0 %v4287_v45  ;;  %1291 = vmatpush1.bf16.msra.mxu1 %v4289_v46 }
  0x3d   :  { %1251 = vmatprep.subr.bf16.mxu0 %v4295_v47  ;;  %1292 = vmatprep.subr.bf16.mxu1 %v4297_v48 }
  0x40   :  { %1252 = vmatpush1.bf16.msra.mxu0 %v4299_v49  ;;  %1293 = vmatpush1.bf16.msra.mxu1 %v4301_v50 }
  0x41   :  { %1253 = vmatprep.subr.bf16.mxu0 %v4311_v52  ;;  %1294 = vmatprep.subr.bf16.mxu1 %v4313_v53 }
  0x44   :  { %1254 = vmatpush1.bf16.msra.mxu0 %v4316_v54  ;;  %1295 = vmatpush1.bf16.msra.mxu1 %v4318_v55 }
  0x45   :  { %1255 = vmatprep.subr.bf16.mxu0 %v4326_v56  ;;  %1296 = vmatprep.subr.bf16.mxu1 %v4328_v57 }
  0x48   :  { %1256 = vmatpush1.bf16.msra.mxu0 %v4330_v58  ;;  %1297 = vmatpush1.bf16.msra.mxu1 %v4332_v59 }
  0x49   :  { %1257 = vmatprep.subr.bf16.mxu0 %v4342_v61  ;;  %1298 = vmatprep.subr.bf16.mxu1 %v4344_v62 }
  0x4c   :  { %1258 = vmatpush1.bf16.msra.mxu0 %v4347_v63  ;;  %1299 = vmatpush1.bf16.msra.mxu1 %v4349_v1 }
  0x4d   :  { %1259 = vmatprep.subr.bf16.mxu0 %v4357_v2  ;;  %1300 = vmatprep.subr.bf16.mxu1 %v4359_v3 }
  0x50   :  { %1260 = vmatpush1.bf16.msra.mxu0 %v4361_v4  ;;  %1301 = vmatpush1.bf16.msra.mxu1 %v4363_v5 }
  0x51   :  { %1261 = vmatprep.subr.bf16.mxu0 %v4373_v7  ;;  %1302 = vmatprep.subr.bf16.mxu1 %v4375_v8 }
  0x54   :  { %1262 = vmatpush1.bf16.msra.mxu0 %v4378_v9  ;;  %1303 = vmatpush1.bf16.msra.mxu1 %v4380_v10 }
  0x55   :  { %1263 = vmatprep.subr.bf16.mxu0 %v4388_v11  ;;  %1304 = vmatprep.subr.bf16.mxu1 %v4390_v12 }
  0x58   :  { %1264 = vmatpush1.bf16.msra.mxu0 %v4392_v13  ;;  %1305 = vmatpush1.bf16.msra.mxu1 %v4394_v14 }
  0x59   :  { %1315 = vmatprep.subr.bf16.mxu0 %v4400_v15  ;;  %1356 = vmatprep.subr.bf16.mxu1 %v4402_v16 }
  0xed   :  { %v423_v25 = vpop.f32.mrb[0].mxu0 }
  0xee   :  { %v424_v27 = vadd.f32 %v423_v25, %v4416_v23  ;;  %v425_v28 = vpop.f32.mrb[1].mxu0  ;;  %v496_v51 = vpop.f32.mrb[0].mxu1  ;;  %v4438_v25 = vrot.slane %v232_v20, %v6484_v29  ;;  %v4494_v29 = vld [vmem:[#allocation3 + $0x184] ss:$60 sps:$4 sm:$0xff]  }
  0xef   :  { %v426_v30 = vadd.f32 %v425_v28, %v4420_v24  ;;  %v4429_v31 = vpop.f32.mrb[2].mxu0  ;;  %v498_v17 = vpop.f32.mrb[1].mxu1  ;;  %6918 = vst [vmem:[#allocation27_spill] sm:$0xff] %v4494_v29 }
  0xf0   :  { %6901 = vst [vmem:[#allocation13_spill] sm:$0xff] %v4429_v31  ;;  %v571_v60 = vmul.f32 0.5, %v424_v27  ;;  %v4431_v6 = vpop.f32.mrb[3].mxu0  ;;  %v499_v19 = vadd.f32 %v498_v17, %v4424_v26  ;;  %v4434_v0 = vpop.f32.mrb[2].mxu1  ;;  %6904 = vst [vmem:[#allocation16_spill] sm:$0xff] %v4438_v25  ;;  %v497_v28 = vadd.f32 %v496_v51, %v4438_v25 }
  0xf1   :  { %6902 = vst [vmem:[#allocation14_spill] sm:$0xff] %v4431_v6  ;;  %v572_v21 = vmul.f32 0.5, %v426_v30  ;;  %6903 = vst [vmem:[#allocation15_spill] sm:$0xff] %v4434_v0  ;;  %v4440_v22 = vpop.f32.mrb[3].mxu1 }
  0xf2   :  { %3722 = vtanh.f32 %v571_v60  ;;  %v573_v27 = vmul.f32 0.5, %v497_v28 }
  0xf3   :  { %3724 = vtanh.f32 %v572_v21 }
  0xf4   :  { %3726 = vtanh.f32 %v499_v19  ;;  %v4446_v19 = vpop.permute.xlu0 %262 }
  0xf5   :  { %3728 = vtanh.f32 %v573_v27  ;;  %vm264_vm5 = vcmp.eq.s32.totalorder %v4446_v19, 1  ;;  %v4462_v27 = vld [vmem:[#allocation3 + $0x94] ss:$60 sps:$4 sm:$0xff]  }
  0xf6   :  { %vm4452_vm6 = vmpackc.low %vm264_vm5, %vm264_vm5  ;;  %6909 = vst [vmem:[#allocation19_spill] sm:$0xff] %v4462_v27 }
  0xfc   :  { %v3723_v24 = vpop.eup %3722 }
  0xfd   :  { %v3725_v6 = vpop.eup %3724  ;;  %v577_v31 = vmul.f32 0.5, %v3723_v24 }
  0xfe   :  { %v578_v30 = vmul.f32 0.5, %v3725_v6  ;;  %v3727_v17 = vpop.eup %3726  ;;  %v4460_v6 = vld [vmem:[#allocation3 + $0x8c] ss:$60 sps:$4 sm:$0xff]  }
  0xff   :  { %v580_v26 = vadd.f32 0.5, %v577_v31  ;;  %v3729_v20 = vpop.eup %3728  ;;  %6908 = vst [vmem:[#allocation18_spill] sm:$0xff] %v4460_v6 }
 0x100   :  { %v581_v0 = vadd.f32 0.5, %v578_v30  ;;  %v579_v21 = vmul.f32 0.5, %v3729_v20  ;;  %v4478_v20 = vld [vmem:[#allocation3 + $0x104] ss:$60 sps:$4 sm:$0xff]  }
 0x101   :  { %v585_v60 = vmul.f32 %v3727_v17, %v580_v26  ;;  %v4458_v26 = vld [vmem:[#allocation3 + $0x18] ss:$60 sps:$4 sm:$0xff]   ;;  %v4472_v17 = vld [vmem:[#allocation3 + $0x88] ss:$60 sps:$4 sm:$0xff]   ;;  %6912 = vst [vmem:[#allocation22_spill] sm:$0xff] %v4478_v20 }
 0x102   :  { %v584_v23 = vmul.f32 0.0, %v581_v0  ;;  %v582_v51 = vadd.f32 0.5, %v579_v21  ;;  %6907 = vst [vmem:[#allocation17_spill] sm:$0xff] %v4458_v26  ;;  %6910 = vst [vmem:[#allocation20_spill] sm:$0xff] %v4472_v17  ;;  %v4480_v21 = vld [vmem:[#allocation3 + $0x10c] ss:$60 sps:$4 sm:$0xff]  }
 0x103   :  { %6913 = vst [vmem:[#allocation23_spill] sm:$0xff] %v4480_v21 }
 0x104   :  { %v4443_v18 = vadd.f32 %v585_v60, %v584_v23  ;;  %v4456_v23 = vld [vmem:[#allocation3 + $0x10] ss:$60 sps:$4 sm:$0xff]  }
 0x105   :  { %v4474_v60 = vld [vmem:[#allocation3 + $0x90] ss:$60 sps:$4 sm:$0xff]  }
 0x106   :  { %3730 = vtanh.f32 %v4443_v18  ;;  %6911 = vst [vmem:[#allocation21_spill] sm:$0xff] %v4474_v60  ;;  %v7030_v31 = vld [vmem:[#allocation18_spill] sm:$0xff] }
 0x110   :  { %v3731_v28 = vpop.eup %3730 }
 0x111   :  { %v588_v24 = vmul.f32 %v3731_v28, %v582_v51  ;;  %v6914_v51 = vmov 0   ;;  %v4486_v28 = vld [vmem:[#allocation3 + $0x100] ss:$60 sps:$4 sm:$0xff]  }
 0x112   :  { %6915 = vst [vmem:[#allocation24_spill] sm:$0xff] %v4486_v28 }
 0x113   :  { %v589_v0 = vpack.c.bf16 %v588_v24, %v588_v24  ;;  %v4488_v24 = vld [vmem:[#allocation3 + $0x108] ss:$60 sps:$4 sm:$0xff]  }
 0x114   :  { %6916 = vst [vmem:[#allocation25_spill] sm:$0xff] %v4488_v24 }
 0x115   :  { %v4466_v30 = vsel %vm4452_vm6, %v589_v0, 0  ;;  %v4492_v0 = vld [vmem:[#allocation3 + $0x17c] ss:$60 sps:$4 sm:$0xff]  }
 0x116   :  { %1266 = vmatmul.mubr.bf16.vlgmr.msra.gmra.mrb[16].mxu0 %v4466_v30  ;;  %1307 = vmatmul.mubr.bf16.vlgmr.msra.gmra.mrb[16].mxu1 %v4466_v30  ;;  %6917 = vst [vmem:[#allocation26_spill] sm:$0xff] %v4492_v0 }
 0x117   :  { %1316 = vmatpush1.bf16.msra.mxu0 %v4456_v23  ;;  %1357 = vmatpush1.bf16.msra.mxu1 %v4458_v26 }
 0x118   :  { %1317 = vmatprep.subr.bf16.mxu0 %v4460_v6  ;;  %1358 = vmatprep.subr.bf16.mxu1 %v4462_v27  ;;  %v4498_v27 = vld [vmem:[#allocation3 + $0x178] ss:$60 sps:$4 sm:$0xff]   ;;  %v4642_v6 = vpop.f32.mrb[4].mxu1 }
 0x119   :  { %1347 = vmatprep.mubr.bf16.mxu0 %v6914_v51  ;;  %1388 = vmatprep.mubr.bf16.mxu1 %v6914_v51  ;;  %6919 = vst [vmem:[#allocation28_spill] sm:$0xff] %v4498_v27  ;;  %6966 = vst [vmem:[#allocation75_spill] sm:$0xff] %v4642_v6 }
 0x11b   :  { %1318 = vmatpush1.bf16.msra.mxu0 %v4472_v17  ;;  %1359 = vmatpush1.bf16.msra.mxu1 %v4474_v60  ;;  %v4500_v17 = vld [vmem:[#allocation3 + $0x180] ss:$60 sps:$4 sm:$0xff]   ;;  %v4504_v60 = vld [vmem:[#allocation3 + $0x1f4] ss:$60 sps:$4 sm:$0xff]  }
 0x11c   :  { %1319 = vmatprep.subr.bf16.mxu0 %v4478_v20  ;;  %1360 = vmatprep.subr.bf16.mxu1 %v4480_v21  ;;  %6920 = vst [vmem:[#allocation29_spill] sm:$0xff] %v4500_v17  ;;  %6921 = vst [vmem:[#allocation30_spill] sm:$0xff] %v4504_v60  ;;  %v4506_v20 = vld [vmem:[#allocation3 + $0x1fc] ss:$60 sps:$4 sm:$0xff]   ;;  %v4510_v21 = vld [vmem:[#allocation3 + $0x1f0] ss:$60 sps:$4 sm:$0xff]  }
 0x11d   :  { %6922 = vst [vmem:[#allocation31_spill] sm:$0xff] %v4506_v20  ;;  %6923 = vst [vmem:[#allocation32_spill] sm:$0xff] %v4510_v21 }
 0x11f   :  { %1320 = vmatpush1.bf16.msra.mxu0 %v4486_v28  ;;  %1361 = vmatpush1.bf16.msra.mxu1 %v4488_v24  ;;  %v4512_v28 = vld [vmem:[#allocation3 + $0x1f8] ss:$60 sps:$4 sm:$0xff]   ;;  %v4516_v24 = vld [vmem:[#allocation3 + $0x26c] ss:$60 sps:$4 sm:$0xff]  }
 0x120   :  { %1321 = vmatprep.subr.bf16.mxu0 %v4492_v0  ;;  %1362 = vmatprep.subr.bf16.mxu1 %v4494_v29  ;;  %6924 = vst [vmem:[#allocation33_spill] sm:$0xff] %v4512_v28  ;;  %6925 = vst [vmem:[#allocation34_spill] sm:$0xff] %v4516_v24  ;;  %v4518_v0 = vld [vmem:[#allocation3 + $0x274] ss:$60 sps:$4 sm:$0xff]   ;;  %v4522_v29 = vld [vmem:[#allocation3 + $0x268] ss:$60 sps:$4 sm:$0xff]  }
 0x121   :  { %6926 = vst [vmem:[#allocation35_spill] sm:$0xff] %v4518_v0  ;;  %6927 = vst [vmem:[#allocation36_spill] sm:$0xff] %v4522_v29 }
 0x123   :  { %1322 = vmatpush1.bf16.msra.mxu0 %v4498_v27  ;;  %1363 = vmatpush1.bf16.msra.mxu1 %v4500_v17  ;;  %v4524_v27 = vld [vmem:[#allocation3 + $0x270] ss:$60 sps:$4 sm:$0xff]   ;;  %v4528_v17 = vld [vmem:[#allocation3 + $0x2e4] ss:$60 sps:$4 sm:$0xff]  }
 0x124   :  { %1323 = vmatprep.subr.bf16.mxu0 %v4504_v60  ;;  %1364 = vmatprep.subr.bf16.mxu1 %v4506_v20  ;;  %6928 = vst [vmem:[#allocation37_spill] sm:$0xff] %v4524_v27  ;;  %6929 = vst [vmem:[#allocation38_spill] sm:$0xff] %v4528_v17  ;;  %v4530_v60 = vld [vmem:[#allocation3 + $0x2ec] ss:$60 sps:$4 sm:$0xff]   ;;  %v4534_v20 = vld [vmem:[#allocation3 + $0x2e0] ss:$60 sps:$4 sm:$0xff]  }
 0x125   :  { %6930 = vst [vmem:[#allocation39_spill] sm:$0xff] %v4530_v60  ;;  %6931 = vst [vmem:[#allocation40_spill] sm:$0xff] %v4534_v20 }
 0x127   :  { %1324 = vmatpush1.bf16.msra.mxu0 %v4510_v21  ;;  %1365 = vmatpush1.bf16.msra.mxu1 %v4512_v28  ;;  %v4536_v21 = vld [vmem:[#allocation3 + $0x2e8] ss:$60 sps:$4 sm:$0xff]   ;;  %v4540_v28 = vld [vmem:[#allocation3 + $0x35c] ss:$60 sps:$4 sm:$0xff]  }
 0x128   :  { %1325 = vmatprep.subr.bf16.mxu0 %v4516_v24  ;;  %1366 = vmatprep.subr.bf16.mxu1 %v4518_v0  ;;  %6932 = vst [vmem:[#allocation41_spill] sm:$0xff] %v4536_v21  ;;  %6933 = vst [vmem:[#allocation42_spill] sm:$0xff] %v4540_v28  ;;  %v4542_v24 = vld [vmem:[#allocation3 + $0x364] ss:$60 sps:$4 sm:$0xff]   ;;  %v4546_v0 = vld [vmem:[#allocation3 + $0x358] ss:$60 sps:$4 sm:$0xff]  }
 0x129   :  { %6934 = vst [vmem:[#allocation43_spill] sm:$0xff] %v4542_v24  ;;  %6935 = vst [vmem:[#allocation44_spill] sm:$0xff] %v4546_v0 }
 0x12b   :  { %1326 = vmatpush1.bf16.msra.mxu0 %v4522_v29  ;;  %1367 = vmatpush1.bf16.msra.mxu1 %v4524_v27  ;;  %v4548_v29 = vld [vmem:[#allocation3 + $0x360] ss:$60 sps:$4 sm:$0xff]   ;;  %v4552_v27 = vld [vmem:[#allocation3 + $0x3d4] ss:$60 sps:$4 sm:$0xff]  }
 0x12c   :  { %1327 = vmatprep.subr.bf16.mxu0 %v4528_v17  ;;  %1368 = vmatprep.subr.bf16.mxu1 %v4530_v60  ;;  %6936 = vst [vmem:[#allocation45_spill] sm:$0xff] %v4548_v29  ;;  %6937 = vst [vmem:[#allocation46_spill] sm:$0xff] %v4552_v27  ;;  %v4554_v17 = vld [vmem:[#allocation3 + $0x3dc] ss:$60 sps:$4 sm:$0xff]   ;;  %v4558_v60 = vld [vmem:[#allocation3 + $0x3d0] ss:$60 sps:$4 sm:$0xff]  }
 0x12d   :  { %6938 = vst [vmem:[#allocation47_spill] sm:$0xff] %v4554_v17  ;;  %6939 = vst [vmem:[#allocation48_spill] sm:$0xff] %v4558_v60 }
 0x12f   :  { %1328 = vmatpush1.bf16.msra.mxu0 %v4534_v20  ;;  %1369 = vmatpush1.bf16.msra.mxu1 %v4536_v21  ;;  %v4560_v20 = vld [vmem:[#allocation3 + $0x3d8] ss:$60 sps:$4 sm:$0xff]   ;;  %v4564_v21 = vld [vmem:[#allocation3 + $0x44c] ss:$60 sps:$4 sm:$0xff]  }
 0x130   :  { %1329 = vmatprep.subr.bf16.mxu0 %v4540_v28  ;;  %1370 = vmatprep.subr.bf16.mxu1 %v4542_v24  ;;  %6940 = vst [vmem:[#allocation49_spill] sm:$0xff] %v4560_v20  ;;  %6941 = vst [vmem:[#allocation50_spill] sm:$0xff] %v4564_v21  ;;  %v4566_v28 = vld [vmem:[#allocation3 + $0x454] ss:$60 sps:$4 sm:$0xff]   ;;  %v4570_v24 = vld [vmem:[#allocation3 + $0x448] ss:$60 sps:$4 sm:$0xff]  }
 0x131   :  { %6942 = vst [vmem:[#allocation51_spill] sm:$0xff] %v4566_v28  ;;  %6943 = vst [vmem:[#allocation52_spill] sm:$0xff] %v4570_v24 }
 0x133   :  { %1330 = vmatpush1.bf16.msra.mxu0 %v4546_v0  ;;  %1371 = vmatpush1.bf16.msra.mxu1 %v4548_v29  ;;  %v4572_v0 = vld [vmem:[#allocation3 + $0x450] ss:$60 sps:$4 sm:$0xff]   ;;  %v4576_v29 = vld [vmem:[#allocation3 + $0x4c4] ss:$60 sps:$4 sm:$0xff]  }
 0x134   :  { %1331 = vmatprep.subr.bf16.mxu0 %v4552_v27  ;;  %1372 = vmatprep.subr.bf16.mxu1 %v4554_v17  ;;  %6944 = vst [vmem:[#allocation53_spill] sm:$0xff] %v4572_v0  ;;  %6945 = vst [vmem:[#allocation54_spill] sm:$0xff] %v4576_v29  ;;  %v4578_v27 = vld [vmem:[#allocation3 + $0x4cc] ss:$60 sps:$4 sm:$0xff]   ;;  %v4582_v17 = vld [vmem:[#allocation3 + $0x4c0] ss:$60 sps:$4 sm:$0xff]  }
 0x135   :  { %6946 = vst [vmem:[#allocation55_spill] sm:$0xff] %v4578_v27  ;;  %6947 = vst [vmem:[#allocation56_spill] sm:$0xff] %v4582_v17 }
 0x137   :  { %1332 = vmatpush1.bf16.msra.mxu0 %v4558_v60  ;;  %1373 = vmatpush1.bf16.msra.mxu1 %v4560_v20  ;;  %v4584_v60 = vld [vmem:[#allocation3 + $0x4c8] ss:$60 sps:$4 sm:$0xff]   ;;  %v4588_v20 = vld [vmem:[#allocation3 + $0x53c] ss:$60 sps:$4 sm:$0xff]  }
 0x138   :  { %1333 = vmatprep.subr.bf16.mxu0 %v4564_v21  ;;  %1374 = vmatprep.subr.bf16.mxu1 %v4566_v28  ;;  %6948 = vst [vmem:[#allocation57_spill] sm:$0xff] %v4584_v60  ;;  %6949 = vst [vmem:[#allocation58_spill] sm:$0xff] %v4588_v20  ;;  %v4590_v21 = vld [vmem:[#allocation3 + $0x544] ss:$60 sps:$4 sm:$0xff]   ;;  %v4594_v28 = vld [vmem:[#allocation3 + $0x538] ss:$60 sps:$4 sm:$0xff]  }
 0x139   :  { %6950 = vst [vmem:[#allocation59_spill] sm:$0xff] %v4590_v21  ;;  %6951 = vst [vmem:[#allocation60_spill] sm:$0xff] %v4594_v28 }
 0x13b   :  { %1334 = vmatpush1.bf16.msra.mxu0 %v4570_v24  ;;  %1375 = vmatpush1.bf16.msra.mxu1 %v4572_v0  ;;  %v4596_v24 = vld [vmem:[#allocation3 + $0x540] ss:$60 sps:$4 sm:$0xff]   ;;  %v4600_v0 = vld [vmem:[#allocation3 + $0x5b4] ss:$60 sps:$4 sm:$0xff]  }
 0x13c   :  { %1335 = vmatprep.subr.bf16.mxu0 %v4576_v29  ;;  %1376 = vmatprep.subr.bf16.mxu1 %v4578_v27  ;;  %6952 = vst [vmem:[#allocation61_spill] sm:$0xff] %v4596_v24  ;;  %6953 = vst [vmem:[#allocation62_spill] sm:$0xff] %v4600_v0  ;;  %v4602_v29 = vld [vmem:[#allocation3 + $0x5bc] ss:$60 sps:$4 sm:$0xff]   ;;  %v4606_v27 = vld [vmem:[#allocation3 + $0x5b0] ss:$60 sps:$4 sm:$0xff]  }
 0x13d   :  { %6954 = vst [vmem:[#allocation63_spill] sm:$0xff] %v4602_v29  ;;  %6955 = vst [vmem:[#allocation64_spill] sm:$0xff] %v4606_v27 }
 0x13f   :  { %1336 = vmatpush1.bf16.msra.mxu0 %v4582_v17  ;;  %1377 = vmatpush1.bf16.msra.mxu1 %v4584_v60  ;;  %v4608_v17 = vld [vmem:[#allocation3 + $0x5b8] ss:$60 sps:$4 sm:$0xff]   ;;  %v4612_v60 = vld [vmem:[#allocation3 + $0x62c] ss:$60 sps:$4 sm:$0xff]  }
 0x140   :  { %1337 = vmatprep.subr.bf16.mxu0 %v4588_v20  ;;  %1378 = vmatprep.subr.bf16.mxu1 %v4590_v21  ;;  %6956 = vst [vmem:[#allocation65_spill] sm:$0xff] %v4608_v17  ;;  %6957 = vst [vmem:[#allocation66_spill] sm:$0xff] %v4612_v60  ;;  %v4614_v20 = vld [vmem:[#allocation3 + $0x634] ss:$60 sps:$4 sm:$0xff]   ;;  %v4618_v21 = vld [vmem:[#allocation3 + $0x628] ss:$60 sps:$4 sm:$0xff]  }
 0x141   :  { %6958 = vst [vmem:[#allocation67_spill] sm:$0xff] %v4614_v20  ;;  %6959 = vst [vmem:[#allocation68_spill] sm:$0xff] %v4618_v21 }
 0x143   :  { %1338 = vmatpush1.bf16.msra.mxu0 %v4594_v28  ;;  %1379 = vmatpush1.bf16.msra.mxu1 %v4596_v24  ;;  %v4620_v28 = vld [vmem:[#allocation3 + $0x630] ss:$60 sps:$4 sm:$0xff]   ;;  %v4624_v24 = vld [vmem:[#allocation3 + $0x6a4] ss:$60 sps:$4 sm:$0xff]  }
 0x144   :  { %1339 = vmatprep.subr.bf16.mxu0 %v4600_v0  ;;  %1380 = vmatprep.subr.bf16.mxu1 %v4602_v29  ;;  %6960 = vst [vmem:[#allocation69_spill] sm:$0xff] %v4620_v28  ;;  %6961 = vst [vmem:[#allocation70_spill] sm:$0xff] %v4624_v24  ;;  %v4626_v0 = vld [vmem:[#allocation3 + $0x6ac] ss:$60 sps:$4 sm:$0xff]   ;;  %v4630_v29 = vld [vmem:[#allocation3 + $0x6a0] ss:$60 sps:$4 sm:$0xff]  }
 0x145   :  { %6962 = vst [vmem:[#allocation71_spill] sm:$0xff] %v4626_v0  ;;  %6963 = vst [vmem:[#allocation72_spill] sm:$0xff] %v4630_v29 }
 0x147   :  { %1340 = vmatpush1.bf16.msra.mxu0 %v4606_v27  ;;  %1381 = vmatpush1.bf16.msra.mxu1 %v4608_v17  ;;  %v4632_v27 = vld [vmem:[#allocation3 + $0x6a8] ss:$60 sps:$4 sm:$0xff]   ;;  %v4636_v17 = vld [vmem:[#allocation3 + $0x71c] ss:$60 sps:$4 sm:$0xff]  }
 0x148   :  { %1341 = vmatprep.subr.bf16.mxu0 %v4612_v60  ;;  %1382 = vmatprep.subr.bf16.mxu1 %v4614_v20  ;;  %6964 = vst [vmem:[#allocation73_spill] sm:$0xff] %v4632_v27  ;;  %v4638_v60 = vld [vmem:[#allocation3 + $0x724] ss:$60 sps:$4 sm:$0xff]   ;;  %v4640_v20 = vpop.f32.mrb[4].mxu0 }
 0x149   :  { %6965 = vst [vmem:[#allocation74_spill] sm:$0xff] %v4640_v20  ;;  %v4650_v26 = vpop.f32.mrb[5].mxu0 }
 0x14a   :  { %6969 = vst [vmem:[#allocation78_spill] sm:$0xff] %v4650_v26  ;;  %v4682_v26 = vld [vmem:[#allocation3] ss:$60 sps:$4 sm:$0xff]  }
 0x14b   :  { %1342 = vmatpush1.bf16.msra.mxu0 %v4618_v21  ;;  %1383 = vmatpush1.bf16.msra.mxu1 %v4620_v28  ;;  %v4646_v28 = vld [vmem:[#allocation3 + $0x718] ss:$60 sps:$4 sm:$0xff]   ;;  %v4648_v21 = vld [vmem:[#allocation3 + $0x720] ss:$60 sps:$4 sm:$0xff]   ;;  %6981 = vst [vmem:[#allocation90_spill] sm:$0xff] %v4682_v26 }
 0x14c   :  { %1343 = vmatprep.subr.bf16.mxu0 %v4624_v24  ;;  %1384 = vmatprep.subr.bf16.mxu1 %v4626_v0  ;;  %6967 = vst [vmem:[#allocation76_spill] sm:$0xff] %v4646_v28  ;;  %6968 = vst [vmem:[#allocation77_spill] sm:$0xff] %v4648_v21  ;;  %v4652_v24 = vpop.f32.mrb[5].mxu1  ;;  %v4656_v0 = vpop.f32.mrb[6].mxu0 }
 0x14d   :  { %6970 = vst [vmem:[#allocation79_spill] sm:$0xff] %v4652_v24  ;;  %6971 = vst [vmem:[#allocation80_spill] sm:$0xff] %v4656_v0  ;;  %v4658_v20 = vpop.f32.mrb[6].mxu1  ;;  %v4660_v6 = vpop.f32.mrb[7].mxu0  ;;  %v4669_v24 = vld [vmem:[#allocation3 + $0xc] ss:$60 sps:$4 sm:$0xff]  }
 0x14e   :  { %6972 = vst [vmem:[#allocation81_spill] sm:$0xff] %v4658_v20  ;;  %6973 = vst [vmem:[#allocation82_spill] sm:$0xff] %v4660_v6  ;;  %v4674_v20 = vpop.f32.mrb[8].mxu0 }
 0x14f   :  { %1344 = vmatpush1.bf16.msra.mxu0 %v4630_v29  ;;  %1385 = vmatpush1.bf16.msra.mxu1 %v4632_v27  ;;  %v4662_v29 = vpop.f32.mrb[7].mxu1  ;;  %v4666_v27 = vld [vmem:[#allocation3 + $0x4] ss:$60 sps:$4 sm:$0xff]   ;;  %6976 = vst [vmem:[#allocation85_spill] sm:$0xff] %v4669_v24  ;;  %6977 = vst [vmem:[#allocation86_spill] sm:$0xff] %v4674_v20 }
 0x150   :  { %1345 = vmatprep.subr.bf16.mxu0 %v4636_v17  ;;  %1386 = vmatprep.subr.bf16.mxu1 %v4638_v60  ;;  %6974 = vst [vmem:[#allocation83_spill] sm:$0xff] %v4662_v29  ;;  %6975 = vst [vmem:[#allocation84_spill] sm:$0xff] %v4666_v27  ;;  %v4676_v6 = vpop.f32.mrb[8].mxu1  ;;  %v4678_v29 = vpop.f32.mrb[9].mxu0  ;;  %v4702_v20 = vld [vmem:[#allocation3 + $0x78] ss:$60 sps:$4 sm:$0xff]  }
 0x151   :  { %6978 = vst [vmem:[#allocation87_spill] sm:$0xff] %v4676_v6  ;;  %6979 = vst [vmem:[#allocation88_spill] sm:$0xff] %v4678_v29  ;;  %v4680_v0 = vpop.f32.mrb[9].mxu1  ;;  %v4695_v6 = vld [vmem:[#allocation3 + $0x84] ss:$60 sps:$4 sm:$0xff]  }
 0x152   :  { %6980 = vst [vmem:[#allocation89_spill] sm:$0xff] %v4680_v0  ;;  %6986 = vst [vmem:[#allocation95_spill] sm:$0xff] %v4695_v6 }
 0x153   :  { %1346 = vmatpush1.bf16.msra.mxu0 %v4646_v28  ;;  %1387 = vmatpush1.bf16.msra.mxu1 %v4648_v21  ;;  %v4690_v21 = vpop.f32.mrb[10].mxu1  ;;  %v4692_v28 = vld [vmem:[#allocation3 + $0x7c] ss:$60 sps:$4 sm:$0xff]   ;;  %6989 = vst [vmem:[#allocation98_spill] sm:$0xff] %v4702_v20 }
 0x154   :  { %1452 = vmatprep.subr.bf16.mxu0 %v4666_v27  ;;  %1493 = vmatprep.subr.bf16.mxu1 %v4669_v24  ;;  %v4685_v27 = vld [vmem:[#allocation3 + $0x8] ss:$60 sps:$4 sm:$0xff]   ;;  %v4688_v24 = vpop.f32.mrb[10].mxu0  ;;  %6984 = vst [vmem:[#allocation93_spill] sm:$0xff] %v4690_v21  ;;  %6985 = vst [vmem:[#allocation94_spill] sm:$0xff] %v4692_v28  ;;  %v4700_v29 = vpop.f32.mrb[11].mxu1 }
 0x155   :  { %6982 = vst [vmem:[#allocation91_spill] sm:$0xff] %v4685_v27  ;;  %6983 = vst [vmem:[#allocation92_spill] sm:$0xff] %v4688_v24  ;;  %v4698_v0 = vpop.f32.mrb[11].mxu0  ;;  %v4708_v21 = vld [vmem:[#allocation3 + $0xf4] ss:$60 sps:$4 sm:$0xff]  }
 0x156   :  { %1348 = vmatmul.mubr.bf16.vlgmr.msra.gmra.mrb[20].mxu0 %v4466_v30  ;;  %1389 = vmatmul.mubr.bf16.vlgmr.msra.gmra.mrb[20].mxu1 %v4466_v30  ;;  %6987 = vst [vmem:[#allocation96_spill] sm:$0xff] %v4698_v0  ;;  %6988 = vst [vmem:[#allocation97_spill] sm:$0xff] %v4700_v29  ;;  %v4711_v24 = vld [vmem:[#allocation3 + $0xfc] ss:$60 sps:$4 sm:$0xff]   ;;  %v4716_v0 = vpop.f32.mrb[12].mxu1 }
 0x157   :  { %1453 = vmatpush1.bf16.msra.mxu0 %v4682_v26  ;;  %1494 = vmatpush1.bf16.msra.mxu1 %v4685_v27  ;;  %v4705_v27 = vld [vmem:[#allocation3 + $0x80] ss:$60 sps:$4 sm:$0xff]   ;;  %6991 = vst [vmem:[#allocation100_spill] sm:$0xff] %v4708_v21  ;;  %6992 = vst [vmem:[#allocation101_spill] sm:$0xff] %v4711_v24 }
 0x158   :  { %1454 = vmatprep.subr.bf16.mxu0 %v4692_v28  ;;  %1495 = vmatprep.subr.bf16.mxu1 %v4695_v6  ;;  %6990 = vst [vmem:[#allocation99_spill] sm:$0xff] %v4705_v27  ;;  %v4714_v6 = vpop.f32.mrb[12].mxu0  ;;  %6994 = vst [vmem:[#allocation103_spill] sm:$0xff] %v4716_v0  ;;  %v4720_v28 = vpop.f32.mrb[13].mxu1  ;;  %v4735_v0 = vld [vmem:[#allocation3 + $0x174] ss:$60 sps:$4 sm:$0xff]  }
 0x159   :  { %6993 = vst [vmem:[#allocation102_spill] sm:$0xff] %v4714_v6  ;;  %v4718_v29 = vpop.f32.mrb[13].mxu0  ;;  %6996 = vst [vmem:[#allocation105_spill] sm:$0xff] %v4720_v28  ;;  %v4730_v26 = vpop.f32.mrb[14].mxu1  ;;  %v4742_v6 = vld [vmem:[#allocation3 + $0x168] ss:$60 sps:$4 sm:$0xff]  }
 0x15a   :  { %6995 = vst [vmem:[#allocation104_spill] sm:$0xff] %v4718_v29  ;;  %7000 = vst [vmem:[#allocation109_spill] sm:$0xff] %v4730_v26  ;;  %v4740_v29 = vpop.f32.mrb[15].mxu1  ;;  %v4748_v26 = vld [vmem:[#allocation3 + $0x1e4] ss:$60 sps:$4 sm:$0xff]  }
 0x15b   :  { %1455 = vmatpush1.bf16.msra.mxu0 %v4702_v20  ;;  %1496 = vmatpush1.bf16.msra.mxu1 %v4705_v27  ;;  %v4722_v20 = vld [vmem:[#allocation3 + $0xf0] ss:$60 sps:$4 sm:$0xff]   ;;  %v4725_v27 = vld [vmem:[#allocation3 + $0xf8] ss:$60 sps:$4 sm:$0xff]   ;;  %7002 = vst [vmem:[#allocation111_spill] sm:$0xff] %v4735_v0  ;;  %7004 = vst [vmem:[#allocation113_spill] sm:$0xff] %v4740_v29 }
 0x15c   :  { %1456 = vmatprep.subr.bf16.mxu0 %v4708_v21  ;;  %1497 = vmatprep.subr.bf16.mxu1 %v4711_v24  ;;  %6997 = vst [vmem:[#allocation106_spill] sm:$0xff] %v4722_v20  ;;  %6998 = vst [vmem:[#allocation107_spill] sm:$0xff] %v4725_v27  ;;  %v4728_v21 = vpop.f32.mrb[14].mxu0  ;;  %v4732_v24 = vld [vmem:[#allocation3 + $0x16c] ss:$60 sps:$4 sm:$0xff]  }
 0x15d   :  { %6999 = vst [vmem:[#allocation108_spill] sm:$0xff] %v4728_v21  ;;  %7001 = vst [vmem:[#allocation110_spill] sm:$0xff] %v4732_v24  ;;  %v4738_v28 = vpop.f32.mrb[15].mxu0  ;;  %v4751_v21 = vld [vmem:[#allocation3 + $0x1ec] ss:$60 sps:$4 sm:$0xff]  }
 0x15e   :  { %7003 = vst [vmem:[#allocation112_spill] sm:$0xff] %v4738_v28  ;;  %7005 = vst [vmem:[#allocation114_spill] sm:$0xff] %v4742_v6  ;;  %v4757_v29 = vld [vmem:[#allocation3 + $0x1e8] ss:$60 sps:$4 sm:$0xff]   ;;  %v4760_v28 = vld [vmem:[#allocation3 + $0x25c] ss:$60 sps:$4 sm:$0xff]  }
 0x15f   :  { %1457 = vmatpush1.bf16.msra.mxu0 %v4722_v20  ;;  %1498 = vmatpush1.bf16.msra.mxu1 %v4725_v27  ;;  %v4745_v27 = vld [vmem:[#allocation3 + $0x170] ss:$60 sps:$4 sm:$0xff]   ;;  %7007 = vst [vmem:[#allocation116_spill] sm:$0xff] %v4748_v26  ;;  %7008 = vst [vmem:[#allocation117_spill] sm:$0xff] %v4751_v21 }
 0x160   :  { %1458 = vmatprep.subr.bf16.mxu0 %v4732_v24  ;;  %1499 = vmatprep.subr.bf16.mxu1 %v4735_v0  ;;  %7006 = vst [vmem:[#allocation115_spill] sm:$0xff] %v4745_v27  ;;  %v4754_v0 = vld [vmem:[#allocation3 + $0x1e0] ss:$60 sps:$4 sm:$0xff]   ;;  %7010 = vst [vmem:[#allocation119_spill] sm:$0xff] %v4757_v29 }
 0x161   :  { %7009 = vst [vmem:[#allocation118_spill] sm:$0xff] %v4754_v0  ;;  %7011 = vst [vmem:[#allocation120_spill] sm:$0xff] %v4760_v28 }
 0x163   :  { %1459 = vmatpush1.bf16.msra.mxu0 %v4742_v6  ;;  %1500 = vmatpush1.bf16.msra.mxu1 %v4745_v27 }
 0x164   :  { %1460 = vmatprep.subr.bf16.mxu0 %v4748_v26  ;;  %1501 = vmatprep.subr.bf16.mxu1 %v4751_v21 }
 0x167   :  { %1461 = vmatpush1.bf16.msra.mxu0 %v4754_v0  ;;  %1502 = vmatpush1.bf16.msra.mxu1 %v4757_v29 }
 0x168   :  { %1462 = vmatprep.subr.bf16.mxu0 %v4760_v28  ;;  %1503 = vmatprep.subr.bf16.mxu1 %v4250_v32  ;;  %v7012_v32 = vld [vmem:[#allocation10_spill] sm:$0xff] }
 0x16b   :  { %1463 = vmatpush1.bf16.msra.mxu0 %v4252_v33  ;;  %1504 = vmatpush1.bf16.msra.mxu1 %v4254_v34  ;;  %v7013_v33 = vld [vmem:[#allocation13_spill] sm:$0xff] }
 0x16c   :  { %1464 = vmatprep.subr.bf16.mxu0 %v4259_v35  ;;  %1505 = vmatprep.subr.bf16.mxu1 %v4261_v36  ;;  %v428_v34 = vadd.f32 %v7013_v33, %v7012_v32  ;;  %v7014_v35 = vld [vmem:[#allocation15_spill] sm:$0xff] }
 0x16d   :  { %v501_v36 = vadd.f32 %v7014_v35, %v4438_v25 }
 0x16f   :  { %1465 = vmatpush1.bf16.msra.mxu0 %v4263_v37  ;;  %1506 = vmatpush1.bf16.msra.mxu1 %v4265_v38  ;;  %v7015_v37 = vld [vmem:[#allocation11_spill] sm:$0xff]  ;;  %v7016_v38 = vld [vmem:[#allocation14_spill] sm:$0xff] }
 0x170   :  { %1466 = vmatprep.subr.bf16.mxu0 %v4271_v39  ;;  %1507 = vmatprep.subr.bf16.mxu1 %v4273_v40  ;;  %v430_v39 = vadd.f32 %v7016_v38, %v7015_v37  ;;  %v7017_v40 = vld [vmem:[#allocation12_spill] sm:$0xff]  ;;  %v7018_v38 = vld [vmem:[#allocation9_spill] sm:$0xff] }
 0x173   :  { %1467 = vmatpush1.bf16.msra.mxu0 %v4275_v41  ;;  %1508 = vmatpush1.bf16.msra.mxu1 %v4277_v42  ;;  %v503_v41 = vadd.f32 %v4440_v22, %v7017_v40 }
 0x174   :  { %1468 = vmatprep.subr.bf16.mxu0 %v4283_v43  ;;  %1509 = vmatprep.subr.bf16.mxu1 %v4285_v44 }
 0x177   :  { %1469 = vmatpush1.bf16.msra.mxu0 %v4287_v45  ;;  %1510 = vmatpush1.bf16.msra.mxu1 %v4289_v46 }
 0x178   :  { %1470 = vmatprep.subr.bf16.mxu0 %v4295_v47  ;;  %1511 = vmatprep.subr.bf16.mxu1 %v4297_v48 }
 0x17b   :  { %1471 = vmatpush1.bf16.msra.mxu0 %v4299_v49  ;;  %1512 = vmatpush1.bf16.msra.mxu1 %v4301_v50 }
 0x17c   :  { %1472 = vmatprep.subr.bf16.mxu0 %v4311_v52  ;;  %1513 = vmatprep.subr.bf16.mxu1 %v4313_v53 }
 0x17f   :  { %1473 = vmatpush1.bf16.msra.mxu0 %v4316_v54  ;;  %1514 = vmatpush1.bf16.msra.mxu1 %v4318_v55 }
 0x180   :  { %1474 = vmatprep.subr.bf16.mxu0 %v4326_v56  ;;  %1515 = vmatprep.subr.bf16.mxu1 %v4328_v57 }
 0x183   :  { %1475 = vmatpush1.bf16.msra.mxu0 %v4330_v58  ;;  %1516 = vmatpush1.bf16.msra.mxu1 %v4332_v59 }
 0x184   :  { %1476 = vmatprep.subr.bf16.mxu0 %v4342_v61  ;;  %1517 = vmatprep.subr.bf16.mxu1 %v4344_v62 }
 0x187   :  { %1477 = vmatpush1.bf16.msra.mxu0 %v4347_v63  ;;  %1518 = vmatpush1.bf16.msra.mxu1 %v4349_v1 }
 0x188   :  { %1478 = vmatprep.subr.bf16.mxu0 %v4357_v2  ;;  %1519 = vmatprep.subr.bf16.mxu1 %v4359_v3 }
 0x18b   :  { %1479 = vmatpush1.bf16.msra.mxu0 %v4361_v4  ;;  %1520 = vmatpush1.bf16.msra.mxu1 %v4363_v5  ;;  %v592_v4 = vsel %vm264_vm5, %v4443_v18, 0.0  ;;  %v3899_v18 = vld [vmem:[%s6466_s1] sm:$0xff] }
 0x18c   :  { %1480 = vmatprep.subr.bf16.mxu0 %v4373_v7  ;;  %1521 = vmatprep.subr.bf16.mxu1 %v4375_v8  ;;  %v4819_v7 = vpop.permute.xlu0 %268  ;;  %vm271_vm8 = vcmp.gt.s32.totalorder %v3899_v18, 2  ;;  %vm277_vm9 = vcmp.gt.s32.totalorder %v3899_v18, 3  ;;  %vm289_vm10 = vcmp.gt.s32.totalorder %v3899_v18, 5  ;;  %vm301_vm11 = vcmp.gt.s32.totalorder %v3899_v18, 7 }
 0x18d   :  { %vm270_vm7 = vcmp.eq.s32.totalorder %v4819_v7, 1  ;;  %v272_v22 = vsel %vm271_vm8, 1, %v6914_v51  ;;  %v278_v33 = vsel %vm277_vm9, 1, %v6914_v51  ;;  %v302_v35 = vsel %vm301_vm11, 1, %v6914_v51 }
 0x18e   :  { %274 = vperm.xlu1 %3487, %v272_v22   ;;  %vm4862_vm12 = vmpackc.low %vm270_vm7, %vm270_vm7  ;;  %vm4188_vm9 = vmmov 0  }
 0x18f   :  { %1481 = vmatpush1.bf16.msra.mxu0 %v4378_v9  ;;  %1522 = vmatpush1.bf16.msra.mxu1 %v4380_v10 }
 0x190   :  { %1482 = vmatprep.subr.bf16.mxu0 %v4388_v11  ;;  %1523 = vmatprep.subr.bf16.mxu1 %v4390_v12 }
 0x192   :  { %280 = vperm.xlu1 %3487, %v278_v33  }
 0x193   :  { %1483 = vmatpush1.bf16.msra.mxu0 %v4392_v13  ;;  %1524 = vmatpush1.bf16.msra.mxu1 %v4394_v14 }
 0x194   :  { %1534 = vmatprep.subr.bf16.mxu0 %v4400_v15  ;;  %1575 = vmatprep.subr.bf16.mxu1 %v4402_v16 }
 0x1e9   :  { %v1267_v42 = vpop.f32.mrb[16].mxu0  ;;  %v1308_v43 = vpop.f32.mrb[16].mxu1 }
 0x1ea   :  { %v1426_v44 = vadd.f32 %v1267_v42, %v428_v34  ;;  %v1428_v45 = vadd.f32 %v1308_v43, %v501_v36  ;;  %v1269_v46 = vpop.f32.mrb[17].mxu0  ;;  %v1310_v47 = vpop.f32.mrb[17].mxu1  ;;  %v290_v34 = vsel %vm289_vm10, 1, %v6914_v51  ;;  %v233_v36 = vld [vmem:[%s6469_s4 + $0x4] sm:$0xf]  ;;  %v7021_v42 = vsub.s32 1, %v7018_v38 }
 0x1eb   :  { %v1427_v48 = vadd.f32 %v1269_v46, %v430_v39  ;;  %v1429_v49 = vadd.f32 %v1310_v47, %v503_v41  ;;  %v1271_v50 = vpop.f32.mrb[18].mxu0  ;;  %v1312_v52 = vpop.f32.mrb[18].mxu1  ;;  %292 = vperm.xlu1 %3487, %v290_v34   ;;  %v7019_v39 = vsub.s32 0, %v7018_v38  ;;  %v7023_v51 = vsub.s32 3, %v7018_v38 }
 0x1ec   :  { %v1430_v53 = vmul.f32 0.5, %v1426_v44  ;;  %v1272_v54 = vpop.f32.mrb[19].mxu0  ;;  %v1313_v55 = vpop.f32.mrb[19].mxu1  ;;  %v1432_v57 = vmul.f32 0.5, %v1428_v45  ;;  %v4842_v43 = vrot.slane %v233_v36, %v7021_v42  ;;  %vm3203_vm10 = vcmask 254976  }
 0x1ed   :  { %v1431_v56 = vmul.f32 0.5, %v1427_v48  ;;  %v4838_v41 = vrot.slane %v233_v36, %v7019_v39  ;;  %v4847_v48 = vrot.slane %v233_v36, %v7023_v51  ;;  %v7035_v51 = vld [vmem:[#allocation23_spill] sm:$0xff] }
 0x1ee   :  { %3732 = vtanh.f32 %v1430_v53  ;;  %7022 = vst [vmem:[#allocation15_spill] sm:$0xff] %v4842_v43  ;;  %v5149_v39 = vld [vmem:[#allocation3 + $0x18] ss:$60 sps:$4 sm:$0xff]  }
 0x1ef   :  { %3734 = vtanh.f32 %v1431_v56  ;;  %304 = vperm.xlu1 %3487, %v302_v35   ;;  %7020 = vst [vmem:[#allocation13_spill] sm:$0xff] %v4838_v41  ;;  %7024 = vst [vmem:[#allocation14_spill] sm:$0xff] %v4847_v48 }
 0x1f0   :  { %3736 = vtanh.f32 %v1429_v49 }
 0x1f1   :  { %3738 = vtanh.f32 %v1432_v57 }
 0x1f8   :  { %v3733_v58 = vpop.eup %3732 }
 0x1f9   :  { %v1436_v59 = vmul.f32 0.5, %v3733_v58  ;;  %v3735_v61 = vpop.eup %3734 }
 0x1fa   :  { %v1437_v63 = vmul.f32 0.5, %v3735_v61  ;;  %v3737_v1 = vpop.eup %3736 }
 0x1fb   :  { %v1439_v62 = vadd.f32 0.5, %v1436_v59  ;;  %v3739_v10 = vpop.eup %3738  ;;  %v7025_v59 = vsub.s32 2, %v7018_v38 }
 0x1fc   :  { %v1440_v2 = vadd.f32 0.5, %v1437_v63  ;;  %v1438_v11 = vmul.f32 0.5, %v3739_v10 }
 0x1fd   :  { %v1444_v3 = vmul.f32 %v3737_v1, %v1439_v62  ;;  %v4853_v61 = vrot.slane %v233_v36, %v7025_v59  ;;  %v7046_v59 = vld [vmem:[#allocation34_spill] sm:$0xff] }
 0x1fe   :  { %v1443_v5 = vmul.f32 %v1440_v2, %v592_v4  ;;  %v1441_v12 = vadd.f32 0.5, %v1438_v11 }
 0x1ff   :  { %7026 = vst [vmem:[#allocation9_spill] sm:$0xff] %v4853_v61 }
 0x200   :  { %v1445_v8 = vadd.f32 %v1444_v3, %v1443_v5 }
 0x202   :  { %3740 = vtanh.f32 %v1445_v8  ;;  %v4824_v9 = vsel %vm270_vm7, %v1445_v8, %v592_v4 }
 0x20c   :  { %v3741_v13 = vpop.eup %3740 }
 0x20d   :  { %v1447_v14 = vmul.f32 %v3741_v13, %v1441_v12 }
 0x20f   :  { %v1448_v36 = vpack.c.bf16 %v1447_v14, %v1447_v14 }
 0x211   :  { %v4875_v14 = vsel %vm4862_vm12, %v1448_v36, %v4466_v30  ;;  %v7033_v30 = vld [vmem:[#allocation21_spill] sm:$0xff]  ;;  %v7063_v36 = vld [vmem:[#allocation51_spill] sm:$0xff] }
 0x229   :  { %v1349_v44 = vpop.f32.mrb[20].mxu0  ;;  %v1390_v45 = vpop.f32.mrb[20].mxu1 }
 0x22a   :  { %v1397_v46 = vadd.f32 %v1349_v44, %v4838_v41  ;;  %v1351_v47 = vpop.f32.mrb[21].mxu0  ;;  %v1392_v49 = vpop.f32.mrb[21].mxu1  ;;  %v1399_v62 = vadd.f32 %v1390_v45, %v4853_v61  ;;  %v7029_v44 = vld [vmem:[#allocation17_spill] sm:$0xff]  ;;  %v7031_v45 = vld [vmem:[#allocation19_spill] sm:$0xff] }
 0x22b   :  { %v1398_v50 = vadd.f32 %v1351_v47, %v4842_v43  ;;  %v1353_v52 = vpop.f32.mrb[22].mxu0  ;;  %v1394_v53 = vpop.f32.mrb[22].mxu1  ;;  %v1400_v58 = vadd.f32 %v1392_v49, %v4847_v48  ;;  %v7034_v47 = vld [vmem:[#allocation22_spill] sm:$0xff]  ;;  %v7036_v49 = vld [vmem:[#allocation24_spill] sm:$0xff] }
 0x22c   :  { %v1401_v54 = vmul.f32 0.5, %v1397_v46  ;;  %v1354_v55 = vpop.f32.mrb[23].mxu0  ;;  %v1395_v56 = vpop.f32.mrb[23].mxu1  ;;  %v1403_v63 = vmul.f32 0.5, %v1399_v62  ;;  %v7032_v46 = vld [vmem:[#allocation20_spill] sm:$0xff]  ;;  %v7039_v52 = vld [vmem:[#allocation27_spill] sm:$0xff] }
 0x22d   :  { %v1402_v57 = vmul.f32 0.5, %v1398_v50  ;;  %v7038_v50 = vld [vmem:[#allocation26_spill] sm:$0xff]  ;;  %v7040_v53 = vld [vmem:[#allocation28_spill] sm:$0xff]  ;;  %v7043_v56 = vld [vmem:[#allocation31_spill] sm:$0xff] }
 0x22e   :  { %3742 = vtanh.f32 %v1401_v54  ;;  %v7041_v54 = vld [vmem:[#allocation29_spill] sm:$0xff]  ;;  %v7042_v55 = vld [vmem:[#allocation30_spill] sm:$0xff]  ;;  %v7047_v62 = vld [vmem:[#allocation35_spill] sm:$0xff] }
 0x22f   :  { %3744 = vtanh.f32 %v1402_v57  ;;  %v7044_v57 = vld [vmem:[#allocation32_spill] sm:$0xff] }
 0x230   :  { %3746 = vtanh.f32 %v1400_v58  ;;  %v7045_v58 = vld [vmem:[#allocation33_spill] sm:$0xff] }
 0x231   :  { %3748 = vtanh.f32 %v1403_v63  ;;  %v7048_v63 = vld [vmem:[#allocation36_spill] sm:$0xff] }
 0x238   :  { %v3743_v1 = vpop.eup %3742 }
 0x239   :  { %v1407_v2 = vmul.f32 0.5, %v3743_v1  ;;  %v3745_v3 = vpop.eup %3744  ;;  %v7049_v1 = vld [vmem:[#allocation37_spill] sm:$0xff] }
 0x23a   :  { %v1408_v5 = vmul.f32 0.5, %v3745_v3  ;;  %v3747_v8 = vpop.eup %3746  ;;  %v7051_v3 = vld [vmem:[#allocation39_spill] sm:$0xff] }
 0x23b   :  { %v1410_v4 = vadd.f32 0.5, %v1407_v2  ;;  %v3749_v18 = vpop.eup %3748  ;;  %v7050_v2 = vld [vmem:[#allocation38_spill] sm:$0xff] }
 0x23c   :  { %v1411_v10 = vadd.f32 0.5, %v1408_v5  ;;  %v1409_v22 = vmul.f32 0.5, %v3749_v18  ;;  %v7053_v5 = vld [vmem:[#allocation41_spill] sm:$0xff]  ;;  %v7058_v18 = vld [vmem:[#allocation46_spill] sm:$0xff] }
 0x23d   :  { %v1415_v11 = vmul.f32 %v3747_v8, %v1410_v4  ;;  %v7052_v4 = vld [vmem:[#allocation40_spill] sm:$0xff]  ;;  %v7054_v8 = vld [vmem:[#allocation42_spill] sm:$0xff] }
 0x23e   :  { %v1414_v12 = vmul.f32 0.0, %v1411_v10  ;;  %v1412_v33 = vadd.f32 0.5, %v1409_v22  ;;  %v7055_v10 = vld [vmem:[#allocation43_spill] sm:$0xff] }
 0x23f   :  { %v7059_v22 = vld [vmem:[#allocation47_spill] sm:$0xff] }
 0x240   :  { %v4856_v13 = vadd.f32 %v1415_v11, %v1414_v12  ;;  %v7056_v11 = vld [vmem:[#allocation44_spill] sm:$0xff]  ;;  %v7057_v12 = vld [vmem:[#allocation45_spill] sm:$0xff] }
 0x242   :  { %3750 = vtanh.f32 %v4856_v13 }
 0x24c   :  { %v3751_v34 = vpop.eup %3750 }
 0x24d   :  { %v1418_v35 = vmul.f32 %v3751_v34, %v1412_v33  ;;  %v7060_v33 = vld [vmem:[#allocation48_spill] sm:$0xff]  ;;  %v7061_v34 = vld [vmem:[#allocation49_spill] sm:$0xff] }
 0x24f   :  { %v1419_v38 = vpack.c.bf16 %v1418_v35, %v1418_v35  ;;  %v7062_v35 = vld [vmem:[#allocation50_spill] sm:$0xff] }
 0x251   :  { %v4868_v42 = vsel %vm4452_vm6, %v1419_v38, 0  ;;  %v7064_v38 = vld [vmem:[#allocation52_spill] sm:$0xff] }
 0x252   :  { %1484 = vmatprep.mubr.bf16.mxu0 %v4868_v42  ;;  %1525 = vmatprep.mubr.bf16.mxu1 %v4868_v42 }
 0x253   :  { %1485 = vmatmul.mubr.bf16.vlgmr.msra.gmra.mrb[24].mxu0 %v4875_v14  ;;  %1526 = vmatmul.mubr.bf16.vlgmr.msra.gmra.mrb[24].mxu1 %v4875_v14 }
 0x254   :  { %1535 = vmatpush1.bf16.msra.mxu0 %v4456_v23  ;;  %1576 = vmatpush1.bf16.msra.mxu1 %v7029_v44  ;;  %v7037_v23 = vld [vmem:[#allocation25_spill] sm:$0xff] }
 0x255   :  { %1566 = vmatprep.mubr.bf16.mxu0 %v4868_v42  ;;  %1607 = vmatprep.mubr.bf16.mxu1 %v4868_v42  ;;  %v7065_v44 = vld [vmem:[#allocation53_spill] sm:$0xff] }
 0x256   :  { %1536 = vmatprep.subr.bf16.mxu0 %v7030_v31  ;;  %1577 = vmatprep.subr.bf16.mxu1 %v7031_v45  ;;  %v7066_v31 = vld [vmem:[#allocation54_spill] sm:$0xff]  ;;  %v7067_v45 = vld [vmem:[#allocation55_spill] sm:$0xff] }
 0x258   :  { %1537 = vmatpush1.bf16.msra.mxu0 %v7032_v46  ;;  %1578 = vmatpush1.bf16.msra.mxu1 %v7033_v30  ;;  %v7068_v46 = vld [vmem:[#allocation56_spill] sm:$0xff]  ;;  %v7069_v30 = vld [vmem:[#allocation57_spill] sm:$0xff] }
 0x259   :  { %1538 = vmatprep.subr.bf16.mxu0 %v7034_v47  ;;  %1579 = vmatprep.subr.bf16.mxu1 %v7035_v51  ;;  %v7070_v47 = vld [vmem:[#allocation58_spill] sm:$0xff]  ;;  %v7071_v51 = vld [vmem:[#allocation59_spill] sm:$0xff] }
 0x25c   :  { %1539 = vmatpush1.bf16.msra.mxu0 %v7036_v49  ;;  %1580 = vmatpush1.bf16.msra.mxu1 %v7037_v23  ;;  %v7072_v49 = vld [vmem:[#allocation60_spill] sm:$0xff]  ;;  %v7073_v23 = vld [vmem:[#allocation61_spill] sm:$0xff] }
 0x25d   :  { %1540 = vmatprep.subr.bf16.mxu0 %v7038_v50  ;;  %1581 = vmatprep.subr.bf16.mxu1 %v7039_v52  ;;  %v7074_v50 = vld [vmem:[#allocation62_spill] sm:$0xff]  ;;  %v7075_v52 = vld [vmem:[#allocation63_spill] sm:$0xff] }
 0x260   :  { %1541 = vmatpush1.bf16.msra.mxu0 %v7040_v53  ;;  %1582 = vmatpush1.bf16.msra.mxu1 %v7041_v54  ;;  %v7076_v53 = vld [vmem:[#allocation64_spill] sm:$0xff]  ;;  %v7077_v54 = vld [vmem:[#allocation65_spill] sm:$0xff] }
 0x261   :  { %1542 = vmatprep.subr.bf16.mxu0 %v7042_v55  ;;  %1583 = vmatprep.subr.bf16.mxu1 %v7043_v56  ;;  %v7078_v55 = vld [vmem:[#allocation66_spill] sm:$0xff]  ;;  %v7079_v56 = vld [vmem:[#allocation67_spill] sm:$0xff] }
 0x264   :  { %1543 = vmatpush1.bf16.msra.mxu0 %v7044_v57  ;;  %1584 = vmatpush1.bf16.msra.mxu1 %v7045_v58  ;;  %v7080_v57 = vld [vmem:[#allocation68_spill] sm:$0xff]  ;;  %v7081_v58 = vld [vmem:[#allocation69_spill] sm:$0xff] }
 0x265   :  { %1544 = vmatprep.subr.bf16.mxu0 %v7046_v59  ;;  %1585 = vmatprep.subr.bf16.mxu1 %v7047_v62  ;;  %v7082_v59 = vld [vmem:[#allocation70_spill] sm:$0xff]  ;;  %v7083_v62 = vld [vmem:[#allocation71_spill] sm:$0xff] }
 0x268   :  { %1545 = vmatpush1.bf16.msra.mxu0 %v7048_v63  ;;  %1586 = vmatpush1.bf16.msra.mxu1 %v7049_v1  ;;  %v7084_v63 = vld [vmem:[#allocation72_spill] sm:$0xff]  ;;  %v7085_v1 = vld [vmem:[#allocation73_spill] sm:$0xff] }
 0x269   :  { %1546 = vmatprep.subr.bf16.mxu0 %v7050_v2  ;;  %1587 = vmatprep.subr.bf16.mxu1 %v7051_v3  ;;  %v7086_v2 = vld [vmem:[#allocation76_spill] sm:$0xff]  ;;  %v7087_v3 = vld [vmem:[#allocation77_spill] sm:$0xff] }
 0x26c   :  { %1547 = vmatpush1.bf16.msra.mxu0 %v7052_v4  ;;  %1588 = vmatpush1.bf16.msra.mxu1 %v7053_v5  ;;  %v7088_v4 = vld [vmem:[#allocation84_spill] sm:$0xff]  ;;  %v7089_v5 = vld [vmem:[#allocation85_spill] sm:$0xff] }
 0x26d   :  { %1548 = vmatprep.subr.bf16.mxu0 %v7054_v8  ;;  %1589 = vmatprep.subr.bf16.mxu1 %v7055_v10  ;;  %v7090_v8 = vld [vmem:[#allocation90_spill] sm:$0xff]  ;;  %v7091_v10 = vld [vmem:[#allocation91_spill] sm:$0xff] }
 0x270   :  { %1549 = vmatpush1.bf16.msra.mxu0 %v7056_v11  ;;  %1590 = vmatpush1.bf16.msra.mxu1 %v7057_v12  ;;  %v7092_v11 = vld [vmem:[#allocation94_spill] sm:$0xff]  ;;  %v7093_v12 = vld [vmem:[#allocation95_spill] sm:$0xff] }
 0x271   :  { %1550 = vmatprep.subr.bf16.mxu0 %v7058_v18  ;;  %1591 = vmatprep.subr.bf16.mxu1 %v7059_v22  ;;  %v7094_v18 = vld [vmem:[#allocation98_spill] sm:$0xff]  ;;  %v7095_v22 = vld [vmem:[#allocation99_spill] sm:$0xff] }
 0x274   :  { %1551 = vmatpush1.bf16.msra.mxu0 %v7060_v33  ;;  %1592 = vmatpush1.bf16.msra.mxu1 %v7061_v34  ;;  %v7096_v33 = vld [vmem:[#allocation100_spill] sm:$0xff]  ;;  %v7097_v34 = vld [vmem:[#allocation101_spill] sm:$0xff] }
 0x275   :  { %1552 = vmatprep.subr.bf16.mxu0 %v7062_v35  ;;  %1593 = vmatprep.subr.bf16.mxu1 %v7063_v36 }
 0x278   :  { %1553 = vmatpush1.bf16.msra.mxu0 %v7064_v38  ;;  %1594 = vmatpush1.bf16.msra.mxu1 %v7065_v44 }
 0x279   :  { %1554 = vmatprep.subr.bf16.mxu0 %v7066_v31  ;;  %1595 = vmatprep.subr.bf16.mxu1 %v7067_v45 }
 0x27c   :  { %1555 = vmatpush1.bf16.msra.mxu0 %v7068_v46  ;;  %1596 = vmatpush1.bf16.msra.mxu1 %v7069_v30 }
 0x27d   :  { %1556 = vmatprep.subr.bf16.mxu0 %v7070_v47  ;;  %1597 = vmatprep.subr.bf16.mxu1 %v7071_v51 }
 0x280   :  { %1557 = vmatpush1.bf16.msra.mxu0 %v7072_v49  ;;  %1598 = vmatpush1.bf16.msra.mxu1 %v7073_v23 }
 0x281   :  { %1558 = vmatprep.subr.bf16.mxu0 %v7074_v50  ;;  %1599 = vmatprep.subr.bf16.mxu1 %v7075_v52 }
 0x284   :  { %1559 = vmatpush1.bf16.msra.mxu0 %v7076_v53  ;;  %1600 = vmatpush1.bf16.msra.mxu1 %v7077_v54 }
 0x285   :  { %1560 = vmatprep.subr.bf16.mxu0 %v7078_v55  ;;  %1601 = vmatprep.subr.bf16.mxu1 %v7079_v56 }
 0x288   :  { %1561 = vmatpush1.bf16.msra.mxu0 %v7080_v57  ;;  %1602 = vmatpush1.bf16.msra.mxu1 %v7081_v58 }
 0x289   :  { %1562 = vmatprep.subr.bf16.mxu0 %v7082_v59  ;;  %1603 = vmatprep.subr.bf16.mxu1 %v7083_v62 }
 0x28c   :  { %1563 = vmatpush1.bf16.msra.mxu0 %v7084_v63  ;;  %1604 = vmatpush1.bf16.msra.mxu1 %v7085_v1 }
 0x28d   :  { %1564 = vmatprep.subr.bf16.mxu0 %v4636_v17  ;;  %1605 = vmatprep.subr.bf16.mxu1 %v4638_v60 }
 0x290   :  { %1565 = vmatpush1.bf16.msra.mxu0 %v7086_v2  ;;  %1606 = vmatpush1.bf16.msra.mxu1 %v7087_v3 }
 0x291   :  { %1671 = vmatprep.subr.bf16.mxu0 %v7088_v4  ;;  %1712 = vmatprep.subr.bf16.mxu1 %v7089_v5  ;;  %v7098_v5 = vld [vmem:[#allocation107_spill] sm:$0xff] }
 0x293   :  { %1567 = vmatmul.mubr.bf16.vlgmr.msra.gmra.mrb[28].mxu0 %v4875_v14  ;;  %1608 = vmatmul.mubr.bf16.vlgmr.msra.gmra.mrb[28].mxu1 %v4875_v14 }
 0x294   :  { %1672 = vmatpush1.bf16.msra.mxu0 %v7090_v8  ;;  %1713 = vmatpush1.bf16.msra.mxu1 %v7091_v10  ;;  %v7099_v8 = vld [vmem:[#allocation111_spill] sm:$0xff] }
 0x295   :  { %1673 = vmatprep.subr.bf16.mxu0 %v7092_v11  ;;  %1714 = vmatprep.subr.bf16.mxu1 %v7093_v12 }
 0x298   :  { %1674 = vmatpush1.bf16.msra.mxu0 %v7094_v18  ;;  %1715 = vmatpush1.bf16.msra.mxu1 %v7095_v22 }
 0x299   :  { %1675 = vmatprep.subr.bf16.mxu0 %v7096_v33  ;;  %1716 = vmatprep.subr.bf16.mxu1 %v7097_v34 }
 0x29c   :  { %1676 = vmatpush1.bf16.msra.mxu0 %v4722_v20  ;;  %1717 = vmatpush1.bf16.msra.mxu1 %v7098_v5  ;;  %v4966_v20 = vld [vmem:[#allocation3 + $0x264] ss:$60 sps:$4 sm:$0xff]  }
 0x29d   :  { %1677 = vmatprep.subr.bf16.mxu0 %v4732_v24  ;;  %1718 = vmatprep.subr.bf16.mxu1 %v7099_v8  ;;  %7100 = vst [vmem:[#allocation17_spill] sm:$0xff] %v4966_v20  ;;  %v4969_v24 = vld [vmem:[#allocation3 + $0x258] ss:$60 sps:$4 sm:$0xff]  }
 0x29e   :  { %7101 = vst [vmem:[#allocation18_spill] sm:$0xff] %v4969_v24 }
 0x2a0   :  { %1678 = vmatpush1.bf16.msra.mxu0 %v4742_v6  ;;  %1719 = vmatpush1.bf16.msra.mxu1 %v4745_v27  ;;  %v4972_v6 = vld [vmem:[#allocation3 + $0x260] ss:$60 sps:$4 sm:$0xff]   ;;  %v7146_v27 = vld [vmem:[#allocation79_spill] sm:$0xff] }
 0x2a1   :  { %1679 = vmatprep.subr.bf16.mxu0 %v4748_v26  ;;  %1720 = vmatprep.subr.bf16.mxu1 %v4751_v21  ;;  %7102 = vst [vmem:[#allocation19_spill] sm:$0xff] %v4972_v6  ;;  %v4975_v26 = vld [vmem:[#allocation3 + $0x2d4] ss:$60 sps:$4 sm:$0xff]  }
 0x2a2   :  { %7103 = vst [vmem:[#allocation20_spill] sm:$0xff] %v4975_v26 }
 0x2a4   :  { %1680 = vmatpush1.bf16.msra.mxu0 %v4754_v0  ;;  %1721 = vmatpush1.bf16.msra.mxu1 %v4757_v29  ;;  %v4978_v0 = vld [vmem:[#allocation3 + $0x2dc] ss:$60 sps:$4 sm:$0xff]  }
 0x2a5   :  { %1681 = vmatprep.subr.bf16.mxu0 %v4760_v28  ;;  %1722 = vmatprep.subr.bf16.mxu1 %v4966_v20  ;;  %7104 = vst [vmem:[#allocation21_spill] sm:$0xff] %v4978_v0  ;;  %v4981_v28 = vld [vmem:[#allocation3 + $0x2d0] ss:$60 sps:$4 sm:$0xff]   ;;  %v4984_v20 = vld [vmem:[#allocation3 + $0x2d8] ss:$60 sps:$4 sm:$0xff]  }
 0x2a6   :  { %7105 = vst [vmem:[#allocation22_spill] sm:$0xff] %v4981_v28  ;;  %7106 = vst [vmem:[#allocation23_spill] sm:$0xff] %v4984_v20 }
 0x2a8   :  { %1682 = vmatpush1.bf16.msra.mxu0 %v4969_v24  ;;  %1723 = vmatpush1.bf16.msra.mxu1 %v4972_v6  ;;  %v4987_v24 = vld [vmem:[#allocation3 + $0x34c] ss:$60 sps:$4 sm:$0xff]   ;;  %v4990_v6 = vld [vmem:[#allocation3 + $0x354] ss:$60 sps:$4 sm:$0xff]  }
 0x2a9   :  { %1683 = vmatprep.subr.bf16.mxu0 %v4975_v26  ;;  %1724 = vmatprep.subr.bf16.mxu1 %v4978_v0  ;;  %7107 = vst [vmem:[#allocation24_spill] sm:$0xff] %v4987_v24  ;;  %7108 = vst [vmem:[#allocation25_spill] sm:$0xff] %v4990_v6  ;;  %v4993_v26 = vld [vmem:[#allocation3 + $0x348] ss:$60 sps:$4 sm:$0xff]   ;;  %v4996_v0 = vld [vmem:[#allocation3 + $0x350] ss:$60 sps:$4 sm:$0xff]  }
 0x2aa   :  { %7109 = vst [vmem:[#allocation26_spill] sm:$0xff] %v4993_v26  ;;  %7110 = vst [vmem:[#allocation27_spill] sm:$0xff] %v4996_v0 }
 0x2ac   :  { %1684 = vmatpush1.bf16.msra.mxu0 %v4981_v28  ;;  %1725 = vmatpush1.bf16.msra.mxu1 %v4984_v20  ;;  %v4999_v28 = vld [vmem:[#allocation3 + $0x3c4] ss:$60 sps:$4 sm:$0xff]   ;;  %v5002_v20 = vld [vmem:[#allocation3 + $0x3cc] ss:$60 sps:$4 sm:$0xff]  }
 0x2ad   :  { %1685 = vmatprep.subr.bf16.mxu0 %v4987_v24  ;;  %1726 = vmatprep.subr.bf16.mxu1 %v4990_v6  ;;  %7111 = vst [vmem:[#allocation28_spill] sm:$0xff] %v4999_v28  ;;  %7112 = vst [vmem:[#allocation29_spill] sm:$0xff] %v5002_v20  ;;  %v5005_v24 = vld [vmem:[#allocation3 + $0x3c0] ss:$60 sps:$4 sm:$0xff]   ;;  %v5008_v6 = vld [vmem:[#allocation3 + $0x3c8] ss:$60 sps:$4 sm:$0xff]  }
 0x2ae   :  { %7113 = vst [vmem:[#allocation30_spill] sm:$0xff] %v5005_v24  ;;  %7114 = vst [vmem:[#allocation31_spill] sm:$0xff] %v5008_v6 }
 0x2b0   :  { %1686 = vmatpush1.bf16.msra.mxu0 %v4993_v26  ;;  %1727 = vmatpush1.bf16.msra.mxu1 %v4996_v0  ;;  %v5011_v26 = vld [vmem:[#allocation3 + $0x43c] ss:$60 sps:$4 sm:$0xff]   ;;  %v5014_v0 = vld [vmem:[#allocation3 + $0x444] ss:$60 sps:$4 sm:$0xff]  }
 0x2b1   :  { %1687 = vmatprep.subr.bf16.mxu0 %v4999_v28  ;;  %1728 = vmatprep.subr.bf16.mxu1 %v5002_v20  ;;  %7115 = vst [vmem:[#allocation32_spill] sm:$0xff] %v5011_v26  ;;  %7116 = vst [vmem:[#allocation33_spill] sm:$0xff] %v5014_v0  ;;  %v5017_v28 = vld [vmem:[#allocation3 + $0x438] ss:$60 sps:$4 sm:$0xff]   ;;  %v5020_v20 = vld [vmem:[#allocation3 + $0x440] ss:$60 sps:$4 sm:$0xff]  }
 0x2b2   :  { %7117 = vst [vmem:[#allocation34_spill] sm:$0xff] %v5017_v28  ;;  %7118 = vst [vmem:[#allocation35_spill] sm:$0xff] %v5020_v20 }
 0x2b4   :  { %1688 = vmatpush1.bf16.msra.mxu0 %v5005_v24  ;;  %1729 = vmatpush1.bf16.msra.mxu1 %v5008_v6  ;;  %v5023_v24 = vld [vmem:[#allocation3 + $0x4b4] ss:$60 sps:$4 sm:$0xff]   ;;  %v5026_v6 = vld [vmem:[#allocation3 + $0x4bc] ss:$60 sps:$4 sm:$0xff]  }
 0x2b5   :  { %1689 = vmatprep.subr.bf16.mxu0 %v5011_v26  ;;  %1730 = vmatprep.subr.bf16.mxu1 %v5014_v0  ;;  %7119 = vst [vmem:[#allocation36_spill] sm:$0xff] %v5023_v24  ;;  %7120 = vst [vmem:[#allocation37_spill] sm:$0xff] %v5026_v6  ;;  %v5029_v26 = vld [vmem:[#allocation3 + $0x4b0] ss:$60 sps:$4 sm:$0xff]   ;;  %v5032_v0 = vld [vmem:[#allocation3 + $0x4b8] ss:$60 sps:$4 sm:$0xff]  }
 0x2b6   :  { %7121 = vst [vmem:[#allocation38_spill] sm:$0xff] %v5029_v26  ;;  %7122 = vst [vmem:[#allocation39_spill] sm:$0xff] %v5032_v0 }
 0x2b8   :  { %1690 = vmatpush1.bf16.msra.mxu0 %v5017_v28  ;;  %1731 = vmatpush1.bf16.msra.mxu1 %v5020_v20  ;;  %v5035_v28 = vld [vmem:[#allocation3 + $0x52c] ss:$60 sps:$4 sm:$0xff]   ;;  %v5038_v20 = vld [vmem:[#allocation3 + $0x534] ss:$60 sps:$4 sm:$0xff]  }
 0x2b9   :  { %1691 = vmatprep.subr.bf16.mxu0 %v5023_v24  ;;  %1732 = vmatprep.subr.bf16.mxu1 %v5026_v6  ;;  %7123 = vst [vmem:[#allocation40_spill] sm:$0xff] %v5035_v28  ;;  %7124 = vst [vmem:[#allocation41_spill] sm:$0xff] %v5038_v20  ;;  %v5041_v24 = vld [vmem:[#allocation3 + $0x528] ss:$60 sps:$4 sm:$0xff]   ;;  %v5044_v6 = vld [vmem:[#allocation3 + $0x530] ss:$60 sps:$4 sm:$0xff]  }
 0x2ba   :  { %7125 = vst [vmem:[#allocation42_spill] sm:$0xff] %v5041_v24  ;;  %7126 = vst [vmem:[#allocation43_spill] sm:$0xff] %v5044_v6 }
 0x2bc   :  { %1692 = vmatpush1.bf16.msra.mxu0 %v5029_v26  ;;  %1733 = vmatpush1.bf16.msra.mxu1 %v5032_v0  ;;  %v5047_v26 = vld [vmem:[#allocation3 + $0x5a4] ss:$60 sps:$4 sm:$0xff]   ;;  %v5050_v0 = vld [vmem:[#allocation3 + $0x5ac] ss:$60 sps:$4 sm:$0xff]  }
 0x2bd   :  { %1693 = vmatprep.subr.bf16.mxu0 %v5035_v28  ;;  %1734 = vmatprep.subr.bf16.mxu1 %v5038_v20  ;;  %7127 = vst [vmem:[#allocation44_spill] sm:$0xff] %v5047_v26  ;;  %7128 = vst [vmem:[#allocation45_spill] sm:$0xff] %v5050_v0  ;;  %v5053_v28 = vld [vmem:[#allocation3 + $0x5a0] ss:$60 sps:$4 sm:$0xff]   ;;  %v5056_v20 = vld [vmem:[#allocation3 + $0x5a8] ss:$60 sps:$4 sm:$0xff]  }
 0x2be   :  { %7129 = vst [vmem:[#allocation46_spill] sm:$0xff] %v5053_v28  ;;  %7130 = vst [vmem:[#allocation47_spill] sm:$0xff] %v5056_v20 }
 0x2c0   :  { %1694 = vmatpush1.bf16.msra.mxu0 %v5041_v24  ;;  %1735 = vmatpush1.bf16.msra.mxu1 %v5044_v6  ;;  %v5059_v24 = vld [vmem:[#allocation3 + $0x61c] ss:$60 sps:$4 sm:$0xff]   ;;  %v5062_v6 = vld [vmem:[#allocation3 + $0x624] ss:$60 sps:$4 sm:$0xff]  }
 0x2c1   :  { %1695 = vmatprep.subr.bf16.mxu0 %v5047_v26  ;;  %1736 = vmatprep.subr.bf16.mxu1 %v5050_v0  ;;  %7131 = vst [vmem:[#allocation48_spill] sm:$0xff] %v5059_v24  ;;  %7132 = vst [vmem:[#allocation49_spill] sm:$0xff] %v5062_v6  ;;  %v5065_v26 = vld [vmem:[#allocation3 + $0x618] ss:$60 sps:$4 sm:$0xff]   ;;  %v5068_v0 = vld [vmem:[#allocation3 + $0x620] ss:$60 sps:$4 sm:$0xff]  }
 0x2c2   :  { %7133 = vst [vmem:[#allocation50_spill] sm:$0xff] %v5065_v26  ;;  %7134 = vst [vmem:[#allocation51_spill] sm:$0xff] %v5068_v0 }
 0x2c4   :  { %1696 = vmatpush1.bf16.msra.mxu0 %v5053_v28  ;;  %1737 = vmatpush1.bf16.msra.mxu1 %v5056_v20  ;;  %v5071_v28 = vld [vmem:[#allocation3 + $0x694] ss:$60 sps:$4 sm:$0xff]   ;;  %v5074_v20 = vld [vmem:[#allocation3 + $0x69c] ss:$60 sps:$4 sm:$0xff]  }
 0x2c5   :  { %1697 = vmatprep.subr.bf16.mxu0 %v5059_v24  ;;  %1738 = vmatprep.subr.bf16.mxu1 %v5062_v6  ;;  %7135 = vst [vmem:[#allocation52_spill] sm:$0xff] %v5071_v28  ;;  %7136 = vst [vmem:[#allocation53_spill] sm:$0xff] %v5074_v20  ;;  %v5077_v24 = vld [vmem:[#allocation3 + $0x690] ss:$60 sps:$4 sm:$0xff]   ;;  %v5080_v6 = vld [vmem:[#allocation3 + $0x698] ss:$60 sps:$4 sm:$0xff]  }
 0x2c6   :  { %7137 = vst [vmem:[#allocation54_spill] sm:$0xff] %v5077_v24  ;;  %7138 = vst [vmem:[#allocation55_spill] sm:$0xff] %v5080_v6 }
 0x2c8   :  { %1698 = vmatpush1.bf16.msra.mxu0 %v5065_v26  ;;  %1739 = vmatpush1.bf16.msra.mxu1 %v5068_v0  ;;  %v5083_v26 = vld [vmem:[#allocation3 + $0x70c] ss:$60 sps:$4 sm:$0xff]   ;;  %v5086_v0 = vld [vmem:[#allocation3 + $0x714] ss:$60 sps:$4 sm:$0xff]  }
 0x2c9   :  { %1699 = vmatprep.subr.bf16.mxu0 %v5071_v28  ;;  %1740 = vmatprep.subr.bf16.mxu1 %v5074_v20  ;;  %7139 = vst [vmem:[#allocation56_spill] sm:$0xff] %v5083_v26  ;;  %7140 = vst [vmem:[#allocation57_spill] sm:$0xff] %v5086_v0  ;;  %v5089_v28 = vld [vmem:[#allocation3 + $0x708] ss:$60 sps:$4 sm:$0xff]   ;;  %v5092_v20 = vld [vmem:[#allocation3 + $0x710] ss:$60 sps:$4 sm:$0xff]  }
 0x2ca   :  { %7141 = vst [vmem:[#allocation58_spill] sm:$0xff] %v5089_v28  ;;  %7142 = vst [vmem:[#allocation59_spill] sm:$0xff] %v5092_v20 }
 0x2cc   :  { %1700 = vmatpush1.bf16.msra.mxu0 %v5077_v24  ;;  %1741 = vmatpush1.bf16.msra.mxu1 %v5080_v6  ;;  %v7143_v6 = vld [vmem:[#allocation74_spill] sm:$0xff] }
 0x2cd   :  { %1701 = vmatprep.subr.bf16.mxu0 %v5083_v26  ;;  %1742 = vmatprep.subr.bf16.mxu1 %v5086_v0  ;;  %v434_v24 = vadd.f32 %v7143_v6, %v7012_v32  ;;  %v7144_v26 = vld [vmem:[#allocation75_spill] sm:$0xff]  ;;  %v7145_v0 = vld [vmem:[#allocation78_spill] sm:$0xff] }
 0x2ce   :  { %v507_v29 = vadd.f32 %v7144_v26, %v4438_v25  ;;  %v436_v21 = vadd.f32 %v7145_v0, %v7015_v37 }
 0x2d0   :  { %1702 = vmatpush1.bf16.msra.mxu0 %v5089_v28  ;;  %1743 = vmatpush1.bf16.msra.mxu1 %v5092_v20  ;;  %v509_v28 = vadd.f32 %v7146_v27, %v7017_v40 }
 0x2d1   :  { %1753 = vmatprep.subr.bf16.mxu0 %v4400_v15  ;;  %1794 = vmatprep.subr.bf16.mxu1 %v4402_v16 }
 0x326   :  { %v1486_v8 = vpop.f32.mrb[24].mxu0  ;;  %v1527_v5 = vpop.f32.mrb[24].mxu1 }
 0x327   :  { %v1645_v34 = vadd.f32 %v1486_v8, %v434_v24  ;;  %v1647_v20 = vadd.f32 %v1527_v5, %v507_v29  ;;  %v1488_v33 = vpop.f32.mrb[25].mxu0  ;;  %v1529_v15 = vpop.f32.mrb[25].mxu1 }
 0x328   :  { %v1646_v22 = vadd.f32 %v1488_v33, %v436_v21  ;;  %v1648_v16 = vadd.f32 %v1529_v15, %v509_v28  ;;  %v1490_v18 = vpop.f32.mrb[26].mxu0  ;;  %v1531_v12 = vpop.f32.mrb[26].mxu1 }
 0x329   :  { %v1649_v6 = vmul.f32 0.5, %v1645_v34  ;;  %v1491_v32 = vpop.f32.mrb[27].mxu0  ;;  %v1532_v11 = vpop.f32.mrb[27].mxu1  ;;  %v1651_v0 = vmul.f32 0.5, %v1647_v20 }
 0x32a   :  { %v1650_v26 = vmul.f32 0.5, %v1646_v22  ;;  %v5105_v21 = vpop.permute.xlu1 %274 }
 0x32b   :  { %3752 = vtanh.f32 %v1649_v6  ;;  %vm276_vm13 = vcmp.eq.s32.totalorder %v5105_v21, 1 }
 0x32c   :  { %3754 = vtanh.f32 %v1650_v26  ;;  %vm5128_vm14 = vmpackc.low %vm276_vm13, %vm276_vm13 }
 0x32d   :  { %3756 = vtanh.f32 %v1648_v16 }
 0x32e   :  { %3758 = vtanh.f32 %v1651_v0 }
 0x335   :  { %v3753_v37 = vpop.eup %3752 }
 0x336   :  { %v1655_v27 = vmul.f32 0.5, %v3753_v37  ;;  %v3755_v40 = vpop.eup %3754 }
 0x337   :  { %v1656_v29 = vmul.f32 0.5, %v3755_v40  ;;  %v3757_v24 = vpop.eup %3756 }
 0x338   :  { %v1658_v25 = vadd.f32 0.5, %v1655_v27  ;;  %v3759_v37 = vpop.eup %3758 }
 0x339   :  { %v1659_v5 = vadd.f32 0.5, %v1656_v29  ;;  %v1657_v11 = vmul.f32 0.5, %v3759_v37 }
 0x33a   :  { %v1663_v28 = vmul.f32 %v3757_v24, %v1658_v25 }
 0x33b   :  { %v1662_v8 = vmul.f32 %v1659_v5, %v4824_v9  ;;  %v1660_v12 = vadd.f32 0.5, %v1657_v11 }
 0x33d   :  { %v1664_v32 = vadd.f32 %v1663_v28, %v1662_v8 }
 0x33f   :  { %3760 = vtanh.f32 %v1664_v32  ;;  %v5112_v20 = vsel %vm276_vm13, %v1664_v32, %v4824_v9 }
 0x349   :  { %v3761_v40 = vpop.eup %3760 }
 0x34a   :  { %v1666_v18 = vmul.f32 %v3761_v40, %v1660_v12 }
 0x366   :  { %v1568_v22 = vpop.f32.mrb[28].mxu0  ;;  %v1609_v33 = vpop.f32.mrb[28].mxu1 }
 0x367   :  { %v1616_v25 = vadd.f32 %v1568_v22, %v4838_v41  ;;  %v1570_v34 = vpop.f32.mrb[29].mxu0  ;;  %v1611_v15 = vpop.f32.mrb[29].mxu1  ;;  %v1618_v5 = vadd.f32 %v1609_v33, %v4853_v61 }
 0x368   :  { %v1617_v16 = vadd.f32 %v1570_v34, %v4842_v43  ;;  %v1572_v6 = vpop.f32.mrb[30].mxu0  ;;  %v1613_v26 = vpop.f32.mrb[30].mxu1  ;;  %v1619_v24 = vadd.f32 %v1611_v15, %v4847_v48  ;;  %v1421_v34 = vsel %vm264_vm5, %v4856_v13, 0.0 }
 0x369   :  { %v1620_v0 = vmul.f32 0.5, %v1616_v25  ;;  %v1573_v27 = vpop.f32.mrb[31].mxu0  ;;  %v1614_v29 = vpop.f32.mrb[31].mxu1  ;;  %v1622_v28 = vmul.f32 0.5, %v1618_v5  ;;  %v5160_v5 = vld [vmem:[#allocation3 + $0x88] ss:$60 sps:$4 sm:$0xff]  }
 0x36a   :  { %v1621_v9 = vmul.f32 0.5, %v1617_v16 }
 0x36b   :  { %3762 = vtanh.f32 %v1620_v0 }
 0x36c   :  { %3764 = vtanh.f32 %v1621_v9  ;;  %v1667_v9 = vpack.c.bf16 %v1666_v18, %v1666_v18  ;;  %v5146_v18 = vld [vmem:[#allocation3 + $0x10] ss:$60 sps:$4 sm:$0xff]  }
 0x36d   :  { %3766 = vtanh.f32 %v1619_v24 }
 0x36e   :  { %3768 = vtanh.f32 %v1622_v28  ;;  %v5140_v13 = vsel %vm5128_vm14, %v1667_v9, %v4875_v14  ;;  %v5157_v14 = vld [vmem:[#allocation3 + $0x94] ss:$60 sps:$4 sm:$0xff]   ;;  %v5214_v9 = vld [vmem:[#allocation3 + $0x2e4] ss:$60 sps:$4 sm:$0xff]  }
 0x36f   :  { %v5163_v28 = vld [vmem:[#allocation3 + $0x90] ss:$60 sps:$4 sm:$0xff]   ;;  %7153 = vst [vmem:[#allocation64_spill] sm:$0xff] %v5214_v9 }
 0x375   :  { %v3763_v8 = vpop.eup %3762 }
 0x376   :  { %v1626_v32 = vmul.f32 0.5, %v3763_v8  ;;  %v3765_v37 = vpop.eup %3764  ;;  %v5166_v8 = vld [vmem:[#allocation3 + $0x104] ss:$60 sps:$4 sm:$0xff]  }
 0x377   :  { %v1627_v12 = vmul.f32 0.5, %v3765_v37  ;;  %v3767_v40 = vpop.eup %3766  ;;  %v5172_v37 = vld [vmem:[#allocation3 + $0x100] ss:$60 sps:$4 sm:$0xff]  }
 0x378   :  { %v1629_v11 = vadd.f32 0.5, %v1626_v32  ;;  %v3769_v6 = vpop.eup %3768  ;;  %v5169_v32 = vld [vmem:[#allocation3 + $0x10c] ss:$60 sps:$4 sm:$0xff]  }
 0x379   :  { %v1630_v22 = vadd.f32 0.5, %v1627_v12  ;;  %v1628_v26 = vmul.f32 0.5, %v3769_v6  ;;  %v5178_v12 = vld [vmem:[#allocation3 + $0x17c] ss:$60 sps:$4 sm:$0xff]  }
 0x37a   :  { %v1634_v25 = vmul.f32 %v3767_v40, %v1629_v11  ;;  %v5175_v11 = vld [vmem:[#allocation3 + $0x108] ss:$60 sps:$4 sm:$0xff]   ;;  %v5199_v6 = vld [vmem:[#allocation3 + $0x1f8] ss:$60 sps:$4 sm:$0xff]  }
 0x37b   :  { %v1633_v16 = vmul.f32 %v1630_v22, %v1421_v34  ;;  %v1631_v0 = vadd.f32 0.5, %v1628_v26  ;;  %v5181_v40 = vld [vmem:[#allocation3 + $0x184] ss:$60 sps:$4 sm:$0xff]   ;;  %v5184_v22 = vld [vmem:[#allocation3 + $0x178] ss:$60 sps:$4 sm:$0xff]  }
 0x37c   :  { %v5202_v26 = vld [vmem:[#allocation3 + $0x26c] ss:$60 sps:$4 sm:$0xff]  }
 0x37d   :  { %v1635_v15 = vadd.f32 %v1634_v25, %v1633_v16  ;;  %v5187_v25 = vld [vmem:[#allocation3 + $0x180] ss:$60 sps:$4 sm:$0xff]   ;;  %7149 = vst [vmem:[#allocation60_spill] sm:$0xff] %v5202_v26 }
 0x37e   :  { %v5193_v16 = vld [vmem:[#allocation3 + $0x1fc] ss:$60 sps:$4 sm:$0xff]  }
 0x37f   :  { %3770 = vtanh.f32 %v1635_v15  ;;  %v5123_v33 = vsel %vm270_vm7, %v1635_v15, %v1421_v34  ;;  %v5190_v34 = vld [vmem:[#allocation3 + $0x1f4] ss:$60 sps:$4 sm:$0xff]  }
 0x380   :  { %v5196_v15 = vld [vmem:[#allocation3 + $0x1f0] ss:$60 sps:$4 sm:$0xff]  }
 0x384   :  { %v7236_v24 = vld [vmem:[#allocation60_spill] sm:$0xff] }
 0x389   :  { %v3771_v27 = vpop.eup %3770 }
 0x38a   :  { %v1637_v29 = vmul.f32 %v3771_v27, %v1631_v0  ;;  %v5205_v0 = vld [vmem:[#allocation3 + $0x274] ss:$60 sps:$4 sm:$0xff]   ;;  %v5208_v27 = vld [vmem:[#allocation3 + $0x268] ss:$60 sps:$4 sm:$0xff]  }
 0x38b   :  { %7150 = vst [vmem:[#allocation61_spill] sm:$0xff] %v5205_v0  ;;  %7151 = vst [vmem:[#allocation62_spill] sm:$0xff] %v5208_v27 }
 0x38c   :  { %v1638_v19 = vpack.c.bf16 %v1637_v29, %v1637_v29  ;;  %v5211_v29 = vld [vmem:[#allocation3 + $0x270] ss:$60 sps:$4 sm:$0xff]  }
 0x38d   :  { %7152 = vst [vmem:[#allocation63_spill] sm:$0xff] %v5211_v29 }
 0x38e   :  { %v5135_v7 = vsel %vm4862_vm12, %v1638_v19, %v4868_v42  ;;  %v5154_v42 = vld [vmem:[#allocation3 + $0x8c] ss:$60 sps:$4 sm:$0xff]  }
 0x38f   :  { %1703 = vmatprep.mubr.bf16.mxu0 %v5135_v7  ;;  %1744 = vmatprep.mubr.bf16.mxu1 %v5135_v7  ;;  %v5217_v19 = vld [vmem:[#allocation3 + $0x2ec] ss:$60 sps:$4 sm:$0xff]  }
 0x390   :  { %1704 = vmatmul.mubr.bf16.vlgmr.msra.gmra.mrb[32].mxu0 %v5140_v13  ;;  %1745 = vmatmul.mubr.bf16.vlgmr.msra.gmra.mrb[32].mxu1 %v5140_v13  ;;  %7154 = vst [vmem:[#allocation65_spill] sm:$0xff] %v5217_v19 }
 0x391   :  { %1754 = vmatpush1.bf16.msra.mxu0 %v5146_v18  ;;  %1795 = vmatpush1.bf16.msra.mxu1 %v5149_v39 }
 0x392   :  { %1785 = vmatprep.mubr.bf16.mxu0 %v5135_v7  ;;  %1826 = vmatprep.mubr.bf16.mxu1 %v5135_v7 }
 0x393   :  { %1755 = vmatprep.subr.bf16.mxu0 %v5154_v42  ;;  %1796 = vmatprep.subr.bf16.mxu1 %v5157_v14 }
 0x395   :  { %1756 = vmatpush1.bf16.msra.mxu0 %v5160_v5  ;;  %1797 = vmatpush1.bf16.msra.mxu1 %v5163_v28 }
 0x396   :  { %1757 = vmatprep.subr.bf16.mxu0 %v5166_v8  ;;  %1798 = vmatprep.subr.bf16.mxu1 %v5169_v32 }
 0x399   :  { %1758 = vmatpush1.bf16.msra.mxu0 %v5172_v37  ;;  %1799 = vmatpush1.bf16.msra.mxu1 %v5175_v11 }
 0x39a   :  { %1759 = vmatprep.subr.bf16.mxu0 %v5178_v12  ;;  %1800 = vmatprep.subr.bf16.mxu1 %v5181_v40 }
 0x39d   :  { %1760 = vmatpush1.bf16.msra.mxu0 %v5184_v22  ;;  %1801 = vmatpush1.bf16.msra.mxu1 %v5187_v25 }
 0x39e   :  { %1761 = vmatprep.subr.bf16.mxu0 %v5190_v34  ;;  %1802 = vmatprep.subr.bf16.mxu1 %v5193_v16 }
 0x3a1   :  { %1762 = vmatpush1.bf16.msra.mxu0 %v5196_v15  ;;  %1803 = vmatpush1.bf16.msra.mxu1 %v5199_v6 }
 0x3a2   :  { %1763 = vmatprep.subr.bf16.mxu0 %v5202_v26  ;;  %1804 = vmatprep.subr.bf16.mxu1 %v5205_v0  ;;  %v5220_v26 = vld [vmem:[#allocation3 + $0x2e0] ss:$60 sps:$4 sm:$0xff]   ;;  %v5223_v0 = vld [vmem:[#allocation3 + $0x2e8] ss:$60 sps:$4 sm:$0xff]  }
 0x3a3   :  { %7155 = vst [vmem:[#allocation66_spill] sm:$0xff] %v5220_v26  ;;  %7156 = vst [vmem:[#allocation67_spill] sm:$0xff] %v5223_v0 }
 0x3a5   :  { %1764 = vmatpush1.bf16.msra.mxu0 %v5208_v27  ;;  %1805 = vmatpush1.bf16.msra.mxu1 %v5211_v29  ;;  %v5226_v27 = vld [vmem:[#allocation3 + $0x35c] ss:$60 sps:$4 sm:$0xff]   ;;  %v5229_v29 = vld [vmem:[#allocation3 + $0x364] ss:$60 sps:$4 sm:$0xff]  }
 0x3a6   :  { %1765 = vmatprep.subr.bf16.mxu0 %v5214_v9  ;;  %1806 = vmatprep.subr.bf16.mxu1 %v5217_v19  ;;  %7157 = vst [vmem:[#allocation68_spill] sm:$0xff] %v5226_v27  ;;  %7158 = vst [vmem:[#allocation69_spill] sm:$0xff] %v5229_v29  ;;  %v5232_v9 = vld [vmem:[#allocation3 + $0x358] ss:$60 sps:$4 sm:$0xff]   ;;  %v5235_v19 = vld [vmem:[#allocation3 + $0x360] ss:$60 sps:$4 sm:$0xff]  }
 0x3a9   :  { %1766 = vmatpush1.bf16.msra.mxu0 %v5220_v26  ;;  %1807 = vmatpush1.bf16.msra.mxu1 %v5223_v0  ;;  %v5238_v26 = vld [vmem:[#allocation3 + $0x3d4] ss:$60 sps:$4 sm:$0xff]   ;;  %v5241_v0 = vld [vmem:[#allocation3 + $0x3dc] ss:$60 sps:$4 sm:$0xff]  }
 0x3aa   :  { %1767 = vmatprep.subr.bf16.mxu0 %v5226_v27  ;;  %1808 = vmatprep.subr.bf16.mxu1 %v5229_v29  ;;  %7159 = vst [vmem:[#allocation70_spill] sm:$0xff] %v5241_v0  ;;  %v5244_v27 = vld [vmem:[#allocation3 + $0x3d0] ss:$60 sps:$4 sm:$0xff]   ;;  %v5247_v29 = vld [vmem:[#allocation3 + $0x3d8] ss:$60 sps:$4 sm:$0xff]  }
 0x3ab   :  { %7160 = vst [vmem:[#allocation71_spill] sm:$0xff] %v5244_v27  ;;  %7161 = vst [vmem:[#allocation72_spill] sm:$0xff] %v5247_v29 }
 0x3ad   :  { %1768 = vmatpush1.bf16.msra.mxu0 %v5232_v9  ;;  %1809 = vmatpush1.bf16.msra.mxu1 %v5235_v19 }
 0x3ae   :  { %1769 = vmatprep.subr.bf16.mxu0 %v5238_v26  ;;  %1810 = vmatprep.subr.bf16.mxu1 %v5241_v0 }
 0x3b1   :  { %1770 = vmatpush1.bf16.msra.mxu0 %v5244_v27  ;;  %1811 = vmatpush1.bf16.msra.mxu1 %v5247_v29 }
 0x3b2   :  { %1771 = vmatprep.subr.bf16.mxu0 %v7062_v35  ;;  %1812 = vmatprep.subr.bf16.mxu1 %v7063_v36  ;;  %v7162_v35 = vld [vmem:[#allocation85_spill] sm:$0xff]  ;;  %v7163_v36 = vld [vmem:[#allocation90_spill] sm:$0xff] }
 0x3b5   :  { %1772 = vmatpush1.bf16.msra.mxu0 %v7064_v38  ;;  %1813 = vmatpush1.bf16.msra.mxu1 %v7065_v44  ;;  %v7164_v38 = vld [vmem:[#allocation94_spill] sm:$0xff]  ;;  %v7167_v44 = vld [vmem:[#allocation99_spill] sm:$0xff] }
 0x3b6   :  { %1773 = vmatprep.subr.bf16.mxu0 %v7066_v31  ;;  %1814 = vmatprep.subr.bf16.mxu1 %v7067_v45  ;;  %v7168_v31 = vld [vmem:[#allocation100_spill] sm:$0xff]  ;;  %v7169_v45 = vld [vmem:[#allocation101_spill] sm:$0xff] }
 0x3b9   :  { %1774 = vmatpush1.bf16.msra.mxu0 %v7068_v46  ;;  %1815 = vmatpush1.bf16.msra.mxu1 %v7069_v30  ;;  %v7170_v46 = vld [vmem:[#allocation106_spill] sm:$0xff]  ;;  %v7171_v30 = vld [vmem:[#allocation107_spill] sm:$0xff] }
 0x3ba   :  { %1775 = vmatprep.subr.bf16.mxu0 %v7070_v47  ;;  %1816 = vmatprep.subr.bf16.mxu1 %v7071_v51  ;;  %v7172_v47 = vld [vmem:[#allocation110_spill] sm:$0xff]  ;;  %v7173_v51 = vld [vmem:[#allocation111_spill] sm:$0xff] }
 0x3bd   :  { %1776 = vmatpush1.bf16.msra.mxu0 %v7072_v49  ;;  %1817 = vmatpush1.bf16.msra.mxu1 %v7073_v23  ;;  %v7174_v49 = vld [vmem:[#allocation114_spill] sm:$0xff]  ;;  %v7175_v23 = vld [vmem:[#allocation115_spill] sm:$0xff] }
 0x3be   :  { %1777 = vmatprep.subr.bf16.mxu0 %v7074_v50  ;;  %1818 = vmatprep.subr.bf16.mxu1 %v7075_v52  ;;  %v7176_v50 = vld [vmem:[#allocation116_spill] sm:$0xff]  ;;  %v7177_v52 = vld [vmem:[#allocation117_spill] sm:$0xff] }
 0x3c1   :  { %1778 = vmatpush1.bf16.msra.mxu0 %v7076_v53  ;;  %1819 = vmatpush1.bf16.msra.mxu1 %v7077_v54  ;;  %v7178_v53 = vld [vmem:[#allocation118_spill] sm:$0xff]  ;;  %v7179_v54 = vld [vmem:[#allocation119_spill] sm:$0xff] }
 0x3c2   :  { %1779 = vmatprep.subr.bf16.mxu0 %v7078_v55  ;;  %1820 = vmatprep.subr.bf16.mxu1 %v7079_v56  ;;  %v7180_v55 = vld [vmem:[#allocation120_spill] sm:$0xff]  ;;  %v7181_v56 = vld [vmem:[#allocation17_spill] sm:$0xff] }
 0x3c5   :  { %1780 = vmatpush1.bf16.msra.mxu0 %v7080_v57  ;;  %1821 = vmatpush1.bf16.msra.mxu1 %v7081_v58  ;;  %v7182_v57 = vld [vmem:[#allocation18_spill] sm:$0xff]  ;;  %v7183_v58 = vld [vmem:[#allocation19_spill] sm:$0xff] }
 0x3c6   :  { %1781 = vmatprep.subr.bf16.mxu0 %v7082_v59  ;;  %1822 = vmatprep.subr.bf16.mxu1 %v7083_v62  ;;  %v7184_v59 = vld [vmem:[#allocation20_spill] sm:$0xff]  ;;  %v7185_v62 = vld [vmem:[#allocation21_spill] sm:$0xff] }
 0x3c9   :  { %1782 = vmatpush1.bf16.msra.mxu0 %v7084_v63  ;;  %1823 = vmatpush1.bf16.msra.mxu1 %v7085_v1  ;;  %v7186_v63 = vld [vmem:[#allocation22_spill] sm:$0xff]  ;;  %v7187_v1 = vld [vmem:[#allocation23_spill] sm:$0xff] }
 0x3ca   :  { %1783 = vmatprep.subr.bf16.mxu0 %v4636_v17  ;;  %1824 = vmatprep.subr.bf16.mxu1 %v4638_v60  ;;  %v7165_v17 = vld [vmem:[#allocation95_spill] sm:$0xff]  ;;  %v7166_v60 = vld [vmem:[#allocation98_spill] sm:$0xff] }
 0x3cd   :  { %1784 = vmatpush1.bf16.msra.mxu0 %v7086_v2  ;;  %1825 = vmatpush1.bf16.msra.mxu1 %v7087_v3  ;;  %v7188_v2 = vld [vmem:[#allocation24_spill] sm:$0xff]  ;;  %v7189_v3 = vld [vmem:[#allocation25_spill] sm:$0xff] }
 0x3ce   :  { %1890 = vmatprep.subr.bf16.mxu0 %v7088_v4  ;;  %1931 = vmatprep.subr.bf16.mxu1 %v7162_v35  ;;  %v7190_v4 = vld [vmem:[#allocation26_spill] sm:$0xff]  ;;  %v7192_v35 = vld [vmem:[#allocation28_spill] sm:$0xff] }
 0x3d0   :  { %1786 = vmatmul.mubr.bf16.vlgmr.msra.gmra.mrb[36].mxu0 %v5140_v13  ;;  %1827 = vmatmul.mubr.bf16.vlgmr.msra.gmra.mrb[36].mxu1 %v5140_v13 }
 0x3d1   :  { %1891 = vmatpush1.bf16.msra.mxu0 %v7163_v36  ;;  %1932 = vmatpush1.bf16.msra.mxu1 %v7091_v10  ;;  %v7191_v10 = vld [vmem:[#allocation27_spill] sm:$0xff]  ;;  %v7193_v36 = vld [vmem:[#allocation29_spill] sm:$0xff] }
 0x3d2   :  { %1892 = vmatprep.subr.bf16.mxu0 %v7164_v38  ;;  %1933 = vmatprep.subr.bf16.mxu1 %v7165_v17  ;;  %v7194_v38 = vld [vmem:[#allocation30_spill] sm:$0xff]  ;;  %v7195_v17 = vld [vmem:[#allocation31_spill] sm:$0xff] }
 0x3d5   :  { %1893 = vmatpush1.bf16.msra.mxu0 %v7166_v60  ;;  %1934 = vmatpush1.bf16.msra.mxu1 %v7167_v44  ;;  %v7196_v60 = vld [vmem:[#allocation32_spill] sm:$0xff]  ;;  %v7197_v44 = vld [vmem:[#allocation33_spill] sm:$0xff] }
 0x3d6   :  { %1894 = vmatprep.subr.bf16.mxu0 %v7168_v31  ;;  %1935 = vmatprep.subr.bf16.mxu1 %v7169_v45  ;;  %v7198_v31 = vld [vmem:[#allocation34_spill] sm:$0xff]  ;;  %v7199_v45 = vld [vmem:[#allocation35_spill] sm:$0xff] }
 0x3d9   :  { %1895 = vmatpush1.bf16.msra.mxu0 %v7170_v46  ;;  %1936 = vmatpush1.bf16.msra.mxu1 %v7171_v30  ;;  %v7200_v46 = vld [vmem:[#allocation36_spill] sm:$0xff]  ;;  %v7201_v30 = vld [vmem:[#allocation37_spill] sm:$0xff] }
 0x3da   :  { %1896 = vmatprep.subr.bf16.mxu0 %v7172_v47  ;;  %1937 = vmatprep.subr.bf16.mxu1 %v7173_v51  ;;  %v7202_v47 = vld [vmem:[#allocation38_spill] sm:$0xff]  ;;  %v7203_v51 = vld [vmem:[#allocation39_spill] sm:$0xff] }
 0x3dd   :  { %1897 = vmatpush1.bf16.msra.mxu0 %v7174_v49  ;;  %1938 = vmatpush1.bf16.msra.mxu1 %v7175_v23  ;;  %v7204_v49 = vld [vmem:[#allocation40_spill] sm:$0xff]  ;;  %v7205_v23 = vld [vmem:[#allocation41_spill] sm:$0xff] }
 0x3de   :  { %1898 = vmatprep.subr.bf16.mxu0 %v7176_v50  ;;  %1939 = vmatprep.subr.bf16.mxu1 %v7177_v52  ;;  %v7206_v50 = vld [vmem:[#allocation42_spill] sm:$0xff]  ;;  %v7207_v52 = vld [vmem:[#allocation43_spill] sm:$0xff] }
 0x3e1   :  { %1899 = vmatpush1.bf16.msra.mxu0 %v7178_v53  ;;  %1940 = vmatpush1.bf16.msra.mxu1 %v7179_v54  ;;  %v7208_v53 = vld [vmem:[#allocation44_spill] sm:$0xff]  ;;  %v7209_v54 = vld [vmem:[#allocation45_spill] sm:$0xff] }
 0x3e2   :  { %1900 = vmatprep.subr.bf16.mxu0 %v7180_v55  ;;  %1941 = vmatprep.subr.bf16.mxu1 %v7181_v56  ;;  %v7210_v55 = vld [vmem:[#allocation46_spill] sm:$0xff] }
 0x3e5   :  { %1901 = vmatpush1.bf16.msra.mxu0 %v7182_v57  ;;  %1942 = vmatpush1.bf16.msra.mxu1 %v7183_v58 }
 0x3e6   :  { %1902 = vmatprep.subr.bf16.mxu0 %v7184_v59  ;;  %1943 = vmatprep.subr.bf16.mxu1 %v7185_v62 }
 0x3e9   :  { %1903 = vmatpush1.bf16.msra.mxu0 %v7186_v63  ;;  %1944 = vmatpush1.bf16.msra.mxu1 %v7187_v1 }
 0x3ea   :  { %1904 = vmatprep.subr.bf16.mxu0 %v7188_v2  ;;  %1945 = vmatprep.subr.bf16.mxu1 %v7189_v3 }
 0x3ed   :  { %1905 = vmatpush1.bf16.msra.mxu0 %v7190_v4  ;;  %1946 = vmatpush1.bf16.msra.mxu1 %v7191_v10 }
 0x3ee   :  { %1906 = vmatprep.subr.bf16.mxu0 %v7192_v35  ;;  %1947 = vmatprep.subr.bf16.mxu1 %v7193_v36 }
 0x3f1   :  { %1907 = vmatpush1.bf16.msra.mxu0 %v7194_v38  ;;  %1948 = vmatpush1.bf16.msra.mxu1 %v7195_v17 }
 0x3f2   :  { %1908 = vmatprep.subr.bf16.mxu0 %v7196_v60  ;;  %1949 = vmatprep.subr.bf16.mxu1 %v7197_v44  ;;  %v7233_v44 = vld [vmem:[#allocation83_spill] sm:$0xff] }
 0x3f5   :  { %1909 = vmatpush1.bf16.msra.mxu0 %v7198_v31  ;;  %1950 = vmatpush1.bf16.msra.mxu1 %v7199_v45  ;;  %v7230_v45 = vld [vmem:[#allocation11_spill] sm:$0xff] }
 0x3f6   :  { %1910 = vmatprep.subr.bf16.mxu0 %v7200_v46  ;;  %1951 = vmatprep.subr.bf16.mxu1 %v7201_v30  ;;  %v7211_v46 = vld [vmem:[#allocation47_spill] sm:$0xff]  ;;  %v7212_v30 = vld [vmem:[#allocation48_spill] sm:$0xff] }
 0x3f9   :  { %1911 = vmatpush1.bf16.msra.mxu0 %v7202_v47  ;;  %1952 = vmatpush1.bf16.msra.mxu1 %v7203_v51  ;;  %v7213_v47 = vld [vmem:[#allocation49_spill] sm:$0xff]  ;;  %v7214_v51 = vld [vmem:[#allocation50_spill] sm:$0xff] }
 0x3fa   :  { %1912 = vmatprep.subr.bf16.mxu0 %v7204_v49  ;;  %1953 = vmatprep.subr.bf16.mxu1 %v7205_v23  ;;  %v7215_v49 = vld [vmem:[#allocation51_spill] sm:$0xff]  ;;  %v7216_v23 = vld [vmem:[#allocation52_spill] sm:$0xff] }
 0x3fd   :  { %1913 = vmatpush1.bf16.msra.mxu0 %v7206_v50  ;;  %1954 = vmatpush1.bf16.msra.mxu1 %v7207_v52  ;;  %v7217_v50 = vld [vmem:[#allocation53_spill] sm:$0xff]  ;;  %v7218_v52 = vld [vmem:[#allocation54_spill] sm:$0xff] }
 0x3fe   :  { %1914 = vmatprep.subr.bf16.mxu0 %v7208_v53  ;;  %1955 = vmatprep.subr.bf16.mxu1 %v7209_v54  ;;  %v7219_v53 = vld [vmem:[#allocation55_spill] sm:$0xff]  ;;  %v7220_v54 = vld [vmem:[#allocation56_spill] sm:$0xff] }
 0x401   :  { %1915 = vmatpush1.bf16.msra.mxu0 %v7210_v55  ;;  %1956 = vmatpush1.bf16.msra.mxu1 %v7211_v46  ;;  %v7221_v55 = vld [vmem:[#allocation57_spill] sm:$0xff]  ;;  %v7222_v46 = vld [vmem:[#allocation58_spill] sm:$0xff] }
 0x402   :  { %1916 = vmatprep.subr.bf16.mxu0 %v7212_v30  ;;  %1957 = vmatprep.subr.bf16.mxu1 %v7213_v47  ;;  %v7223_v30 = vld [vmem:[#allocation59_spill] sm:$0xff] }
 0x403   :  { %v5344_v47 = vld [vmem:[#allocation3 + $0x14] ss:$60 sps:$4 sm:$0xff]  }
 0x404   :  { %7224 = vst [vmem:[#allocation73_spill] sm:$0xff] %v5344_v47 }
 0x405   :  { %1917 = vmatpush1.bf16.msra.mxu0 %v7214_v51  ;;  %1958 = vmatpush1.bf16.msra.mxu1 %v7215_v49  ;;  %v5347_v49 = vld [vmem:[#allocation3 + $0x1c] ss:$60 sps:$4 sm:$0xff]   ;;  %v7229_v51 = vld [vmem:[#allocation81_spill] sm:$0xff] }
 0x406   :  { %1918 = vmatprep.subr.bf16.mxu0 %v7216_v23  ;;  %1959 = vmatprep.subr.bf16.mxu1 %v7217_v50  ;;  %7225 = vst [vmem:[#allocation76_spill] sm:$0xff] %v5347_v49  ;;  %v7226_v50 = vld [vmem:[#allocation10_spill] sm:$0xff] }
 0x409   :  { %1919 = vmatpush1.bf16.msra.mxu0 %v7218_v52  ;;  %1960 = vmatpush1.bf16.msra.mxu1 %v7219_v53  ;;  %v7227_v52 = vld [vmem:[#allocation80_spill] sm:$0xff] }
 0x40a   :  { %1920 = vmatprep.subr.bf16.mxu0 %v7220_v54  ;;  %1961 = vmatprep.subr.bf16.mxu1 %v7221_v55  ;;  %v438_v23 = vadd.f32 %v7227_v52, %v7226_v50  ;;  %v7228_v53 = vld [vmem:[#allocation16_spill] sm:$0xff]  ;;  %v7231_v55 = vld [vmem:[#allocation82_spill] sm:$0xff] }
 0x40b   :  { %v511_v54 = vadd.f32 %v7229_v51, %v7228_v53  ;;  %v440_v31 = vadd.f32 %v7231_v55, %v7230_v45 }
 0x40d   :  { %1921 = vmatpush1.bf16.msra.mxu0 %v7222_v46  ;;  %1962 = vmatpush1.bf16.msra.mxu1 %v7223_v30  ;;  %v7232_v46 = vld [vmem:[#allocation12_spill] sm:$0xff] }
 0x40e   :  { %1972 = vmatprep.subr.bf16.mxu0 %v5344_v47  ;;  %2013 = vmatprep.subr.bf16.mxu1 %v5347_v49  ;;  %v513_v30 = vadd.f32 %v7233_v44, %v7232_v46 }
 0x463   :  { %v1705_v60 = vpop.f32.mrb[32].mxu0  ;;  %v1746_v17 = vpop.f32.mrb[32].mxu1 }
 0x464   :  { %v1864_v38 = vadd.f32 %v1705_v60, %v438_v23  ;;  %v1866_v47 = vadd.f32 %v1746_v17, %v511_v54  ;;  %v1707_v36 = vpop.f32.mrb[33].mxu0  ;;  %v1748_v35 = vpop.f32.mrb[33].mxu1 }
 0x465   :  { %v1865_v10 = vadd.f32 %v1707_v36, %v440_v31  ;;  %v1867_v49 = vadd.f32 %v1748_v35, %v513_v30  ;;  %v1709_v4 = vpop.f32.mrb[34].mxu0  ;;  %v1750_v3 = vpop.f32.mrb[34].mxu1 }
 0x466   :  { %v1868_v52 = vmul.f32 0.5, %v1864_v38  ;;  %v1710_v50 = vpop.f32.mrb[35].mxu0  ;;  %v1751_v2 = vpop.f32.mrb[35].mxu1  ;;  %v1870_v55 = vmul.f32 0.5, %v1866_v47 }
 0x467   :  { %v1869_v51 = vmul.f32 0.5, %v1865_v10  ;;  %v5359_v3 = vpop.permute.xlu1 %280 }
 0x468   :  { %3772 = vtanh.f32 %v1868_v52  ;;  %vm282_vm15 = vcmp.eq.s32.totalorder %v5359_v3, 1 }
 0x469   :  { %3774 = vtanh.f32 %v1869_v51  ;;  %vm5380_vm0 = vmpackc.low %vm282_vm15, %vm282_vm15 }
 0x46a   :  { %3776 = vtanh.f32 %v1867_v49 }
 0x46b   :  { %3778 = vtanh.f32 %v1870_v55 }
 0x472   :  { %v3773_v45 = vpop.eup %3772 }
 0x473   :  { %v1874_v44 = vmul.f32 0.5, %v3773_v45  ;;  %v3775_v46 = vpop.eup %3774 }
 0x474   :  { %v1875_v17 = vmul.f32 0.5, %v3775_v46  ;;  %v3777_v60 = vpop.eup %3776 }
 0x475   :  { %v1877_v53 = vadd.f32 0.5, %v1874_v44  ;;  %v3779_v10 = vpop.eup %3778 }
 0x476   :  { %v1878_v23 = vadd.f32 0.5, %v1875_v17  ;;  %v1876_v38 = vmul.f32 0.5, %v3779_v10 }
 0x477   :  { %v1882_v36 = vmul.f32 %v3777_v60, %v1877_v53 }
 0x478   :  { %v1881_v4 = vmul.f32 %v1878_v23, %v5112_v20  ;;  %v1879_v31 = vadd.f32 0.5, %v1876_v38 }
 0x47a   :  { %v1883_v35 = vadd.f32 %v1882_v36, %v1881_v4 }
 0x47c   :  { %3780 = vtanh.f32 %v1883_v35  ;;  %v5365_v2 = vsel %vm282_vm15, %v1883_v35, %v5112_v20 }
 0x486   :  { %v3781_v45 = vpop.eup %3780 }
 0x487   :  { %v1885_v46 = vmul.f32 %v3781_v45, %v1879_v31 }
 0x4a3   :  { %v1787_v30 = vpop.f32.mrb[36].mxu0  ;;  %v1828_v47 = vpop.f32.mrb[36].mxu1 }
 0x4a4   :  { %v1835_v49 = vadd.f32 %v1787_v30, %v4838_v41  ;;  %v1789_v50 = vpop.f32.mrb[37].mxu0  ;;  %v1830_v53 = vpop.f32.mrb[37].mxu1  ;;  %v1837_v23 = vadd.f32 %v1828_v47, %v4853_v61 }
 0x4a5   :  { %v1836_v54 = vadd.f32 %v1789_v50, %v4842_v43  ;;  %v1791_v52 = vpop.f32.mrb[38].mxu0  ;;  %v1832_v51 = vpop.f32.mrb[38].mxu1  ;;  %v1838_v60 = vadd.f32 %v1830_v53, %v4847_v48 }
 0x4a6   :  { %v1839_v55 = vmul.f32 0.5, %v1835_v49  ;;  %v1792_v44 = vpop.f32.mrb[39].mxu0  ;;  %v1833_v17 = vpop.f32.mrb[39].mxu1  ;;  %v1841_v36 = vmul.f32 0.5, %v1837_v23  ;;  %v7240_v23 = vld [vmem:[#allocation64_spill] sm:$0xff] }
 0x4a7   :  { %v1840_v20 = vmul.f32 0.5, %v1836_v54  ;;  %v1886_v17 = vpack.c.bf16 %v1885_v46, %v1885_v46  ;;  %v7239_v46 = vld [vmem:[#allocation63_spill] sm:$0xff] }
 0x4a8   :  { %3782 = vtanh.f32 %v1839_v55 }
 0x4a9   :  { %3784 = vtanh.f32 %v1840_v20 }
 0x4aa   :  { %3786 = vtanh.f32 %v1838_v60 }
 0x4ab   :  { %3788 = vtanh.f32 %v1841_v36  ;;  %v7241_v36 = vld [vmem:[#allocation65_spill] sm:$0xff] }
 0x4b2   :  { %v3783_v4 = vpop.eup %3782 }
 0x4b3   :  { %v1845_v35 = vmul.f32 0.5, %v3783_v4  ;;  %v3785_v10 = vpop.eup %3784  ;;  %v7242_v4 = vld [vmem:[#allocation66_spill] sm:$0xff] }
 0x4b4   :  { %v1846_v31 = vmul.f32 0.5, %v3785_v10  ;;  %v3787_v45 = vpop.eup %3786  ;;  %v7244_v10 = vld [vmem:[#allocation68_spill] sm:$0xff] }
 0x4b5   :  { %v1848_v38 = vadd.f32 0.5, %v1845_v35  ;;  %v3789_v47 = vpop.eup %3788  ;;  %v7243_v35 = vld [vmem:[#allocation67_spill] sm:$0xff] }
 0x4b6   :  { %v1849_v30 = vadd.f32 0.5, %v1846_v31  ;;  %v1847_v52 = vmul.f32 0.5, %v3789_v47  ;;  %v5434_v31 = vld [vmem:[#allocation3 + $0x44c] ss:$60 sps:$4 sm:$0xff]   ;;  %v5452_v47 = vld [vmem:[#allocation3 + $0x4c0] ss:$60 sps:$4 sm:$0xff]  }
 0x4b7   :  { %v1853_v49 = vmul.f32 %v3787_v45, %v1848_v38  ;;  %v7245_v38 = vld [vmem:[#allocation69_spill] sm:$0xff]  ;;  %7246 = vst [vmem:[#allocation77_spill] sm:$0xff] %v5434_v31  ;;  %v5437_v45 = vld [vmem:[#allocation3 + $0x454] ss:$60 sps:$4 sm:$0xff]   ;;  %7252 = vst [vmem:[#allocation79_spill] sm:$0xff] %v5452_v47 }
 0x4b8   :  { %v1852_v50 = vmul.f32 %v1849_v30, %v5123_v33  ;;  %v1850_v51 = vadd.f32 0.5, %v1847_v52  ;;  %7247 = vst [vmem:[#allocation84_spill] sm:$0xff] %v5437_v45  ;;  %v5440_v30 = vld [vmem:[#allocation3 + $0x448] ss:$60 sps:$4 sm:$0xff]  }
 0x4b9   :  { %7248 = vst [vmem:[#allocation91_spill] sm:$0xff] %v5440_v30  ;;  %v5455_v52 = vld [vmem:[#allocation3 + $0x4c8] ss:$60 sps:$4 sm:$0xff]  }
 0x4ba   :  { %v1854_v54 = vadd.f32 %v1853_v49, %v1852_v50  ;;  %v5443_v49 = vld [vmem:[#allocation3 + $0x450] ss:$60 sps:$4 sm:$0xff]   ;;  %v5446_v50 = vld [vmem:[#allocation3 + $0x4c4] ss:$60 sps:$4 sm:$0xff]   ;;  %7253 = vst [vmem:[#allocation85_spill] sm:$0xff] %v5455_v52 }
 0x4bb   :  { %7249 = vst [vmem:[#allocation74_spill] sm:$0xff] %v5443_v49  ;;  %7250 = vst [vmem:[#allocation75_spill] sm:$0xff] %v5446_v50 }
 0x4bc   :  { %3790 = vtanh.f32 %v1854_v54  ;;  %v5375_v53 = vsel %vm276_vm13, %v1854_v54, %v5123_v33  ;;  %v5394_v33 = vsel %vm5380_vm0, %v1886_v17, %v5140_v13  ;;  %v7238_v13 = vld [vmem:[#allocation62_spill] sm:$0xff]  ;;  %v5467_v17 = vld [vmem:[#allocation3 + $0x540] ss:$60 sps:$4 sm:$0xff]  }
 0x4bd   :  { %v5449_v54 = vld [vmem:[#allocation3 + $0x4cc] ss:$60 sps:$4 sm:$0xff]   ;;  %7257 = vst [vmem:[#allocation98_spill] sm:$0xff] %v5467_v17 }
 0x4be   :  { %7251 = vst [vmem:[#allocation78_spill] sm:$0xff] %v5449_v54 }
 0x4c6   :  { %v3791_v55 = vpop.eup %3790 }
 0x4c7   :  { %v1856_v44 = vmul.f32 %v3791_v55, %v1850_v51  ;;  %v5458_v51 = vld [vmem:[#allocation3 + $0x53c] ss:$60 sps:$4 sm:$0xff]   ;;  %v5461_v55 = vld [vmem:[#allocation3 + $0x544] ss:$60 sps:$4 sm:$0xff]  }
 0x4c8   :  { %7254 = vst [vmem:[#allocation90_spill] sm:$0xff] %v5458_v51  ;;  %7255 = vst [vmem:[#allocation94_spill] sm:$0xff] %v5461_v55 }
 0x4c9   :  { %v1857_v20 = vpack.c.bf16 %v1856_v44, %v1856_v44  ;;  %v5464_v44 = vld [vmem:[#allocation3 + $0x538] ss:$60 sps:$4 sm:$0xff]  }
 0x4ca   :  { %7256 = vst [vmem:[#allocation95_spill] sm:$0xff] %v5464_v44 }
 0x4cb   :  { %v5387_v21 = vsel %vm5128_vm14, %v1857_v20, %v5135_v7  ;;  %v7237_v7 = vld [vmem:[#allocation61_spill] sm:$0xff]  ;;  %v5470_v20 = vld [vmem:[#allocation3 + $0x5b4] ss:$60 sps:$4 sm:$0xff]  }
 0x4cc   :  { %1922 = vmatprep.mubr.bf16.mxu0 %v5387_v21  ;;  %1963 = vmatprep.mubr.bf16.mxu1 %v5387_v21  ;;  %7258 = vst [vmem:[#allocation99_spill] sm:$0xff] %v5470_v20 }
 0x4cd   :  { %1923 = vmatmul.mubr.bf16.vlgmr.msra.gmra.mrb[40].mxu0 %v5394_v33  ;;  %1964 = vmatmul.mubr.bf16.vlgmr.msra.gmra.mrb[40].mxu1 %v5394_v33 }
 0x4ce   :  { %1973 = vmatpush1.bf16.msra.mxu0 %v5146_v18  ;;  %2014 = vmatpush1.bf16.msra.mxu1 %v5149_v39 }
 0x4cf   :  { %2004 = vmatprep.mubr.bf16.mxu0 %v5387_v21  ;;  %2045 = vmatprep.mubr.bf16.mxu1 %v5387_v21 }
 0x4d0   :  { %1974 = vmatprep.subr.bf16.mxu0 %v5154_v42  ;;  %2015 = vmatprep.subr.bf16.mxu1 %v5157_v14 }
 0x4d2   :  { %1975 = vmatpush1.bf16.msra.mxu0 %v5160_v5  ;;  %2016 = vmatpush1.bf16.msra.mxu1 %v5163_v28 }
 0x4d3   :  { %1976 = vmatprep.subr.bf16.mxu0 %v5166_v8  ;;  %2017 = vmatprep.subr.bf16.mxu1 %v5169_v32 }
 0x4d6   :  { %1977 = vmatpush1.bf16.msra.mxu0 %v5172_v37  ;;  %2018 = vmatpush1.bf16.msra.mxu1 %v5175_v11 }
 0x4d7   :  { %1978 = vmatprep.subr.bf16.mxu0 %v5178_v12  ;;  %2019 = vmatprep.subr.bf16.mxu1 %v5181_v40 }
 0x4da   :  { %1979 = vmatpush1.bf16.msra.mxu0 %v5184_v22  ;;  %2020 = vmatpush1.bf16.msra.mxu1 %v5187_v25 }
 0x4db   :  { %1980 = vmatprep.subr.bf16.mxu0 %v5190_v34  ;;  %2021 = vmatprep.subr.bf16.mxu1 %v5193_v16 }
 0x4de   :  { %1981 = vmatpush1.bf16.msra.mxu0 %v5196_v15  ;;  %2022 = vmatpush1.bf16.msra.mxu1 %v5199_v6 }
 0x4df   :  { %1982 = vmatprep.subr.bf16.mxu0 %v7236_v24  ;;  %2023 = vmatprep.subr.bf16.mxu1 %v7237_v7 }
 0x4e2   :  { %1983 = vmatpush1.bf16.msra.mxu0 %v7238_v13  ;;  %2024 = vmatpush1.bf16.msra.mxu1 %v7239_v46 }
 0x4e3   :  { %1984 = vmatprep.subr.bf16.mxu0 %v7240_v23  ;;  %2025 = vmatprep.subr.bf16.mxu1 %v7241_v36 }
 0x4e6   :  { %1985 = vmatpush1.bf16.msra.mxu0 %v7242_v4  ;;  %2026 = vmatpush1.bf16.msra.mxu1 %v7243_v35 }
 0x4e7   :  { %1986 = vmatprep.subr.bf16.mxu0 %v7244_v10  ;;  %2027 = vmatprep.subr.bf16.mxu1 %v7245_v38 }
 0x4ea   :  { %1987 = vmatpush1.bf16.msra.mxu0 %v5232_v9  ;;  %2028 = vmatpush1.bf16.msra.mxu1 %v5235_v19 }
 0x4eb   :  { %1988 = vmatprep.subr.bf16.mxu0 %v5238_v26  ;;  %2029 = vmatprep.subr.bf16.mxu1 %v5241_v0 }
 0x4ee   :  { %1989 = vmatpush1.bf16.msra.mxu0 %v5244_v27  ;;  %2030 = vmatpush1.bf16.msra.mxu1 %v5247_v29 }
 0x4ef   :  { %1990 = vmatprep.subr.bf16.mxu0 %v5434_v31  ;;  %2031 = vmatprep.subr.bf16.mxu1 %v5437_v45 }
 0x4f2   :  { %1991 = vmatpush1.bf16.msra.mxu0 %v5440_v30  ;;  %2032 = vmatpush1.bf16.msra.mxu1 %v5443_v49 }
 0x4f3   :  { %1992 = vmatprep.subr.bf16.mxu0 %v5446_v50  ;;  %2033 = vmatprep.subr.bf16.mxu1 %v5449_v54  ;;  %v7340_v50 = vld [vmem:[#allocation89_spill] sm:$0xff] }
 0x4f6   :  { %1993 = vmatpush1.bf16.msra.mxu0 %v5452_v47  ;;  %2034 = vmatpush1.bf16.msra.mxu1 %v5455_v52  ;;  %v5473_v52 = vld [vmem:[#allocation3 + $0x5bc] ss:$60 sps:$4 sm:$0xff]  }
 0x4f7   :  { %1994 = vmatprep.subr.bf16.mxu0 %v5458_v51  ;;  %2035 = vmatprep.subr.bf16.mxu1 %v5461_v55  ;;  %7259 = vst [vmem:[#allocation100_spill] sm:$0xff] %v5473_v52  ;;  %v5476_v51 = vld [vmem:[#allocation3 + $0x5b0] ss:$60 sps:$4 sm:$0xff]   ;;  %v5479_v55 = vld [vmem:[#allocation3 + $0x5b8] ss:$60 sps:$4 sm:$0xff]  }
 0x4f8   :  { %7260 = vst [vmem:[#allocation101_spill] sm:$0xff] %v5476_v51  ;;  %7261 = vst [vmem:[#allocation106_spill] sm:$0xff] %v5479_v55  ;;  %v7337_v47 = vld [vmem:[#allocation11_spill] sm:$0xff] }
 0x4fa   :  { %1995 = vmatpush1.bf16.msra.mxu0 %v5464_v44  ;;  %2036 = vmatpush1.bf16.msra.mxu1 %v5467_v17  ;;  %v5482_v44 = vld [vmem:[#allocation3 + $0x62c] ss:$60 sps:$4 sm:$0xff]   ;;  %v5485_v17 = vld [vmem:[#allocation3 + $0x634] ss:$60 sps:$4 sm:$0xff]  }
 0x4fb   :  { %1996 = vmatprep.subr.bf16.mxu0 %v5470_v20  ;;  %2037 = vmatprep.subr.bf16.mxu1 %v5473_v52  ;;  %7262 = vst [vmem:[#allocation107_spill] sm:$0xff] %v5482_v44  ;;  %7263 = vst [vmem:[#allocation110_spill] sm:$0xff] %v5485_v17  ;;  %v5488_v20 = vld [vmem:[#allocation3 + $0x628] ss:$60 sps:$4 sm:$0xff]   ;;  %v5491_v52 = vld [vmem:[#allocation3 + $0x630] ss:$60 sps:$4 sm:$0xff]  }
 0x4fc   :  { %7264 = vst [vmem:[#allocation111_spill] sm:$0xff] %v5488_v20  ;;  %7265 = vst [vmem:[#allocation114_spill] sm:$0xff] %v5491_v52 }
 0x4fe   :  { %1997 = vmatpush1.bf16.msra.mxu0 %v5476_v51  ;;  %2038 = vmatpush1.bf16.msra.mxu1 %v5479_v55  ;;  %v5494_v51 = vld [vmem:[#allocation3 + $0x6a4] ss:$60 sps:$4 sm:$0xff]   ;;  %v5497_v55 = vld [vmem:[#allocation3 + $0x6ac] ss:$60 sps:$4 sm:$0xff]  }
 0x4ff   :  { %1998 = vmatprep.subr.bf16.mxu0 %v5482_v44  ;;  %2039 = vmatprep.subr.bf16.mxu1 %v5485_v17  ;;  %7266 = vst [vmem:[#allocation115_spill] sm:$0xff] %v5494_v51  ;;  %7267 = vst [vmem:[#allocation116_spill] sm:$0xff] %v5497_v55  ;;  %v5500_v44 = vld [vmem:[#allocation3 + $0x6a0] ss:$60 sps:$4 sm:$0xff]   ;;  %v5503_v17 = vld [vmem:[#allocation3 + $0x6a8] ss:$60 sps:$4 sm:$0xff]  }
 0x500   :  { %7268 = vst [vmem:[#allocation117_spill] sm:$0xff] %v5500_v44  ;;  %7269 = vst [vmem:[#allocation118_spill] sm:$0xff] %v5503_v17 }
 0x502   :  { %1999 = vmatpush1.bf16.msra.mxu0 %v5488_v20  ;;  %2040 = vmatpush1.bf16.msra.mxu1 %v5491_v52  ;;  %v5506_v20 = vld [vmem:[#allocation3 + $0x71c] ss:$60 sps:$4 sm:$0xff]   ;;  %v5509_v52 = vld [vmem:[#allocation3 + $0x724] ss:$60 sps:$4 sm:$0xff]  }
 0x503   :  { %2000 = vmatprep.subr.bf16.mxu0 %v5494_v51  ;;  %2041 = vmatprep.subr.bf16.mxu1 %v5497_v55  ;;  %7270 = vst [vmem:[#allocation119_spill] sm:$0xff] %v5506_v20  ;;  %7271 = vst [vmem:[#allocation120_spill] sm:$0xff] %v5509_v52  ;;  %v5512_v51 = vld [vmem:[#allocation3 + $0x718] ss:$60 sps:$4 sm:$0xff]   ;;  %v5515_v55 = vld [vmem:[#allocation3 + $0x720] ss:$60 sps:$4 sm:$0xff]  }
 0x504   :  { %7272 = vst [vmem:[#allocation17_spill] sm:$0xff] %v5512_v51  ;;  %7273 = vst [vmem:[#allocation18_spill] sm:$0xff] %v5515_v55  ;;  %v7364_v60 = vld [vmem:[#allocation111_spill] sm:$0xff] }
 0x506   :  { %2001 = vmatpush1.bf16.msra.mxu0 %v5500_v44  ;;  %2042 = vmatpush1.bf16.msra.mxu1 %v5503_v17  ;;  %v5518_v44 = vld [vmem:[#allocation3 + $0x4] ss:$60 sps:$4 sm:$0xff]   ;;  %v5521_v17 = vld [vmem:[#allocation3 + $0xc] ss:$60 sps:$4 sm:$0xff]  }
 0x507   :  { %2002 = vmatprep.subr.bf16.mxu0 %v5506_v20  ;;  %2043 = vmatprep.subr.bf16.mxu1 %v5509_v52  ;;  %7274 = vst [vmem:[#allocation19_spill] sm:$0xff] %v5518_v44  ;;  %7275 = vst [vmem:[#allocation20_spill] sm:$0xff] %v5521_v17  ;;  %v5526_v52 = vld [vmem:[#allocation3] ss:$60 sps:$4 sm:$0xff]  }
 0x508   :  { %7276 = vst [vmem:[#allocation21_spill] sm:$0xff] %v5526_v52  ;;  %v5541_v20 = vld [vmem:[#allocation3 + $0x80] ss:$60 sps:$4 sm:$0xff]  }
 0x509   :  { %7281 = vst [vmem:[#allocation82_spill] sm:$0xff] %v5541_v20 }
 0x50a   :  { %2003 = vmatpush1.bf16.msra.mxu0 %v5512_v51  ;;  %2044 = vmatpush1.bf16.msra.mxu1 %v5515_v55  ;;  %v5529_v51 = vld [vmem:[#allocation3 + $0x8] ss:$60 sps:$4 sm:$0xff]   ;;  %v5532_v55 = vld [vmem:[#allocation3 + $0x7c] ss:$60 sps:$4 sm:$0xff]  }
 0x50b   :  { %2109 = vmatprep.subr.bf16.mxu0 %v5518_v44  ;;  %2150 = vmatprep.subr.bf16.mxu1 %v5521_v17  ;;  %7277 = vst [vmem:[#allocation22_spill] sm:$0xff] %v5529_v51  ;;  %7278 = vst [vmem:[#allocation23_spill] sm:$0xff] %v5532_v55  ;;  %v5535_v44 = vld [vmem:[#allocation3 + $0x84] ss:$60 sps:$4 sm:$0xff]   ;;  %v5538_v17 = vld [vmem:[#allocation3 + $0x78] ss:$60 sps:$4 sm:$0xff]  }
 0x50c   :  { %7279 = vst [vmem:[#allocation80_spill] sm:$0xff] %v5535_v44  ;;  %7280 = vst [vmem:[#allocation81_spill] sm:$0xff] %v5538_v17 }
 0x50d   :  { %2005 = vmatmul.mubr.bf16.vlgmr.msra.gmra.mrb[44].mxu0 %v5394_v33  ;;  %2046 = vmatmul.mubr.bf16.vlgmr.msra.gmra.mrb[44].mxu1 %v5394_v33 }
 0x50e   :  { %2110 = vmatpush1.bf16.msra.mxu0 %v5526_v52  ;;  %2151 = vmatpush1.bf16.msra.mxu1 %v5529_v51  ;;  %v5544_v52 = vld [vmem:[#allocation3 + $0xf4] ss:$60 sps:$4 sm:$0xff]   ;;  %v5547_v51 = vld [vmem:[#allocation3 + $0xfc] ss:$60 sps:$4 sm:$0xff]  }
 0x50f   :  { %2111 = vmatprep.subr.bf16.mxu0 %v5532_v55  ;;  %2152 = vmatprep.subr.bf16.mxu1 %v5535_v44  ;;  %7282 = vst [vmem:[#allocation83_spill] sm:$0xff] %v5544_v52  ;;  %7283 = vst [vmem:[#allocation60_spill] sm:$0xff] %v5547_v51  ;;  %v5550_v55 = vld [vmem:[#allocation3 + $0xf0] ss:$60 sps:$4 sm:$0xff]   ;;  %v5553_v44 = vld [vmem:[#allocation3 + $0xf8] ss:$60 sps:$4 sm:$0xff]  }
 0x510   :  { %7284 = vst [vmem:[#allocation61_spill] sm:$0xff] %v5550_v55  ;;  %7285 = vst [vmem:[#allocation62_spill] sm:$0xff] %v5553_v44 }
 0x512   :  { %2112 = vmatpush1.bf16.msra.mxu0 %v5538_v17  ;;  %2153 = vmatpush1.bf16.msra.mxu1 %v5541_v20  ;;  %v5556_v17 = vld [vmem:[#allocation3 + $0x16c] ss:$60 sps:$4 sm:$0xff]   ;;  %v5559_v20 = vld [vmem:[#allocation3 + $0x174] ss:$60 sps:$4 sm:$0xff]  }
 0x513   :  { %2113 = vmatprep.subr.bf16.mxu0 %v5544_v52  ;;  %2154 = vmatprep.subr.bf16.mxu1 %v5547_v51  ;;  %7286 = vst [vmem:[#allocation63_spill] sm:$0xff] %v5556_v17  ;;  %7287 = vst [vmem:[#allocation64_spill] sm:$0xff] %v5559_v20  ;;  %v5562_v52 = vld [vmem:[#allocation3 + $0x168] ss:$60 sps:$4 sm:$0xff]   ;;  %v5565_v51 = vld [vmem:[#allocation3 + $0x170] ss:$60 sps:$4 sm:$0xff]  }
 0x514   :  { %7288 = vst [vmem:[#allocation65_spill] sm:$0xff] %v5562_v52  ;;  %7289 = vst [vmem:[#allocation66_spill] sm:$0xff] %v5565_v51 }
 0x516   :  { %2114 = vmatpush1.bf16.msra.mxu0 %v5550_v55  ;;  %2155 = vmatpush1.bf16.msra.mxu1 %v5553_v44  ;;  %v5568_v55 = vld [vmem:[#allocation3 + $0x1e4] ss:$60 sps:$4 sm:$0xff]   ;;  %v5571_v44 = vld [vmem:[#allocation3 + $0x1ec] ss:$60 sps:$4 sm:$0xff]  }
 0x517   :  { %2115 = vmatprep.subr.bf16.mxu0 %v5556_v17  ;;  %2156 = vmatprep.subr.bf16.mxu1 %v5559_v20  ;;  %7290 = vst [vmem:[#allocation67_spill] sm:$0xff] %v5568_v55  ;;  %7291 = vst [vmem:[#allocation68_spill] sm:$0xff] %v5571_v44  ;;  %v5574_v17 = vld [vmem:[#allocation3 + $0x1e0] ss:$60 sps:$4 sm:$0xff]   ;;  %v5577_v20 = vld [vmem:[#allocation3 + $0x1e8] ss:$60 sps:$4 sm:$0xff]  }
 0x518   :  { %7292 = vst [vmem:[#allocation69_spill] sm:$0xff] %v5574_v17  ;;  %7293 = vst [vmem:[#allocation121_spill] sm:$0xff] %v5577_v20 }
 0x51a   :  { %2116 = vmatpush1.bf16.msra.mxu0 %v5562_v52  ;;  %2157 = vmatpush1.bf16.msra.mxu1 %v5565_v51  ;;  %v5580_v52 = vld [vmem:[#allocation3 + $0x25c] ss:$60 sps:$4 sm:$0xff]  }
 0x51b   :  { %2117 = vmatprep.subr.bf16.mxu0 %v5568_v55  ;;  %2158 = vmatprep.subr.bf16.mxu1 %v5571_v44  ;;  %7294 = vst [vmem:[#allocation122_spill] sm:$0xff] %v5580_v52  ;;  %v7297_v44 = vld [vmem:[#allocation26_spill] sm:$0xff]  ;;  %v7336_v51 = vld [vmem:[#allocation87_spill] sm:$0xff] }
 0x51e   :  { %2118 = vmatpush1.bf16.msra.mxu0 %v5574_v17  ;;  %2159 = vmatpush1.bf16.msra.mxu1 %v5577_v20  ;;  %v7295_v17 = vld [vmem:[#allocation24_spill] sm:$0xff]  ;;  %v7296_v20 = vld [vmem:[#allocation25_spill] sm:$0xff] }
 0x51f   :  { %2119 = vmatprep.subr.bf16.mxu0 %v5580_v52  ;;  %2160 = vmatprep.subr.bf16.mxu1 %v7181_v56  ;;  %v7298_v52 = vld [vmem:[#allocation27_spill] sm:$0xff]  ;;  %v7299_v56 = vld [vmem:[#allocation28_spill] sm:$0xff] }
 0x522   :  { %2120 = vmatpush1.bf16.msra.mxu0 %v7182_v57  ;;  %2161 = vmatpush1.bf16.msra.mxu1 %v7183_v58  ;;  %v7300_v57 = vld [vmem:[#allocation29_spill] sm:$0xff]  ;;  %v7301_v58 = vld [vmem:[#allocation30_spill] sm:$0xff] }
 0x523   :  { %2121 = vmatprep.subr.bf16.mxu0 %v7184_v59  ;;  %2162 = vmatprep.subr.bf16.mxu1 %v7185_v62  ;;  %v7302_v59 = vld [vmem:[#allocation31_spill] sm:$0xff]  ;;  %v7303_v62 = vld [vmem:[#allocation32_spill] sm:$0xff] }
 0x526   :  { %2122 = vmatpush1.bf16.msra.mxu0 %v7186_v63  ;;  %2163 = vmatpush1.bf16.msra.mxu1 %v7187_v1  ;;  %v7304_v63 = vld [vmem:[#allocation33_spill] sm:$0xff]  ;;  %v7305_v1 = vld [vmem:[#allocation34_spill] sm:$0xff] }
 0x527   :  { %2123 = vmatprep.subr.bf16.mxu0 %v7295_v17  ;;  %2164 = vmatprep.subr.bf16.mxu1 %v7296_v20  ;;  %v7306_v17 = vld [vmem:[#allocation35_spill] sm:$0xff]  ;;  %v7307_v20 = vld [vmem:[#allocation36_spill] sm:$0xff] }
 0x52a   :  { %2124 = vmatpush1.bf16.msra.mxu0 %v7297_v44  ;;  %2165 = vmatpush1.bf16.msra.mxu1 %v7298_v52  ;;  %v7308_v44 = vld [vmem:[#allocation37_spill] sm:$0xff]  ;;  %v7309_v52 = vld [vmem:[#allocation38_spill] sm:$0xff] }
 0x52b   :  { %2125 = vmatprep.subr.bf16.mxu0 %v7299_v56  ;;  %2166 = vmatprep.subr.bf16.mxu1 %v7300_v57  ;;  %v7310_v56 = vld [vmem:[#allocation39_spill] sm:$0xff]  ;;  %v7311_v57 = vld [vmem:[#allocation40_spill] sm:$0xff] }
 0x52e   :  { %2126 = vmatpush1.bf16.msra.mxu0 %v7301_v58  ;;  %2167 = vmatpush1.bf16.msra.mxu1 %v7302_v59  ;;  %v7312_v58 = vld [vmem:[#allocation41_spill] sm:$0xff]  ;;  %v7313_v59 = vld [vmem:[#allocation42_spill] sm:$0xff] }
 0x52f   :  { %2127 = vmatprep.subr.bf16.mxu0 %v7303_v62  ;;  %2168 = vmatprep.subr.bf16.mxu1 %v7304_v63  ;;  %v7314_v62 = vld [vmem:[#allocation43_spill] sm:$0xff]  ;;  %v7315_v63 = vld [vmem:[#allocation44_spill] sm:$0xff] }
 0x532   :  { %2128 = vmatpush1.bf16.msra.mxu0 %v7305_v1  ;;  %2169 = vmatpush1.bf16.msra.mxu1 %v7306_v17  ;;  %v7316_v1 = vld [vmem:[#allocation45_spill] sm:$0xff]  ;;  %v7317_v17 = vld [vmem:[#allocation46_spill] sm:$0xff] }
 0x533   :  { %2129 = vmatprep.subr.bf16.mxu0 %v7307_v20  ;;  %2170 = vmatprep.subr.bf16.mxu1 %v7308_v44  ;;  %v7318_v20 = vld [vmem:[#allocation47_spill] sm:$0xff]  ;;  %v7319_v44 = vld [vmem:[#allocation48_spill] sm:$0xff] }
 0x536   :  { %2130 = vmatpush1.bf16.msra.mxu0 %v7309_v52  ;;  %2171 = vmatpush1.bf16.msra.mxu1 %v7310_v56  ;;  %v7320_v52 = vld [vmem:[#allocation49_spill] sm:$0xff]  ;;  %v7321_v56 = vld [vmem:[#allocation50_spill] sm:$0xff] }
 0x537   :  { %2131 = vmatprep.subr.bf16.mxu0 %v7311_v57  ;;  %2172 = vmatprep.subr.bf16.mxu1 %v7312_v58  ;;  %v7322_v57 = vld [vmem:[#allocation51_spill] sm:$0xff]  ;;  %v7323_v58 = vld [vmem:[#allocation52_spill] sm:$0xff] }
 0x53a   :  { %2132 = vmatpush1.bf16.msra.mxu0 %v7313_v59  ;;  %2173 = vmatpush1.bf16.msra.mxu1 %v7314_v62  ;;  %v7324_v59 = vld [vmem:[#allocation53_spill] sm:$0xff]  ;;  %v7325_v62 = vld [vmem:[#allocation54_spill] sm:$0xff] }
 0x53b   :  { %2133 = vmatprep.subr.bf16.mxu0 %v7315_v63  ;;  %2174 = vmatprep.subr.bf16.mxu1 %v7316_v1  ;;  %v7326_v63 = vld [vmem:[#allocation55_spill] sm:$0xff]  ;;  %v7327_v1 = vld [vmem:[#allocation56_spill] sm:$0xff] }
 0x53e   :  { %2134 = vmatpush1.bf16.msra.mxu0 %v7317_v17  ;;  %2175 = vmatpush1.bf16.msra.mxu1 %v7318_v20  ;;  %v7328_v17 = vld [vmem:[#allocation57_spill] sm:$0xff]  ;;  %v7329_v20 = vld [vmem:[#allocation58_spill] sm:$0xff] }
 0x53f   :  { %2135 = vmatprep.subr.bf16.mxu0 %v7319_v44  ;;  %2176 = vmatprep.subr.bf16.mxu1 %v7320_v52  ;;  %v7330_v44 = vld [vmem:[#allocation59_spill] sm:$0xff]  ;;  %v7331_v52 = vld [vmem:[#allocation73_spill] sm:$0xff] }
 0x542   :  { %2136 = vmatpush1.bf16.msra.mxu0 %v7321_v56  ;;  %2177 = vmatpush1.bf16.msra.mxu1 %v7322_v57  ;;  %v7332_v56 = vld [vmem:[#allocation76_spill] sm:$0xff]  ;;  %v7333_v57 = vld [vmem:[#allocation10_spill] sm:$0xff] }
 0x543   :  { %2137 = vmatprep.subr.bf16.mxu0 %v7323_v58  ;;  %2178 = vmatprep.subr.bf16.mxu1 %v7324_v59  ;;  %v7334_v58 = vld [vmem:[#allocation86_spill] sm:$0xff]  ;;  %v7335_v59 = vld [vmem:[#allocation16_spill] sm:$0xff] }
 0x544   :  { %v444_v55 = vadd.f32 %v7334_v58, %v7333_v57 }
 0x546   :  { %2138 = vmatpush1.bf16.msra.mxu0 %v7325_v62  ;;  %2179 = vmatpush1.bf16.msra.mxu1 %v7326_v63  ;;  %v517_v62 = vadd.f32 %v7336_v51, %v7335_v59  ;;  %v7338_v63 = vld [vmem:[#allocation88_spill] sm:$0xff] }
 0x547   :  { %2139 = vmatprep.subr.bf16.mxu0 %v7327_v1  ;;  %2180 = vmatprep.subr.bf16.mxu1 %v7328_v17  ;;  %v446_v54 = vadd.f32 %v7338_v63, %v7337_v47  ;;  %v7339_v1 = vld [vmem:[#allocation12_spill] sm:$0xff] }
 0x548   :  { %v519_v17 = vadd.f32 %v7340_v50, %v7339_v1 }
 0x54a   :  { %2140 = vmatpush1.bf16.msra.mxu0 %v7329_v20  ;;  %2181 = vmatpush1.bf16.msra.mxu1 %v7330_v44 }
 0x54b   :  { %2191 = vmatprep.subr.bf16.mxu0 %v7331_v52  ;;  %2232 = vmatprep.subr.bf16.mxu1 %v7332_v56 }
 0x5a0   :  { %v1924_v49 = vpop.f32.mrb[40].mxu0  ;;  %v1965_v20 = vpop.f32.mrb[40].mxu1 }
 0x5a1   :  { %v2083_v30 = vadd.f32 %v1924_v49, %v444_v55  ;;  %v2085_v44 = vadd.f32 %v1965_v20, %v517_v62  ;;  %v1926_v45 = vpop.f32.mrb[41].mxu0  ;;  %v1967_v52 = vpop.f32.mrb[41].mxu1 }
 0x5a2   :  { %v2084_v31 = vadd.f32 %v1926_v45, %v446_v54  ;;  %v2086_v56 = vadd.f32 %v1967_v52, %v519_v17  ;;  %v1928_v29 = vpop.f32.mrb[42].mxu0  ;;  %v1969_v27 = vpop.f32.mrb[42].mxu1 }
 0x5a3   :  { %v2087_v58 = vmul.f32 0.5, %v2083_v30  ;;  %v1929_v57 = vpop.f32.mrb[43].mxu0  ;;  %v1970_v0 = vpop.f32.mrb[43].mxu1  ;;  %v2089_v63 = vmul.f32 0.5, %v2085_v44 }
 0x5a4   :  { %v2088_v51 = vmul.f32 0.5, %v2084_v31  ;;  %v5637_v27 = vpop.permute.xlu0 %286 }
 0x5a5   :  { %3792 = vtanh.f32 %v2087_v58  ;;  %vm288_vm1 = vcmp.eq.s32.totalorder %v5637_v27, 1 }
 0x5a6   :  { %3794 = vtanh.f32 %v2088_v51  ;;  %vm5658_vm2 = vmpackc.low %vm288_vm1, %vm288_vm1 }
 0x5a7   :  { %3796 = vtanh.f32 %v2086_v56 }
 0x5a8   :  { %3798 = vtanh.f32 %v2089_v63 }
 0x5af   :  { %v3793_v47 = vpop.eup %3792 }
 0x5b0   :  { %v2093_v50 = vmul.f32 0.5, %v3793_v47  ;;  %v3795_v1 = vpop.eup %3794 }
 0x5b1   :  { %v2094_v49 = vmul.f32 0.5, %v3795_v1  ;;  %v3797_v55 = vpop.eup %3796 }
 0x5b2   :  { %v2096_v59 = vadd.f32 0.5, %v2093_v50  ;;  %v3799_v31 = vpop.eup %3798 }
 0x5b3   :  { %v2097_v62 = vadd.f32 0.5, %v2094_v49  ;;  %v2095_v54 = vmul.f32 0.5, %v3799_v31 }
 0x5b4   :  { %v2101_v45 = vmul.f32 %v3797_v55, %v2096_v59 }
 0x5b5   :  { %v2100_v29 = vmul.f32 %v2097_v62, %v5365_v2  ;;  %v2098_v47 = vadd.f32 0.5, %v2095_v54 }
 0x5b7   :  { %v2102_v30 = vadd.f32 %v2101_v45, %v2100_v29 }
 0x5b9   :  { %3800 = vtanh.f32 %v2102_v30  ;;  %v5643_v0 = vsel %vm288_vm1, %v2102_v30, %v5365_v2 }
 0x5c3   :  { %v3801_v52 = vpop.eup %3800 }
 0x5c4   :  { %v2104_v56 = vmul.f32 %v3801_v52, %v2098_v47 }
 0x5e0   :  { %v2006_v57 = vpop.f32.mrb[44].mxu0  ;;  %v2047_v59 = vpop.f32.mrb[44].mxu1 }
 0x5e1   :  { %v2054_v1 = vadd.f32 %v2006_v57, %v4838_v41  ;;  %v2008_v17 = vpop.f32.mrb[45].mxu0  ;;  %v2049_v20 = vpop.f32.mrb[45].mxu1  ;;  %v2056_v62 = vadd.f32 %v2047_v59, %v4853_v61 }
 0x5e2   :  { %v2055_v44 = vadd.f32 %v2008_v17, %v4842_v43  ;;  %v2010_v58 = vpop.f32.mrb[46].mxu0  ;;  %v2051_v51 = vpop.f32.mrb[46].mxu1  ;;  %v2057_v55 = vadd.f32 %v2049_v20, %v4847_v48 }
 0x5e3   :  { %v2058_v63 = vmul.f32 0.5, %v2054_v1  ;;  %v2011_v50 = vpop.f32.mrb[47].mxu0  ;;  %v2052_v49 = vpop.f32.mrb[47].mxu1  ;;  %v2060_v45 = vmul.f32 0.5, %v2056_v62  ;;  %v7378_v62 = vld [vmem:[#allocation23_spill] sm:$0xff] }
 0x5e4   :  { %v2059_v2 = vmul.f32 0.5, %v2055_v44  ;;  %v2105_v49 = vpack.c.bf16 %v2104_v56, %v2104_v56  ;;  %v7377_v56 = vld [vmem:[#allocation22_spill] sm:$0xff] }
 0x5e5   :  { %3802 = vtanh.f32 %v2058_v63 }
 0x5e6   :  { %3804 = vtanh.f32 %v2059_v2 }
 0x5e7   :  { %3806 = vtanh.f32 %v2057_v55  ;;  %v5945_v55 = vld [vmem:[#allocation3 + $0x18] ss:$60 sps:$4 sm:$0xff]  }
 0x5e8   :  { %3808 = vtanh.f32 %v2060_v45  ;;  %v7379_v45 = vld [vmem:[#allocation80_spill] sm:$0xff] }
 0x5ef   :  { %v3803_v29 = vpop.eup %3802 }
 0x5f0   :  { %v2064_v30 = vmul.f32 0.5, %v3803_v29  ;;  %v3805_v31 = vpop.eup %3804  ;;  %v7380_v29 = vld [vmem:[#allocation81_spill] sm:$0xff] }
 0x5f1   :  { %v2065_v47 = vmul.f32 0.5, %v3805_v31  ;;  %v3807_v52 = vpop.eup %3806  ;;  %v7382_v31 = vld [vmem:[#allocation83_spill] sm:$0xff] }
 0x5f2   :  { %v2067_v54 = vadd.f32 0.5, %v2064_v30  ;;  %v3809_v59 = vpop.eup %3808  ;;  %v7381_v30 = vld [vmem:[#allocation82_spill] sm:$0xff] }
 0x5f3   :  { %v2068_v57 = vadd.f32 0.5, %v2065_v47  ;;  %v2066_v58 = vmul.f32 0.5, %v3809_v59  ;;  %v7384_v47 = vld [vmem:[#allocation61_spill] sm:$0xff]  ;;  %v7390_v59 = vld [vmem:[#allocation67_spill] sm:$0xff] }
 0x5f4   :  { %v2072_v1 = vmul.f32 %v3807_v52, %v2067_v54  ;;  %v7383_v54 = vld [vmem:[#allocation60_spill] sm:$0xff]  ;;  %v7385_v52 = vld [vmem:[#allocation62_spill] sm:$0xff] }
 0x5f5   :  { %v2071_v17 = vmul.f32 %v2068_v57, %v5375_v53  ;;  %v2069_v51 = vadd.f32 0.5, %v2066_v58  ;;  %v7386_v57 = vld [vmem:[#allocation63_spill] sm:$0xff]  ;;  %v7391_v58 = vld [vmem:[#allocation68_spill] sm:$0xff] }
 0x5f7   :  { %v2073_v44 = vadd.f32 %v2072_v1, %v2071_v17  ;;  %v7387_v1 = vld [vmem:[#allocation64_spill] sm:$0xff]  ;;  %v7388_v17 = vld [vmem:[#allocation65_spill] sm:$0xff] }
 0x5f9   :  { %3810 = vtanh.f32 %v2073_v44  ;;  %v5653_v20 = vsel %vm282_vm15, %v2073_v44, %v5375_v53  ;;  %v5672_v53 = vsel %vm5658_vm2, %v2105_v49, %v5394_v33  ;;  %v7366_v33 = vld [vmem:[#allocation115_spill] sm:$0xff]  ;;  %v7389_v44 = vld [vmem:[#allocation66_spill] sm:$0xff]  ;;  %v5763_v49 = vld [vmem:[#allocation3 + $0x264] ss:$60 sps:$4 sm:$0xff]  }
 0x5fa   :  { %7395 = vst [vmem:[#allocation24_spill] sm:$0xff] %v5763_v49 }
 0x603   :  { %v3811_v63 = vpop.eup %3810 }
 0x604   :  { %v2075_v50 = vmul.f32 %v3811_v63, %v2069_v51  ;;  %v7392_v51 = vld [vmem:[#allocation69_spill] sm:$0xff] }
 0x605   :  { %v7393_v63 = vld [vmem:[#allocation121_spill] sm:$0xff] }
 0x606   :  { %v2076_v2 = vpack.c.bf16 %v2075_v50, %v2075_v50  ;;  %v7394_v50 = vld [vmem:[#allocation122_spill] sm:$0xff] }
 0x608   :  { %v5665_v3 = vsel %vm5380_vm0, %v2076_v2, %v5387_v21  ;;  %v7365_v21 = vld [vmem:[#allocation114_spill] sm:$0xff]  ;;  %v5766_v2 = vld [vmem:[#allocation3 + $0x258] ss:$60 sps:$4 sm:$0xff]  }
 0x609   :  { %2141 = vmatprep.mubr.bf16.mxu0 %v5665_v3  ;;  %2182 = vmatprep.mubr.bf16.mxu1 %v5665_v3  ;;  %7396 = vst [vmem:[#allocation25_spill] sm:$0xff] %v5766_v2 }
 0x60a   :  { %2142 = vmatmul.mubr.bf16.vlgmr.msra.gmra.mrb[48].mxu0 %v5672_v53  ;;  %2183 = vmatmul.mubr.bf16.vlgmr.msra.gmra.mrb[48].mxu1 %v5672_v53 }
 0x60b   :  { %2192 = vmatpush1.bf16.msra.mxu0 %v5146_v18  ;;  %2233 = vmatpush1.bf16.msra.mxu1 %v5149_v39  ;;  %v7343_v18 = vld [vmem:[#allocation70_spill] sm:$0xff]  ;;  %v7344_v39 = vld [vmem:[#allocation71_spill] sm:$0xff] }
 0x60c   :  { %2223 = vmatprep.mubr.bf16.mxu0 %v5665_v3  ;;  %2264 = vmatprep.mubr.bf16.mxu1 %v5665_v3 }
 0x60d   :  { %2193 = vmatprep.subr.bf16.mxu0 %v5154_v42  ;;  %2234 = vmatprep.subr.bf16.mxu1 %v5157_v14  ;;  %v7345_v42 = vld [vmem:[#allocation72_spill] sm:$0xff]  ;;  %v7346_v14 = vld [vmem:[#allocation77_spill] sm:$0xff] }
 0x60f   :  { %2194 = vmatpush1.bf16.msra.mxu0 %v5160_v5  ;;  %2235 = vmatpush1.bf16.msra.mxu1 %v5163_v28  ;;  %v7347_v5 = vld [vmem:[#allocation84_spill] sm:$0xff]  ;;  %v7348_v28 = vld [vmem:[#allocation91_spill] sm:$0xff] }
 0x610   :  { %2195 = vmatprep.subr.bf16.mxu0 %v5166_v8  ;;  %2236 = vmatprep.subr.bf16.mxu1 %v5169_v32  ;;  %v7349_v8 = vld [vmem:[#allocation74_spill] sm:$0xff]  ;;  %v7350_v32 = vld [vmem:[#allocation75_spill] sm:$0xff] }
 0x613   :  { %2196 = vmatpush1.bf16.msra.mxu0 %v5172_v37  ;;  %2237 = vmatpush1.bf16.msra.mxu1 %v5175_v11  ;;  %v7351_v37 = vld [vmem:[#allocation78_spill] sm:$0xff]  ;;  %v7352_v11 = vld [vmem:[#allocation79_spill] sm:$0xff] }
 0x614   :  { %2197 = vmatprep.subr.bf16.mxu0 %v5178_v12  ;;  %2238 = vmatprep.subr.bf16.mxu1 %v5181_v40  ;;  %v7353_v12 = vld [vmem:[#allocation85_spill] sm:$0xff]  ;;  %v7354_v40 = vld [vmem:[#allocation90_spill] sm:$0xff] }
 0x617   :  { %2198 = vmatpush1.bf16.msra.mxu0 %v5184_v22  ;;  %2239 = vmatpush1.bf16.msra.mxu1 %v5187_v25  ;;  %v7355_v22 = vld [vmem:[#allocation94_spill] sm:$0xff]  ;;  %v7356_v25 = vld [vmem:[#allocation95_spill] sm:$0xff] }
 0x618   :  { %2199 = vmatprep.subr.bf16.mxu0 %v5190_v34  ;;  %2240 = vmatprep.subr.bf16.mxu1 %v5193_v16  ;;  %v7357_v34 = vld [vmem:[#allocation98_spill] sm:$0xff]  ;;  %v7358_v16 = vld [vmem:[#allocation99_spill] sm:$0xff] }
 0x61b   :  { %2200 = vmatpush1.bf16.msra.mxu0 %v5196_v15  ;;  %2241 = vmatpush1.bf16.msra.mxu1 %v5199_v6  ;;  %v7359_v15 = vld [vmem:[#allocation100_spill] sm:$0xff]  ;;  %v7360_v6 = vld [vmem:[#allocation101_spill] sm:$0xff] }
 0x61c   :  { %2201 = vmatprep.subr.bf16.mxu0 %v7236_v24  ;;  %2242 = vmatprep.subr.bf16.mxu1 %v7237_v7  ;;  %v7367_v24 = vld [vmem:[#allocation116_spill] sm:$0xff]  ;;  %v7368_v7 = vld [vmem:[#allocation117_spill] sm:$0xff] }
 0x61f   :  { %2202 = vmatpush1.bf16.msra.mxu0 %v7238_v13  ;;  %2243 = vmatpush1.bf16.msra.mxu1 %v7239_v46  ;;  %v7369_v13 = vld [vmem:[#allocation118_spill] sm:$0xff]  ;;  %v7370_v46 = vld [vmem:[#allocation119_spill] sm:$0xff] }
 0x620   :  { %2203 = vmatprep.subr.bf16.mxu0 %v7240_v23  ;;  %2244 = vmatprep.subr.bf16.mxu1 %v7241_v36  ;;  %v7371_v23 = vld [vmem:[#allocation120_spill] sm:$0xff]  ;;  %v7372_v36 = vld [vmem:[#allocation17_spill] sm:$0xff] }
 0x623   :  { %2204 = vmatpush1.bf16.msra.mxu0 %v7242_v4  ;;  %2245 = vmatpush1.bf16.msra.mxu1 %v7243_v35  ;;  %v7373_v4 = vld [vmem:[#allocation18_spill] sm:$0xff]  ;;  %v7374_v35 = vld [vmem:[#allocation19_spill] sm:$0xff] }
 0x624   :  { %2205 = vmatprep.subr.bf16.mxu0 %v7244_v10  ;;  %2246 = vmatprep.subr.bf16.mxu1 %v7245_v38  ;;  %v7375_v10 = vld [vmem:[#allocation20_spill] sm:$0xff]  ;;  %v7376_v38 = vld [vmem:[#allocation21_spill] sm:$0xff] }
 0x627   :  { %2206 = vmatpush1.bf16.msra.mxu0 %v5232_v9  ;;  %2247 = vmatpush1.bf16.msra.mxu1 %v5235_v19  ;;  %v7362_v9 = vld [vmem:[#allocation107_spill] sm:$0xff]  ;;  %v7363_v19 = vld [vmem:[#allocation110_spill] sm:$0xff] }
 0x628   :  { %2207 = vmatprep.subr.bf16.mxu0 %v5238_v26  ;;  %2248 = vmatprep.subr.bf16.mxu1 %v7343_v18  ;;  %v7361_v26 = vld [vmem:[#allocation106_spill] sm:$0xff]  ;;  %v5769_v18 = vld [vmem:[#allocation3 + $0x260] ss:$60 sps:$4 sm:$0xff]  }
 0x629   :  { %7397 = vst [vmem:[#allocation26_spill] sm:$0xff] %v5769_v18 }
 0x62b   :  { %2208 = vmatpush1.bf16.msra.mxu0 %v7344_v39  ;;  %2249 = vmatpush1.bf16.msra.mxu1 %v7345_v42  ;;  %v5772_v39 = vld [vmem:[#allocation3 + $0x2d4] ss:$60 sps:$4 sm:$0xff]   ;;  %v5775_v42 = vld [vmem:[#allocation3 + $0x2dc] ss:$60 sps:$4 sm:$0xff]  }
 0x62c   :  { %2209 = vmatprep.subr.bf16.mxu0 %v7346_v14  ;;  %2250 = vmatprep.subr.bf16.mxu1 %v7347_v5  ;;  %7398 = vst [vmem:[#allocation27_spill] sm:$0xff] %v5772_v39  ;;  %7399 = vst [vmem:[#allocation28_spill] sm:$0xff] %v5775_v42 }
 0x62f   :  { %2210 = vmatpush1.bf16.msra.mxu0 %v7348_v28  ;;  %2251 = vmatpush1.bf16.msra.mxu1 %v7349_v8 }
 0x630   :  { %2211 = vmatprep.subr.bf16.mxu0 %v7350_v32  ;;  %2252 = vmatprep.subr.bf16.mxu1 %v7351_v37 }
 0x633   :  { %2212 = vmatpush1.bf16.msra.mxu0 %v7352_v11  ;;  %2253 = vmatpush1.bf16.msra.mxu1 %v7353_v12 }
 0x634   :  { %2213 = vmatprep.subr.bf16.mxu0 %v7354_v40  ;;  %2254 = vmatprep.subr.bf16.mxu1 %v7355_v22 }
 0x637   :  { %2214 = vmatpush1.bf16.msra.mxu0 %v7356_v25  ;;  %2255 = vmatpush1.bf16.msra.mxu1 %v7357_v34 }
 0x638   :  { %2215 = vmatprep.subr.bf16.mxu0 %v7358_v16  ;;  %2256 = vmatprep.subr.bf16.mxu1 %v7359_v15 }
 0x63b   :  { %2216 = vmatpush1.bf16.msra.mxu0 %v7360_v6  ;;  %2257 = vmatpush1.bf16.msra.mxu1 %v7361_v26 }
 0x63c   :  { %2217 = vmatprep.subr.bf16.mxu0 %v7362_v9  ;;  %2258 = vmatprep.subr.bf16.mxu1 %v7363_v19 }
 0x63f   :  { %2218 = vmatpush1.bf16.msra.mxu0 %v7364_v60  ;;  %2259 = vmatpush1.bf16.msra.mxu1 %v7365_v21 }
 0x640   :  { %2219 = vmatprep.subr.bf16.mxu0 %v7366_v33  ;;  %2260 = vmatprep.subr.bf16.mxu1 %v7367_v24 }
 0x643   :  { %2220 = vmatpush1.bf16.msra.mxu0 %v7368_v7  ;;  %2261 = vmatpush1.bf16.msra.mxu1 %v7369_v13 }
 0x644   :  { %2221 = vmatprep.subr.bf16.mxu0 %v7370_v46  ;;  %2262 = vmatprep.subr.bf16.mxu1 %v7371_v23 }
 0x647   :  { %2222 = vmatpush1.bf16.msra.mxu0 %v7372_v36  ;;  %2263 = vmatpush1.bf16.msra.mxu1 %v7373_v4 }
 0x648   :  { %2328 = vmatprep.subr.bf16.mxu0 %v7374_v35  ;;  %2369 = vmatprep.subr.bf16.mxu1 %v7375_v10 }
 0x64a   :  { %2224 = vmatmul.mubr.bf16.vlgmr.msra.gmra.mrb[52].mxu0 %v5672_v53  ;;  %2265 = vmatmul.mubr.bf16.vlgmr.msra.gmra.mrb[52].mxu1 %v5672_v53 }
 0x64b   :  { %2329 = vmatpush1.bf16.msra.mxu0 %v7376_v38  ;;  %2370 = vmatpush1.bf16.msra.mxu1 %v7377_v56 }
 0x64c   :  { %2330 = vmatprep.subr.bf16.mxu0 %v7378_v62  ;;  %2371 = vmatprep.subr.bf16.mxu1 %v7379_v45 }
 0x64f   :  { %2331 = vmatpush1.bf16.msra.mxu0 %v7380_v29  ;;  %2372 = vmatpush1.bf16.msra.mxu1 %v7381_v30 }
 0x650   :  { %2332 = vmatprep.subr.bf16.mxu0 %v7382_v31  ;;  %2373 = vmatprep.subr.bf16.mxu1 %v7383_v54 }
 0x653   :  { %2333 = vmatpush1.bf16.msra.mxu0 %v7384_v47  ;;  %2374 = vmatpush1.bf16.msra.mxu1 %v7385_v52  ;;  %v7447_v52 = vld [vmem:[#allocation97_spill] sm:$0xff] }
 0x654   :  { %2334 = vmatprep.subr.bf16.mxu0 %v7386_v57  ;;  %2375 = vmatprep.subr.bf16.mxu1 %v7387_v1  ;;  %v7446_v57 = vld [vmem:[#allocation12_spill] sm:$0xff] }
 0x657   :  { %2335 = vmatpush1.bf16.msra.mxu0 %v7388_v17  ;;  %2376 = vmatpush1.bf16.msra.mxu1 %v7389_v44  ;;  %v7444_v17 = vld [vmem:[#allocation11_spill] sm:$0xff] }
 0x658   :  { %2336 = vmatprep.subr.bf16.mxu0 %v7390_v59  ;;  %2377 = vmatprep.subr.bf16.mxu1 %v7391_v58  ;;  %v7443_v59 = vld [vmem:[#allocation93_spill] sm:$0xff] }
 0x65b   :  { %2337 = vmatpush1.bf16.msra.mxu0 %v7392_v51  ;;  %2378 = vmatpush1.bf16.msra.mxu1 %v7393_v63  ;;  %v7439_v63 = vld [vmem:[#allocation76_spill] sm:$0xff] }
 0x65c   :  { %2338 = vmatprep.subr.bf16.mxu0 %v7394_v50  ;;  %2379 = vmatprep.subr.bf16.mxu1 %v5763_v49  ;;  %v5778_v50 = vld [vmem:[#allocation3 + $0x2d0] ss:$60 sps:$4 sm:$0xff]   ;;  %v5781_v49 = vld [vmem:[#allocation3 + $0x2d8] ss:$60 sps:$4 sm:$0xff]  }
 0x65d   :  { %7400 = vst [vmem:[#allocation29_spill] sm:$0xff] %v5778_v50  ;;  %7401 = vst [vmem:[#allocation30_spill] sm:$0xff] %v5781_v49  ;;  %v7441_v51 = vld [vmem:[#allocation92_spill] sm:$0xff] }
 0x65f   :  { %2339 = vmatpush1.bf16.msra.mxu0 %v5766_v2  ;;  %2380 = vmatpush1.bf16.msra.mxu1 %v5769_v18  ;;  %v5784_v2 = vld [vmem:[#allocation3 + $0x34c] ss:$60 sps:$4 sm:$0xff]   ;;  %v5787_v18 = vld [vmem:[#allocation3 + $0x354] ss:$60 sps:$4 sm:$0xff]  }
 0x660   :  { %2340 = vmatprep.subr.bf16.mxu0 %v5772_v39  ;;  %2381 = vmatprep.subr.bf16.mxu1 %v5775_v42  ;;  %7402 = vst [vmem:[#allocation31_spill] sm:$0xff] %v5784_v2  ;;  %7403 = vst [vmem:[#allocation32_spill] sm:$0xff] %v5787_v18  ;;  %v5790_v39 = vld [vmem:[#allocation3 + $0x348] ss:$60 sps:$4 sm:$0xff]   ;;  %v5793_v42 = vld [vmem:[#allocation3 + $0x350] ss:$60 sps:$4 sm:$0xff]  }
 0x661   :  { %7404 = vst [vmem:[#allocation33_spill] sm:$0xff] %v5790_v39  ;;  %7405 = vst [vmem:[#allocation34_spill] sm:$0xff] %v5793_v42 }
 0x663   :  { %2341 = vmatpush1.bf16.msra.mxu0 %v5778_v50  ;;  %2382 = vmatpush1.bf16.msra.mxu1 %v5781_v49  ;;  %v5796_v50 = vld [vmem:[#allocation3 + $0x3c4] ss:$60 sps:$4 sm:$0xff]   ;;  %v5799_v49 = vld [vmem:[#allocation3 + $0x3cc] ss:$60 sps:$4 sm:$0xff]  }
 0x664   :  { %2342 = vmatprep.subr.bf16.mxu0 %v5784_v2  ;;  %2383 = vmatprep.subr.bf16.mxu1 %v5787_v18  ;;  %7406 = vst [vmem:[#allocation35_spill] sm:$0xff] %v5796_v50  ;;  %7407 = vst [vmem:[#allocation36_spill] sm:$0xff] %v5799_v49  ;;  %v5802_v2 = vld [vmem:[#allocation3 + $0x3c0] ss:$60 sps:$4 sm:$0xff]   ;;  %v5805_v18 = vld [vmem:[#allocation3 + $0x3c8] ss:$60 sps:$4 sm:$0xff]  }
 0x665   :  { %7408 = vst [vmem:[#allocation37_spill] sm:$0xff] %v5802_v2  ;;  %7409 = vst [vmem:[#allocation38_spill] sm:$0xff] %v5805_v18 }
 0x667   :  { %2343 = vmatpush1.bf16.msra.mxu0 %v5790_v39  ;;  %2384 = vmatpush1.bf16.msra.mxu1 %v5793_v42  ;;  %v5808_v39 = vld [vmem:[#allocation3 + $0x43c] ss:$60 sps:$4 sm:$0xff]   ;;  %v5811_v42 = vld [vmem:[#allocation3 + $0x444] ss:$60 sps:$4 sm:$0xff]  }
 0x668   :  { %2344 = vmatprep.subr.bf16.mxu0 %v5796_v50  ;;  %2385 = vmatprep.subr.bf16.mxu1 %v5799_v49  ;;  %7410 = vst [vmem:[#allocation39_spill] sm:$0xff] %v5808_v39  ;;  %7411 = vst [vmem:[#allocation40_spill] sm:$0xff] %v5811_v42  ;;  %v5814_v50 = vld [vmem:[#allocation3 + $0x438] ss:$60 sps:$4 sm:$0xff]   ;;  %v5817_v49 = vld [vmem:[#allocation3 + $0x440] ss:$60 sps:$4 sm:$0xff]  }
 0x669   :  { %7412 = vst [vmem:[#allocation41_spill] sm:$0xff] %v5814_v50  ;;  %7413 = vst [vmem:[#allocation42_spill] sm:$0xff] %v5817_v49 }
 0x66b   :  { %2345 = vmatpush1.bf16.msra.mxu0 %v5802_v2  ;;  %2386 = vmatpush1.bf16.msra.mxu1 %v5805_v18  ;;  %v5820_v2 = vld [vmem:[#allocation3 + $0x4b4] ss:$60 sps:$4 sm:$0xff]   ;;  %v5823_v18 = vld [vmem:[#allocation3 + $0x4bc] ss:$60 sps:$4 sm:$0xff]  }
 0x66c   :  { %2346 = vmatprep.subr.bf16.mxu0 %v5808_v39  ;;  %2387 = vmatprep.subr.bf16.mxu1 %v5811_v42  ;;  %7414 = vst [vmem:[#allocation43_spill] sm:$0xff] %v5820_v2  ;;  %7415 = vst [vmem:[#allocation44_spill] sm:$0xff] %v5823_v18  ;;  %v5826_v39 = vld [vmem:[#allocation3 + $0x4b0] ss:$60 sps:$4 sm:$0xff]   ;;  %v5829_v42 = vld [vmem:[#allocation3 + $0x4b8] ss:$60 sps:$4 sm:$0xff]  }
 0x66d   :  { %7416 = vst [vmem:[#allocation45_spill] sm:$0xff] %v5826_v39  ;;  %7417 = vst [vmem:[#allocation46_spill] sm:$0xff] %v5829_v42 }
 0x66f   :  { %2347 = vmatpush1.bf16.msra.mxu0 %v5814_v50  ;;  %2388 = vmatpush1.bf16.msra.mxu1 %v5817_v49  ;;  %v5832_v50 = vld [vmem:[#allocation3 + $0x52c] ss:$60 sps:$4 sm:$0xff]   ;;  %v5835_v49 = vld [vmem:[#allocation3 + $0x534] ss:$60 sps:$4 sm:$0xff]  }
 0x670   :  { %2348 = vmatprep.subr.bf16.mxu0 %v5820_v2  ;;  %2389 = vmatprep.subr.bf16.mxu1 %v5823_v18  ;;  %7418 = vst [vmem:[#allocation47_spill] sm:$0xff] %v5832_v50  ;;  %7419 = vst [vmem:[#allocation48_spill] sm:$0xff] %v5835_v49  ;;  %v5838_v2 = vld [vmem:[#allocation3 + $0x528] ss:$60 sps:$4 sm:$0xff]   ;;  %v5841_v18 = vld [vmem:[#allocation3 + $0x530] ss:$60 sps:$4 sm:$0xff]  }
 0x671   :  { %7420 = vst [vmem:[#allocation49_spill] sm:$0xff] %v5838_v2  ;;  %7421 = vst [vmem:[#allocation50_spill] sm:$0xff] %v5841_v18 }
 0x673   :  { %2349 = vmatpush1.bf16.msra.mxu0 %v5826_v39  ;;  %2390 = vmatpush1.bf16.msra.mxu1 %v5829_v42  ;;  %v5844_v39 = vld [vmem:[#allocation3 + $0x5a4] ss:$60 sps:$4 sm:$0xff]   ;;  %v5847_v42 = vld [vmem:[#allocation3 + $0x5ac] ss:$60 sps:$4 sm:$0xff]  }
 0x674   :  { %2350 = vmatprep.subr.bf16.mxu0 %v5832_v50  ;;  %2391 = vmatprep.subr.bf16.mxu1 %v5835_v49  ;;  %7422 = vst [vmem:[#allocation51_spill] sm:$0xff] %v5844_v39  ;;  %7423 = vst [vmem:[#allocation52_spill] sm:$0xff] %v5847_v42  ;;  %v5850_v50 = vld [vmem:[#allocation3 + $0x5a0] ss:$60 sps:$4 sm:$0xff]   ;;  %v5853_v49 = vld [vmem:[#allocation3 + $0x5a8] ss:$60 sps:$4 sm:$0xff]  }
 0x675   :  { %7424 = vst [vmem:[#allocation53_spill] sm:$0xff] %v5850_v50  ;;  %7425 = vst [vmem:[#allocation54_spill] sm:$0xff] %v5853_v49 }
 0x677   :  { %2351 = vmatpush1.bf16.msra.mxu0 %v5838_v2  ;;  %2392 = vmatpush1.bf16.msra.mxu1 %v5841_v18  ;;  %v5856_v2 = vld [vmem:[#allocation3 + $0x61c] ss:$60 sps:$4 sm:$0xff]   ;;  %v5859_v18 = vld [vmem:[#allocation3 + $0x624] ss:$60 sps:$4 sm:$0xff]  }
 0x678   :  { %2352 = vmatprep.subr.bf16.mxu0 %v5844_v39  ;;  %2393 = vmatprep.subr.bf16.mxu1 %v5847_v42  ;;  %7426 = vst [vmem:[#allocation55_spill] sm:$0xff] %v5856_v2  ;;  %7427 = vst [vmem:[#allocation56_spill] sm:$0xff] %v5859_v18  ;;  %v5862_v39 = vld [vmem:[#allocation3 + $0x618] ss:$60 sps:$4 sm:$0xff]   ;;  %v5865_v42 = vld [vmem:[#allocation3 + $0x620] ss:$60 sps:$4 sm:$0xff]  }
 0x679   :  { %7428 = vst [vmem:[#allocation57_spill] sm:$0xff] %v5862_v39  ;;  %7429 = vst [vmem:[#allocation58_spill] sm:$0xff] %v5865_v42 }
 0x67b   :  { %2353 = vmatpush1.bf16.msra.mxu0 %v5850_v50  ;;  %2394 = vmatpush1.bf16.msra.mxu1 %v5853_v49  ;;  %v5868_v50 = vld [vmem:[#allocation3 + $0x694] ss:$60 sps:$4 sm:$0xff]   ;;  %v5871_v49 = vld [vmem:[#allocation3 + $0x69c] ss:$60 sps:$4 sm:$0xff]  }
 0x67c   :  { %2354 = vmatprep.subr.bf16.mxu0 %v5856_v2  ;;  %2395 = vmatprep.subr.bf16.mxu1 %v5859_v18  ;;  %7430 = vst [vmem:[#allocation59_spill] sm:$0xff] %v5868_v50  ;;  %7431 = vst [vmem:[#allocation86_spill] sm:$0xff] %v5871_v49  ;;  %v5874_v2 = vld [vmem:[#allocation3 + $0x690] ss:$60 sps:$4 sm:$0xff]   ;;  %v5877_v18 = vld [vmem:[#allocation3 + $0x698] ss:$60 sps:$4 sm:$0xff]  }
 0x67d   :  { %7432 = vst [vmem:[#allocation87_spill] sm:$0xff] %v5874_v2  ;;  %7433 = vst [vmem:[#allocation88_spill] sm:$0xff] %v5877_v18 }
 0x67f   :  { %2355 = vmatpush1.bf16.msra.mxu0 %v5862_v39  ;;  %2396 = vmatpush1.bf16.msra.mxu1 %v5865_v42  ;;  %v5880_v39 = vld [vmem:[#allocation3 + $0x70c] ss:$60 sps:$4 sm:$0xff]   ;;  %v5883_v42 = vld [vmem:[#allocation3 + $0x714] ss:$60 sps:$4 sm:$0xff]  }
 0x680   :  { %2356 = vmatprep.subr.bf16.mxu0 %v5868_v50  ;;  %2397 = vmatprep.subr.bf16.mxu1 %v5871_v49  ;;  %7434 = vst [vmem:[#allocation89_spill] sm:$0xff] %v5880_v39  ;;  %7435 = vst [vmem:[#allocation70_spill] sm:$0xff] %v5883_v42  ;;  %v5886_v50 = vld [vmem:[#allocation3 + $0x708] ss:$60 sps:$4 sm:$0xff]   ;;  %v5889_v49 = vld [vmem:[#allocation3 + $0x710] ss:$60 sps:$4 sm:$0xff]  }
 0x681   :  { %7436 = vst [vmem:[#allocation71_spill] sm:$0xff] %v5886_v50  ;;  %7437 = vst [vmem:[#allocation72_spill] sm:$0xff] %v5889_v49 }
 0x683   :  { %2357 = vmatpush1.bf16.msra.mxu0 %v5874_v2  ;;  %2398 = vmatpush1.bf16.msra.mxu1 %v5877_v18  ;;  %v7438_v2 = vld [vmem:[#allocation73_spill] sm:$0xff]  ;;  %v7440_v18 = vld [vmem:[#allocation10_spill] sm:$0xff] }
 0x684   :  { %2358 = vmatprep.subr.bf16.mxu0 %v5880_v39  ;;  %2399 = vmatprep.subr.bf16.mxu1 %v5883_v42  ;;  %v448_v58 = vadd.f32 %v7441_v51, %v7440_v18  ;;  %v7442_v39 = vld [vmem:[#allocation16_spill] sm:$0xff] }
 0x685   :  { %v521_v44 = vadd.f32 %v7443_v59, %v7442_v39  ;;  %v7445_v42 = vld [vmem:[#allocation96_spill] sm:$0xff] }
 0x686   :  { %v450_v1 = vadd.f32 %v7445_v42, %v7444_v17 }
 0x687   :  { %2359 = vmatpush1.bf16.msra.mxu0 %v5886_v50  ;;  %2400 = vmatpush1.bf16.msra.mxu1 %v5889_v49  ;;  %v523_v50 = vadd.f32 %v7447_v52, %v7446_v57 }
 0x688   :  { %2410 = vmatprep.subr.bf16.mxu0 %v7438_v2  ;;  %2451 = vmatprep.subr.bf16.mxu1 %v7439_v63 }
 0x6dd   :  { %v2143_v47 = vpop.f32.mrb[48].mxu0  ;;  %v2184_v54 = vpop.f32.mrb[48].mxu1 }
 0x6de   :  { %v2302_v31 = vadd.f32 %v2143_v47, %v448_v58  ;;  %v2304_v49 = vadd.f32 %v2184_v54, %v521_v44  ;;  %v2145_v30 = vpop.f32.mrb[49].mxu0  ;;  %v2186_v2 = vpop.f32.mrb[49].mxu1 }
 0x6df   :  { %v2303_v29 = vadd.f32 %v2145_v30, %v450_v1  ;;  %v2305_v63 = vadd.f32 %v2186_v2, %v523_v50  ;;  %v2147_v45 = vpop.f32.mrb[50].mxu0  ;;  %v2188_v62 = vpop.f32.mrb[50].mxu1 }
 0x6e0   :  { %v2306_v51 = vmul.f32 0.5, %v2302_v31  ;;  %v2148_v18 = vpop.f32.mrb[51].mxu0  ;;  %v2189_v56 = vpop.f32.mrb[51].mxu1  ;;  %v2308_v42 = vmul.f32 0.5, %v2304_v49 }
 0x6e1   :  { %v2307_v59 = vmul.f32 0.5, %v2303_v29  ;;  %v5903_v62 = vpop.permute.xlu1 %292 }
 0x6e2   :  { %3812 = vtanh.f32 %v2306_v51  ;;  %vm294_vm3 = vcmp.eq.s32.totalorder %v5903_v62, 1 }
 0x6e3   :  { %3814 = vtanh.f32 %v2307_v59  ;;  %vm5924_vm4 = vmpackc.low %vm294_vm3, %vm294_vm3 }
 0x6e4   :  { %3816 = vtanh.f32 %v2305_v63 }
 0x6e5   :  { %3818 = vtanh.f32 %v2308_v42 }
 0x6ec   :  { %v3813_v17 = vpop.eup %3812 }
 0x6ed   :  { %v2312_v52 = vmul.f32 0.5, %v3813_v17  ;;  %v3815_v57 = vpop.eup %3814 }
 0x6ee   :  { %v2313_v54 = vmul.f32 0.5, %v3815_v57  ;;  %v3817_v47 = vpop.eup %3816 }
 0x6ef   :  { %v2315_v39 = vadd.f32 0.5, %v2312_v52  ;;  %v3819_v29 = vpop.eup %3818 }
 0x6f0   :  { %v2316_v44 = vadd.f32 0.5, %v2313_v54  ;;  %v2314_v1 = vmul.f32 0.5, %v3819_v29 }
 0x6f1   :  { %v2320_v30 = vmul.f32 %v3817_v47, %v2315_v39 }
 0x6f2   :  { %v2319_v45 = vmul.f32 %v2316_v44, %v5643_v0  ;;  %v2317_v17 = vadd.f32 0.5, %v2314_v1 }
 0x6f4   :  { %v2321_v31 = vadd.f32 %v2320_v30, %v2319_v45 }
 0x6f6   :  { %3820 = vtanh.f32 %v2321_v31  ;;  %v5909_v56 = vsel %vm294_vm3, %v2321_v31, %v5643_v0 }
 0x700   :  { %v3821_v57 = vpop.eup %3820 }
 0x701   :  { %v2323_v58 = vmul.f32 %v3821_v57, %v2317_v17 }
 0x71d   :  { %v2225_v50 = vpop.f32.mrb[52].mxu0  ;;  %v2266_v49 = vpop.f32.mrb[52].mxu1 }
 0x71e   :  { %v2273_v18 = vadd.f32 %v2225_v50, %v4838_v41  ;;  %v2227_v39 = vpop.f32.mrb[53].mxu0  ;;  %v2268_v2 = vpop.f32.mrb[53].mxu1  ;;  %v2275_v44 = vadd.f32 %v2266_v49, %v4853_v61 }
 0x71f   :  { %v2274_v63 = vadd.f32 %v2227_v39, %v4842_v43  ;;  %v2229_v51 = vpop.f32.mrb[54].mxu0  ;;  %v2270_v59 = vpop.f32.mrb[54].mxu1  ;;  %v2276_v47 = vadd.f32 %v2268_v2, %v4847_v48 }
 0x720   :  { %v2277_v42 = vmul.f32 0.5, %v2273_v18  ;;  %v2230_v52 = vpop.f32.mrb[55].mxu0  ;;  %v2271_v54 = vpop.f32.mrb[55].mxu1  ;;  %v2279_v30 = vmul.f32 0.5, %v2275_v44  ;;  %v5956_v44 = vld [vmem:[#allocation3 + $0x88] ss:$60 sps:$4 sm:$0xff]  }
 0x721   :  { %v2278_v0 = vmul.f32 0.5, %v2274_v63  ;;  %v2324_v54 = vpack.c.bf16 %v2323_v58, %v2323_v58  ;;  %v5942_v58 = vld [vmem:[#allocation3 + $0x10] ss:$60 sps:$4 sm:$0xff]  }
 0x722   :  { %3822 = vtanh.f32 %v2277_v42 }
 0x723   :  { %3824 = vtanh.f32 %v2278_v0 }
 0x724   :  { %3826 = vtanh.f32 %v2276_v47 }
 0x725   :  { %3828 = vtanh.f32 %v2279_v30  ;;  %v5959_v30 = vld [vmem:[#allocation3 + $0x90] ss:$60 sps:$4 sm:$0xff]  }
 0x72c   :  { %v3823_v45 = vpop.eup %3822 }
 0x72d   :  { %v2283_v31 = vmul.f32 0.5, %v3823_v45  ;;  %v3825_v29 = vpop.eup %3824  ;;  %v5962_v45 = vld [vmem:[#allocation3 + $0x104] ss:$60 sps:$4 sm:$0xff]  }
 0x72e   :  { %v2284_v17 = vmul.f32 0.5, %v3825_v29  ;;  %v3827_v57 = vpop.eup %3826  ;;  %v5968_v29 = vld [vmem:[#allocation3 + $0x100] ss:$60 sps:$4 sm:$0xff]  }
 0x72f   :  { %v2286_v1 = vadd.f32 0.5, %v2283_v31  ;;  %v3829_v49 = vpop.eup %3828  ;;  %v5965_v31 = vld [vmem:[#allocation3 + $0x10c] ss:$60 sps:$4 sm:$0xff]  }
 0x730   :  { %v2287_v50 = vadd.f32 0.5, %v2284_v17  ;;  %v2285_v51 = vmul.f32 0.5, %v3829_v49  ;;  %v5974_v17 = vld [vmem:[#allocation3 + $0x17c] ss:$60 sps:$4 sm:$0xff]   ;;  %v5992_v49 = vld [vmem:[#allocation3 + $0x1f0] ss:$60 sps:$4 sm:$0xff]  }
 0x731   :  { %v2291_v18 = vmul.f32 %v3827_v57, %v2286_v1  ;;  %v5971_v1 = vld [vmem:[#allocation3 + $0x108] ss:$60 sps:$4 sm:$0xff]  }
 0x732   :  { %v2290_v39 = vmul.f32 %v2287_v50, %v5653_v20  ;;  %v2288_v59 = vadd.f32 0.5, %v2285_v51  ;;  %v5977_v57 = vld [vmem:[#allocation3 + $0x184] ss:$60 sps:$4 sm:$0xff]   ;;  %v5980_v50 = vld [vmem:[#allocation3 + $0x178] ss:$60 sps:$4 sm:$0xff]  }
 0x733   :  { %v5995_v51 = vld [vmem:[#allocation3 + $0x1f8] ss:$60 sps:$4 sm:$0xff]  }
 0x734   :  { %v2292_v63 = vadd.f32 %v2291_v18, %v2290_v39  ;;  %v5983_v18 = vld [vmem:[#allocation3 + $0x180] ss:$60 sps:$4 sm:$0xff]   ;;  %v5986_v39 = vld [vmem:[#allocation3 + $0x1f4] ss:$60 sps:$4 sm:$0xff]   ;;  %7450 = vst [vmem:[#allocation77_spill] sm:$0xff] %v5995_v51 }
 0x736   :  { %3830 = vtanh.f32 %v2292_v63  ;;  %v5919_v2 = vsel %vm288_vm1, %v2292_v63, %v5653_v20  ;;  %v5938_v20 = vsel %vm5924_vm4, %v2324_v54, %v5672_v53  ;;  %v5953_v53 = vld [vmem:[#allocation3 + $0x94] ss:$60 sps:$4 sm:$0xff]   ;;  %v5989_v63 = vld [vmem:[#allocation3 + $0x1fc] ss:$60 sps:$4 sm:$0xff]  }
 0x737   :  { %v6007_v54 = vld [vmem:[#allocation3 + $0x270] ss:$60 sps:$4 sm:$0xff]  }
 0x738   :  { %7454 = vst [vmem:[#allocation75_spill] sm:$0xff] %v6007_v54 }
 0x73b   :  { %v7537_v47 = vld [vmem:[#allocation77_spill] sm:$0xff] }
 0x740   :  { %v3831_v42 = vpop.eup %3830 }
 0x741   :  { %v2294_v52 = vmul.f32 %v3831_v42, %v2288_v59  ;;  %v5998_v59 = vld [vmem:[#allocation3 + $0x26c] ss:$60 sps:$4 sm:$0xff]   ;;  %v6001_v42 = vld [vmem:[#allocation3 + $0x274] ss:$60 sps:$4 sm:$0xff]  }
 0x742   :  { %7451 = vst [vmem:[#allocation84_spill] sm:$0xff] %v5998_v59  ;;  %7452 = vst [vmem:[#allocation91_spill] sm:$0xff] %v6001_v42 }
 0x743   :  { %v2295_v0 = vpack.c.bf16 %v2294_v52, %v2294_v52  ;;  %v6004_v52 = vld [vmem:[#allocation3 + $0x268] ss:$60 sps:$4 sm:$0xff]  }
 0x744   :  { %7453 = vst [vmem:[#allocation74_spill] sm:$0xff] %v6004_v52 }
 0x745   :  { %v5931_v27 = vsel %vm5658_vm2, %v2295_v0, %v5665_v3  ;;  %v5950_v3 = vld [vmem:[#allocation3 + $0x8c] ss:$60 sps:$4 sm:$0xff]   ;;  %v6010_v0 = vld [vmem:[#allocation3 + $0x2e4] ss:$60 sps:$4 sm:$0xff]  }
 0x746   :  { %2360 = vmatprep.mubr.bf16.mxu0 %v5931_v27  ;;  %2401 = vmatprep.mubr.bf16.mxu1 %v5931_v27  ;;  %7455 = vst [vmem:[#allocation78_spill] sm:$0xff] %v6010_v0 }
 0x747   :  { %2361 = vmatmul.mubr.bf16.vlgmr.msra.gmra.mrb[56].mxu0 %v5938_v20  ;;  %2402 = vmatmul.mubr.bf16.vlgmr.msra.gmra.mrb[56].mxu1 %v5938_v20 }
 0x748   :  { %2411 = vmatpush1.bf16.msra.mxu0 %v5942_v58  ;;  %2452 = vmatpush1.bf16.msra.mxu1 %v5945_v55 }
 0x749   :  { %2442 = vmatprep.mubr.bf16.mxu0 %v5931_v27  ;;  %2483 = vmatprep.mubr.bf16.mxu1 %v5931_v27 }
 0x74a   :  { %2412 = vmatprep.subr.bf16.mxu0 %v5950_v3  ;;  %2453 = vmatprep.subr.bf16.mxu1 %v5953_v53 }
 0x74c   :  { %2413 = vmatpush1.bf16.msra.mxu0 %v5956_v44  ;;  %2454 = vmatpush1.bf16.msra.mxu1 %v5959_v30 }
 0x74d   :  { %2414 = vmatprep.subr.bf16.mxu0 %v5962_v45  ;;  %2455 = vmatprep.subr.bf16.mxu1 %v5965_v31 }
 0x750   :  { %2415 = vmatpush1.bf16.msra.mxu0 %v5968_v29  ;;  %2456 = vmatpush1.bf16.msra.mxu1 %v5971_v1 }
 0x751   :  { %2416 = vmatprep.subr.bf16.mxu0 %v5974_v17  ;;  %2457 = vmatprep.subr.bf16.mxu1 %v5977_v57 }
 0x754   :  { %2417 = vmatpush1.bf16.msra.mxu0 %v5980_v50  ;;  %2458 = vmatpush1.bf16.msra.mxu1 %v5983_v18 }
 0x755   :  { %2418 = vmatprep.subr.bf16.mxu0 %v5986_v39  ;;  %2459 = vmatprep.subr.bf16.mxu1 %v5989_v63 }
 0x758   :  { %2419 = vmatpush1.bf16.msra.mxu0 %v5992_v49  ;;  %2460 = vmatpush1.bf16.msra.mxu1 %v5995_v51  ;;  %v6013_v51 = vld [vmem:[#allocation3 + $0x2ec] ss:$60 sps:$4 sm:$0xff]  }
 0x759   :  { %2420 = vmatprep.subr.bf16.mxu0 %v5998_v59  ;;  %2461 = vmatprep.subr.bf16.mxu1 %v6001_v42  ;;  %7456 = vst [vmem:[#allocation79_spill] sm:$0xff] %v6013_v51  ;;  %v6016_v59 = vld [vmem:[#allocation3 + $0x2e0] ss:$60 sps:$4 sm:$0xff]   ;;  %v6019_v42 = vld [vmem:[#allocation3 + $0x2e8] ss:$60 sps:$4 sm:$0xff]  }
 0x75a   :  { %7457 = vst [vmem:[#allocation85_spill] sm:$0xff] %v6016_v59  ;;  %7458 = vst [vmem:[#allocation90_spill] sm:$0xff] %v6019_v42 }
 0x75c   :  { %2421 = vmatpush1.bf16.msra.mxu0 %v6004_v52  ;;  %2462 = vmatpush1.bf16.msra.mxu1 %v6007_v54  ;;  %v6022_v52 = vld [vmem:[#allocation3 + $0x35c] ss:$60 sps:$4 sm:$0xff]   ;;  %v6025_v54 = vld [vmem:[#allocation3 + $0x364] ss:$60 sps:$4 sm:$0xff]  }
 0x75d   :  { %2422 = vmatprep.subr.bf16.mxu0 %v6010_v0  ;;  %2463 = vmatprep.subr.bf16.mxu1 %v6013_v51  ;;  %7459 = vst [vmem:[#allocation94_spill] sm:$0xff] %v6022_v52  ;;  %7460 = vst [vmem:[#allocation95_spill] sm:$0xff] %v6025_v54  ;;  %v6028_v0 = vld [vmem:[#allocation3 + $0x358] ss:$60 sps:$4 sm:$0xff]   ;;  %v6031_v51 = vld [vmem:[#allocation3 + $0x360] ss:$60 sps:$4 sm:$0xff]  }
 0x760   :  { %2423 = vmatpush1.bf16.msra.mxu0 %v6016_v59  ;;  %2464 = vmatpush1.bf16.msra.mxu1 %v6019_v42  ;;  %v6034_v59 = vld [vmem:[#allocation3 + $0x3d4] ss:$60 sps:$4 sm:$0xff]   ;;  %v6037_v42 = vld [vmem:[#allocation3 + $0x3dc] ss:$60 sps:$4 sm:$0xff]  }
 0x761   :  { %2424 = vmatprep.subr.bf16.mxu0 %v6022_v52  ;;  %2465 = vmatprep.subr.bf16.mxu1 %v6025_v54  ;;  %v6040_v52 = vld [vmem:[#allocation3 + $0x3d0] ss:$60 sps:$4 sm:$0xff]   ;;  %v6043_v54 = vld [vmem:[#allocation3 + $0x3d8] ss:$60 sps:$4 sm:$0xff]  }
 0x764   :  { %2425 = vmatpush1.bf16.msra.mxu0 %v6028_v0  ;;  %2466 = vmatpush1.bf16.msra.mxu1 %v6031_v51 }
 0x765   :  { %2426 = vmatprep.subr.bf16.mxu0 %v6034_v59  ;;  %2467 = vmatprep.subr.bf16.mxu1 %v6037_v42 }
 0x768   :  { %2427 = vmatpush1.bf16.msra.mxu0 %v6040_v52  ;;  %2468 = vmatpush1.bf16.msra.mxu1 %v6043_v54 }
 0x769   :  { %2428 = vmatprep.subr.bf16.mxu0 %v7346_v14  ;;  %2469 = vmatprep.subr.bf16.mxu1 %v7347_v5  ;;  %v7461_v14 = vld [vmem:[#allocation22_spill] sm:$0xff]  ;;  %v7462_v5 = vld [vmem:[#allocation23_spill] sm:$0xff] }
 0x76c   :  { %2429 = vmatpush1.bf16.msra.mxu0 %v7348_v28  ;;  %2470 = vmatpush1.bf16.msra.mxu1 %v7349_v8  ;;  %v7463_v28 = vld [vmem:[#allocation80_spill] sm:$0xff]  ;;  %v7464_v8 = vld [vmem:[#allocation81_spill] sm:$0xff] }
 0x76d   :  { %2430 = vmatprep.subr.bf16.mxu0 %v7350_v32  ;;  %2471 = vmatprep.subr.bf16.mxu1 %v7351_v37  ;;  %v7465_v32 = vld [vmem:[#allocation82_spill] sm:$0xff]  ;;  %v7466_v37 = vld [vmem:[#allocation83_spill] sm:$0xff] }
 0x770   :  { %2431 = vmatpush1.bf16.msra.mxu0 %v7352_v11  ;;  %2472 = vmatpush1.bf16.msra.mxu1 %v7353_v12  ;;  %v7467_v11 = vld [vmem:[#allocation60_spill] sm:$0xff]  ;;  %v7468_v12 = vld [vmem:[#allocation61_spill] sm:$0xff] }
 0x771   :  { %2432 = vmatprep.subr.bf16.mxu0 %v7354_v40  ;;  %2473 = vmatprep.subr.bf16.mxu1 %v7355_v22  ;;  %v7469_v40 = vld [vmem:[#allocation62_spill] sm:$0xff]  ;;  %v7470_v22 = vld [vmem:[#allocation63_spill] sm:$0xff] }
 0x774   :  { %2433 = vmatpush1.bf16.msra.mxu0 %v7356_v25  ;;  %2474 = vmatpush1.bf16.msra.mxu1 %v7357_v34  ;;  %v7471_v25 = vld [vmem:[#allocation64_spill] sm:$0xff]  ;;  %v7472_v34 = vld [vmem:[#allocation65_spill] sm:$0xff] }
 0x775   :  { %2434 = vmatprep.subr.bf16.mxu0 %v7358_v16  ;;  %2475 = vmatprep.subr.bf16.mxu1 %v7359_v15  ;;  %v7473_v16 = vld [vmem:[#allocation66_spill] sm:$0xff]  ;;  %v7474_v15 = vld [vmem:[#allocation67_spill] sm:$0xff] }
 0x778   :  { %2435 = vmatpush1.bf16.msra.mxu0 %v7360_v6  ;;  %2476 = vmatpush1.bf16.msra.mxu1 %v7361_v26  ;;  %v7475_v6 = vld [vmem:[#allocation68_spill] sm:$0xff]  ;;  %v7476_v26 = vld [vmem:[#allocation69_spill] sm:$0xff] }
 0x779   :  { %2436 = vmatprep.subr.bf16.mxu0 %v7362_v9  ;;  %2477 = vmatprep.subr.bf16.mxu1 %v7363_v19  ;;  %v7477_v9 = vld [vmem:[#allocation121_spill] sm:$0xff]  ;;  %v7478_v19 = vld [vmem:[#allocation122_spill] sm:$0xff] }
 0x77c   :  { %2437 = vmatpush1.bf16.msra.mxu0 %v7364_v60  ;;  %2478 = vmatpush1.bf16.msra.mxu1 %v7365_v21  ;;  %v7479_v60 = vld [vmem:[#allocation24_spill] sm:$0xff]  ;;  %v7480_v21 = vld [vmem:[#allocation25_spill] sm:$0xff] }
 0x77d   :  { %2438 = vmatprep.subr.bf16.mxu0 %v7366_v33  ;;  %2479 = vmatprep.subr.bf16.mxu1 %v7367_v24  ;;  %v7481_v33 = vld [vmem:[#allocation26_spill] sm:$0xff]  ;;  %v7482_v24 = vld [vmem:[#allocation27_spill] sm:$0xff] }
 0x780   :  { %2439 = vmatpush1.bf16.msra.mxu0 %v7368_v7  ;;  %2480 = vmatpush1.bf16.msra.mxu1 %v7369_v13  ;;  %v7483_v7 = vld [vmem:[#allocation28_spill] sm:$0xff]  ;;  %v7484_v13 = vld [vmem:[#allocation29_spill] sm:$0xff] }
 0x781   :  { %2440 = vmatprep.subr.bf16.mxu0 %v7370_v46  ;;  %2481 = vmatprep.subr.bf16.mxu1 %v7371_v23  ;;  %v7485_v46 = vld [vmem:[#allocation30_spill] sm:$0xff]  ;;  %v7486_v23 = vld [vmem:[#allocation31_spill] sm:$0xff] }
 0x784   :  { %2441 = vmatpush1.bf16.msra.mxu0 %v7372_v36  ;;  %2482 = vmatpush1.bf16.msra.mxu1 %v7373_v4  ;;  %v7487_v36 = vld [vmem:[#allocation32_spill] sm:$0xff]  ;;  %v7488_v4 = vld [vmem:[#allocation33_spill] sm:$0xff] }
 0x785   :  { %2547 = vmatprep.subr.bf16.mxu0 %v7374_v35  ;;  %2588 = vmatprep.subr.bf16.mxu1 %v7375_v10  ;;  %v7489_v35 = vld [vmem:[#allocation34_spill] sm:$0xff]  ;;  %v7490_v10 = vld [vmem:[#allocation35_spill] sm:$0xff] }
 0x787   :  { %2443 = vmatmul.mubr.bf16.vlgmr.msra.gmra.mrb[60].mxu0 %v5938_v20  ;;  %2484 = vmatmul.mubr.bf16.vlgmr.msra.gmra.mrb[60].mxu1 %v5938_v20 }
 0x788   :  { %2548 = vmatpush1.bf16.msra.mxu0 %v7376_v38  ;;  %2589 = vmatpush1.bf16.msra.mxu1 %v7461_v14  ;;  %v7491_v38 = vld [vmem:[#allocation36_spill] sm:$0xff]  ;;  %v7492_v14 = vld [vmem:[#allocation37_spill] sm:$0xff] }
 0x789   :  { %2549 = vmatprep.subr.bf16.mxu0 %v7462_v5  ;;  %2590 = vmatprep.subr.bf16.mxu1 %v7463_v28  ;;  %v7493_v5 = vld [vmem:[#allocation38_spill] sm:$0xff]  ;;  %v7494_v28 = vld [vmem:[#allocation39_spill] sm:$0xff] }
 0x78c   :  { %2550 = vmatpush1.bf16.msra.mxu0 %v7464_v8  ;;  %2591 = vmatpush1.bf16.msra.mxu1 %v7465_v32  ;;  %v7495_v8 = vld [vmem:[#allocation40_spill] sm:$0xff]  ;;  %v7496_v32 = vld [vmem:[#allocation41_spill] sm:$0xff] }
 0x78d   :  { %2551 = vmatprep.subr.bf16.mxu0 %v7466_v37  ;;  %2592 = vmatprep.subr.bf16.mxu1 %v7467_v11  ;;  %v7497_v37 = vld [vmem:[#allocation42_spill] sm:$0xff]  ;;  %v7498_v11 = vld [vmem:[#allocation43_spill] sm:$0xff] }
 0x790   :  { %2552 = vmatpush1.bf16.msra.mxu0 %v7468_v12  ;;  %2593 = vmatpush1.bf16.msra.mxu1 %v7469_v40  ;;  %v7499_v12 = vld [vmem:[#allocation44_spill] sm:$0xff]  ;;  %v7500_v40 = vld [vmem:[#allocation45_spill] sm:$0xff] }
 0x791   :  { %2553 = vmatprep.subr.bf16.mxu0 %v7470_v22  ;;  %2594 = vmatprep.subr.bf16.mxu1 %v7471_v25  ;;  %v7501_v22 = vld [vmem:[#allocation46_spill] sm:$0xff]  ;;  %v7502_v25 = vld [vmem:[#allocation47_spill] sm:$0xff] }
 0x794   :  { %2554 = vmatpush1.bf16.msra.mxu0 %v7472_v34  ;;  %2595 = vmatpush1.bf16.msra.mxu1 %v7473_v16  ;;  %v7503_v34 = vld [vmem:[#allocation48_spill] sm:$0xff]  ;;  %v7504_v16 = vld [vmem:[#allocation49_spill] sm:$0xff] }
 0x795   :  { %2555 = vmatprep.subr.bf16.mxu0 %v7474_v15  ;;  %2596 = vmatprep.subr.bf16.mxu1 %v7475_v6  ;;  %v7505_v15 = vld [vmem:[#allocation50_spill] sm:$0xff]  ;;  %v7506_v6 = vld [vmem:[#allocation51_spill] sm:$0xff] }
 0x798   :  { %2556 = vmatpush1.bf16.msra.mxu0 %v7476_v26  ;;  %2597 = vmatpush1.bf16.msra.mxu1 %v7477_v9  ;;  %v7507_v26 = vld [vmem:[#allocation52_spill] sm:$0xff]  ;;  %v7508_v9 = vld [vmem:[#allocation53_spill] sm:$0xff] }
 0x799   :  { %2557 = vmatprep.subr.bf16.mxu0 %v7478_v19  ;;  %2598 = vmatprep.subr.bf16.mxu1 %v7479_v60  ;;  %v7509_v19 = vld [vmem:[#allocation54_spill] sm:$0xff]  ;;  %v7510_v60 = vld [vmem:[#allocation55_spill] sm:$0xff] }
 0x79c   :  { %2558 = vmatpush1.bf16.msra.mxu0 %v7480_v21  ;;  %2599 = vmatpush1.bf16.msra.mxu1 %v7481_v33  ;;  %v7511_v21 = vld [vmem:[#allocation56_spill] sm:$0xff]  ;;  %v7512_v33 = vld [vmem:[#allocation57_spill] sm:$0xff] }
 0x79d   :  { %2559 = vmatprep.subr.bf16.mxu0 %v7482_v24  ;;  %2600 = vmatprep.subr.bf16.mxu1 %v7483_v7  ;;  %v7513_v24 = vld [vmem:[#allocation58_spill] sm:$0xff]  ;;  %v7514_v7 = vld [vmem:[#allocation59_spill] sm:$0xff] }
 0x7a0   :  { %2560 = vmatpush1.bf16.msra.mxu0 %v7484_v13  ;;  %2601 = vmatpush1.bf16.msra.mxu1 %v7485_v46  ;;  %v7515_v13 = vld [vmem:[#allocation86_spill] sm:$0xff]  ;;  %v7516_v46 = vld [vmem:[#allocation87_spill] sm:$0xff] }
 0x7a1   :  { %2561 = vmatprep.subr.bf16.mxu0 %v7486_v23  ;;  %2602 = vmatprep.subr.bf16.mxu1 %v7487_v36  ;;  %v7517_v23 = vld [vmem:[#allocation88_spill] sm:$0xff]  ;;  %v7518_v36 = vld [vmem:[#allocation89_spill] sm:$0xff] }
 0x7a4   :  { %2562 = vmatpush1.bf16.msra.mxu0 %v7488_v4  ;;  %2603 = vmatpush1.bf16.msra.mxu1 %v7489_v35  ;;  %v7519_v4 = vld [vmem:[#allocation70_spill] sm:$0xff]  ;;  %v7520_v35 = vld [vmem:[#allocation71_spill] sm:$0xff] }
 0x7a5   :  { %2563 = vmatprep.subr.bf16.mxu0 %v7490_v10  ;;  %2604 = vmatprep.subr.bf16.mxu1 %v7491_v38  ;;  %v7521_v10 = vld [vmem:[#allocation72_spill] sm:$0xff]  ;;  %v6140_v38 = vld [vmem:[#allocation3 + $0x14] ss:$60 sps:$4 sm:$0xff]  }
 0x7a8   :  { %2564 = vmatpush1.bf16.msra.mxu0 %v7492_v14  ;;  %2605 = vmatpush1.bf16.msra.mxu1 %v7493_v5  ;;  %v6143_v14 = vld [vmem:[#allocation3 + $0x1c] ss:$60 sps:$4 sm:$0xff]   ;;  %v7522_v5 = vld [vmem:[#allocation10_spill] sm:$0xff] }
 0x7a9   :  { %2565 = vmatprep.subr.bf16.mxu0 %v7494_v28  ;;  %2606 = vmatprep.subr.bf16.mxu1 %v7495_v8  ;;  %v7523_v28 = vld [vmem:[#allocation102_spill] sm:$0xff] }
 0x7aa   :  { %v454_v8 = vadd.f32 %v7523_v28, %v7522_v5  ;;  %v6308_v5 = vld [vmem:[#allocation3 + $0x718] ss:$60 sps:$4 sm:$0xff]  }
 0x7ac   :  { %2566 = vmatpush1.bf16.msra.mxu0 %v7496_v32  ;;  %2607 = vmatpush1.bf16.msra.mxu1 %v7497_v37  ;;  %v7524_v32 = vld [vmem:[#allocation16_spill] sm:$0xff]  ;;  %v7525_v37 = vld [vmem:[#allocation103_spill] sm:$0xff] }
 0x7ad   :  { %2567 = vmatprep.subr.bf16.mxu0 %v7498_v11  ;;  %2608 = vmatprep.subr.bf16.mxu1 %v7499_v12  ;;  %v527_v11 = vadd.f32 %v7525_v37, %v7524_v32  ;;  %v7526_v12 = vld [vmem:[#allocation11_spill] sm:$0xff]  ;;  %v6305_v32 = vld [vmem:[#allocation3 + $0x724] ss:$60 sps:$4 sm:$0xff]  }
 0x7b0   :  { %2568 = vmatpush1.bf16.msra.mxu0 %v7500_v40  ;;  %2609 = vmatpush1.bf16.msra.mxu1 %v7501_v22  ;;  %v7527_v40 = vld [vmem:[#allocation104_spill] sm:$0xff] }
 0x7b1   :  { %2569 = vmatprep.subr.bf16.mxu0 %v7502_v25  ;;  %2610 = vmatprep.subr.bf16.mxu1 %v7503_v34  ;;  %v456_v22 = vadd.f32 %v7527_v40, %v7526_v12  ;;  %v7528_v25 = vld [vmem:[#allocation12_spill] sm:$0xff]  ;;  %v7529_v34 = vld [vmem:[#allocation105_spill] sm:$0xff] }
 0x7b2   :  { %v6302_v12 = vld [vmem:[#allocation3 + $0x71c] ss:$60 sps:$4 sm:$0xff]  }
 0x7b4   :  { %2570 = vmatpush1.bf16.msra.mxu0 %v7504_v16  ;;  %2611 = vmatpush1.bf16.msra.mxu1 %v7505_v15  ;;  %v529_v16 = vadd.f32 %v7529_v34, %v7528_v25  ;;  %v6154_v34 = vpop.permute.xlu0 %298  ;;  %v6299_v25 = vld [vmem:[#allocation3 + $0x6a8] ss:$60 sps:$4 sm:$0xff]  }
 0x7b5   :  { %2571 = vmatprep.subr.bf16.mxu0 %v7506_v6  ;;  %2612 = vmatprep.subr.bf16.mxu1 %v7507_v26  ;;  %7530 = vst [vmem:[#allocation98_spill] sm:$0xff] %v6154_v34  ;;  %vm300_vm5 = vcmp.eq.s32.totalorder %v6154_v34, 1  ;;  %v6278_v34 = vld [vmem:[#allocation3 + $0x62c] ss:$60 sps:$4 sm:$0xff]  }
 0x7b6   :  { %vm6176_vm6 = vmpackc.low %vm300_vm5, %vm300_vm5 }
 0x7b8   :  { %2572 = vmatpush1.bf16.msra.mxu0 %v7508_v9  ;;  %2613 = vmatpush1.bf16.msra.mxu1 %v7509_v19 }
 0x7b9   :  { %2573 = vmatprep.subr.bf16.mxu0 %v7510_v60  ;;  %2614 = vmatprep.subr.bf16.mxu1 %v7511_v21 }
 0x7bc   :  { %2574 = vmatpush1.bf16.msra.mxu0 %v7512_v33  ;;  %2615 = vmatpush1.bf16.msra.mxu1 %v7513_v24 }
 0x7bd   :  { %2575 = vmatprep.subr.bf16.mxu0 %v7514_v7  ;;  %2616 = vmatprep.subr.bf16.mxu1 %v7515_v13 }
 0x7c0   :  { %2576 = vmatpush1.bf16.msra.mxu0 %v7516_v46  ;;  %2617 = vmatpush1.bf16.msra.mxu1 %v7517_v23 }
 0x7c1   :  { %2577 = vmatprep.subr.bf16.mxu0 %v7518_v36  ;;  %2618 = vmatprep.subr.bf16.mxu1 %v7519_v4 }
 0x7c4   :  { %2578 = vmatpush1.bf16.msra.mxu0 %v7520_v35  ;;  %2619 = vmatpush1.bf16.msra.mxu1 %v7521_v10 }
 0x7c5   :  { %2629 = vmatprep.subr.bf16.mxu0 %v6140_v38  ;;  %2670 = vmatprep.subr.bf16.mxu1 %v6143_v14 }
 0x81a   :  { %v2362_v15 = vpop.f32.mrb[56].mxu0  ;;  %v2403_v6 = vpop.f32.mrb[56].mxu1 }
 0x81b   :  { %v2521_v26 = vadd.f32 %v2362_v15, %v454_v8  ;;  %v2523_v9 = vadd.f32 %v2403_v6, %v527_v11  ;;  %v2364_v19 = vpop.f32.mrb[57].mxu0  ;;  %v2405_v60 = vpop.f32.mrb[57].mxu1 }
 0x81c   :  { %v2522_v21 = vadd.f32 %v2364_v19, %v456_v22  ;;  %v2524_v33 = vadd.f32 %v2405_v60, %v529_v16  ;;  %v2366_v24 = vpop.f32.mrb[58].mxu0  ;;  %v2407_v7 = vpop.f32.mrb[58].mxu1 }
 0x81d   :  { %v2525_v13 = vmul.f32 0.5, %v2521_v26  ;;  %v2367_v46 = vpop.f32.mrb[59].mxu0  ;;  %v2408_v23 = vpop.f32.mrb[59].mxu1  ;;  %v2527_v4 = vmul.f32 0.5, %v2523_v9 }
 0x81e   :  { %v2526_v36 = vmul.f32 0.5, %v2522_v21 }
 0x81f   :  { %3832 = vtanh.f32 %v2525_v13 }
 0x820   :  { %3834 = vtanh.f32 %v2526_v36 }
 0x821   :  { %3836 = vtanh.f32 %v2524_v33 }
 0x822   :  { %3838 = vtanh.f32 %v2527_v4 }
 0x829   :  { %v3833_v35 = vpop.eup %3832 }
 0x82a   :  { %v2531_v10 = vmul.f32 0.5, %v3833_v35  ;;  %v3835_v28 = vpop.eup %3834 }
 0x82b   :  { %v2532_v8 = vmul.f32 0.5, %v3835_v28  ;;  %v3837_v11 = vpop.eup %3836 }
 0x82c   :  { %v2534_v37 = vadd.f32 0.5, %v2531_v10  ;;  %v3839_v26 = vpop.eup %3838 }
 0x82d   :  { %v2535_v40 = vadd.f32 0.5, %v2532_v8  ;;  %v2533_v9 = vmul.f32 0.5, %v3839_v26 }
 0x82e   :  { %v2539_v22 = vmul.f32 %v3837_v11, %v2534_v37 }
 0x82f   :  { %v2538_v16 = vmul.f32 %v2535_v40, %v5909_v56  ;;  %v2536_v19 = vadd.f32 0.5, %v2533_v9 }
 0x831   :  { %v2540_v15 = vadd.f32 %v2539_v22, %v2538_v16 }
 0x833   :  { %3840 = vtanh.f32 %v2540_v15  ;;  %v6161_v6 = vsel %vm300_vm5, %v2540_v15, %v5909_v56 }
 0x834   :  { %7531 = vst [vmem:[#allocation99_spill] sm:$0xff] %v6161_v6  ;;  %v6296_v6 = vld [vmem:[#allocation3 + $0x6a0] ss:$60 sps:$4 sm:$0xff]  }
 0x83d   :  { %v3841_v60 = vpop.eup %3840 }
 0x83e   :  { %v2542_v21 = vmul.f32 %v3841_v60, %v2536_v19 }
 0x85a   :  { %v2444_v33 = vpop.f32.mrb[60].mxu0  ;;  %v2485_v24 = vpop.f32.mrb[60].mxu1 }
 0x85b   :  { %v2492_v7 = vadd.f32 %v2444_v33, %v4838_v41  ;;  %v2446_v13 = vpop.f32.mrb[61].mxu0  ;;  %v2487_v46 = vpop.f32.mrb[61].mxu1  ;;  %v2494_v8 = vadd.f32 %v2485_v24, %v4853_v61  ;;  %v6284_v61 = vld [vmem:[#allocation3 + $0x628] ss:$60 sps:$4 sm:$0xff]  }
 0x85c   :  { %v2493_v23 = vadd.f32 %v2446_v13, %v4842_v43  ;;  %v2448_v36 = vpop.f32.mrb[62].mxu0  ;;  %v2489_v4 = vpop.f32.mrb[62].mxu1  ;;  %v2495_v37 = vadd.f32 %v2487_v46, %v4847_v48  ;;  %v6287_v48 = vld [vmem:[#allocation3 + $0x630] ss:$60 sps:$4 sm:$0xff]   ;;  %v6290_v43 = vld [vmem:[#allocation3 + $0x6a4] ss:$60 sps:$4 sm:$0xff]  }
 0x85d   :  { %v2496_v35 = vmul.f32 0.5, %v2492_v7  ;;  %v2449_v10 = vpop.f32.mrb[63].mxu0  ;;  %v2490_v28 = vpop.f32.mrb[63].mxu1  ;;  %v2498_v11 = vmul.f32 0.5, %v2494_v8  ;;  %v7543_v8 = vld [vmem:[#allocation79_spill] sm:$0xff] }
 0x85e   :  { %v2497_v56 = vmul.f32 0.5, %v2493_v23  ;;  %v7533_v28 = vmov 0  ;;  %v6293_v41 = vld [vmem:[#allocation3 + $0x6ac] ss:$60 sps:$4 sm:$0xff]  }
 0x85f   :  { %3842 = vtanh.f32 %v2496_v35  ;;  %v2543_v35 = vpack.c.bf16 %v2542_v21, %v2542_v21  ;;  %v7534_v28 = vsel %vm6176_vm6, 4294967295, %v7533_v28  ;;  %v7540_v21 = vld [vmem:[#allocation74_spill] sm:$0xff]  ;;  %7548 = vst [vmem:[#allocation107_spill] sm:$0xff] %v6293_v41 }
 0x860   :  { %3844 = vtanh.f32 %v2497_v56  ;;  %7535 = vst [vmem:[#allocation101_spill] sm:$0xff] %v7534_v28  ;;  %v7541_v56 = vld [vmem:[#allocation75_spill] sm:$0xff] }
 0x861   :  { %3846 = vtanh.f32 %v2495_v37  ;;  %v7542_v37 = vld [vmem:[#allocation78_spill] sm:$0xff] }
 0x862   :  { %3848 = vtanh.f32 %v2498_v11  ;;  %v7544_v11 = vld [vmem:[#allocation85_spill] sm:$0xff]  ;;  %v6272_v28 = vld [vmem:[#allocation3 + $0x5b0] ss:$60 sps:$4 sm:$0xff]  }
 0x869   :  { %v3843_v40 = vpop.eup %3842 }
 0x86a   :  { %v2502_v22 = vmul.f32 0.5, %v3843_v40  ;;  %v3845_v16 = vpop.eup %3844  ;;  %v7545_v40 = vld [vmem:[#allocation90_spill] sm:$0xff] }
 0x86b   :  { %v2503_v26 = vmul.f32 0.5, %v3845_v16  ;;  %v3847_v9 = vpop.eup %3846  ;;  %v7547_v16 = vld [vmem:[#allocation95_spill] sm:$0xff] }
 0x86c   :  { %v2505_v15 = vadd.f32 0.5, %v2502_v22  ;;  %v3849_v24 = vpop.eup %3848  ;;  %v7546_v22 = vld [vmem:[#allocation94_spill] sm:$0xff] }
 0x86d   :  { %v2506_v19 = vadd.f32 0.5, %v2503_v26  ;;  %v2504_v46 = vmul.f32 0.5, %v3849_v24  ;;  %v6233_v26 = vld [vmem:[#allocation3 + $0x454] ss:$60 sps:$4 sm:$0xff]   ;;  %v6251_v24 = vld [vmem:[#allocation3 + $0x4c8] ss:$60 sps:$4 sm:$0xff]  }
 0x86e   :  { %v2510_v60 = vmul.f32 %v3847_v9, %v2505_v15  ;;  %v6230_v15 = vld [vmem:[#allocation3 + $0x44c] ss:$60 sps:$4 sm:$0xff]  }
 0x86f   :  { %v2509_v33 = vmul.f32 %v2506_v19, %v5919_v2  ;;  %v2507_v23 = vadd.f32 0.5, %v2504_v46  ;;  %v6236_v9 = vld [vmem:[#allocation3 + $0x448] ss:$60 sps:$4 sm:$0xff]   ;;  %v6239_v19 = vld [vmem:[#allocation3 + $0x450] ss:$60 sps:$4 sm:$0xff]  }
 0x870   :  { %v6254_v46 = vld [vmem:[#allocation3 + $0x53c] ss:$60 sps:$4 sm:$0xff]  }
 0x871   :  { %v2511_v7 = vadd.f32 %v2510_v60, %v2509_v33  ;;  %v6242_v60 = vld [vmem:[#allocation3 + $0x4c4] ss:$60 sps:$4 sm:$0xff]   ;;  %v6245_v33 = vld [vmem:[#allocation3 + $0x4cc] ss:$60 sps:$4 sm:$0xff]  }
 0x873   :  { %3850 = vtanh.f32 %v2511_v7  ;;  %v6171_v13 = vsel %vm294_vm3, %v2511_v7, %v5919_v2  ;;  %v6190_v2 = vsel %vm6176_vm6, %v2543_v35, %v5938_v20  ;;  %v7539_v20 = vld [vmem:[#allocation91_spill] sm:$0xff]  ;;  %v6248_v7 = vld [vmem:[#allocation3 + $0x4c0] ss:$60 sps:$4 sm:$0xff]  }
 0x874   :  { %7532 = vst [vmem:[#allocation100_spill] sm:$0xff] %v6171_v13  ;;  %v6266_v35 = vld [vmem:[#allocation3 + $0x5b4] ss:$60 sps:$4 sm:$0xff]  }
 0x875   :  { %v6281_v13 = vld [vmem:[#allocation3 + $0x634] ss:$60 sps:$4 sm:$0xff]  }
 0x87d   :  { %v3851_v36 = vpop.eup %3850 }
 0x87e   :  { %v2513_v4 = vmul.f32 %v3851_v36, %v2507_v23  ;;  %v6257_v23 = vld [vmem:[#allocation3 + $0x544] ss:$60 sps:$4 sm:$0xff]   ;;  %v6260_v36 = vld [vmem:[#allocation3 + $0x538] ss:$60 sps:$4 sm:$0xff]  }
 0x880   :  { %v2514_v10 = vpack.c.bf16 %v2513_v4, %v2513_v4  ;;  %v6263_v4 = vld [vmem:[#allocation3 + $0x540] ss:$60 sps:$4 sm:$0xff]  }
 0x882   :  { %v6183_v62 = vsel %vm5924_vm4, %v2514_v10, %v5931_v27  ;;  %v7538_v27 = vld [vmem:[#allocation84_spill] sm:$0xff] }
 0x883   :  { %7536 = vst [vmem:[#allocation106_spill] sm:$0xff] %v6183_v62  ;;  %2579 = vmatprep.mubr.bf16.mxu0 %v6183_v62  ;;  %2620 = vmatprep.mubr.bf16.mxu1 %v6183_v62  ;;  %v6269_v10 = vld [vmem:[#allocation3 + $0x5bc] ss:$60 sps:$4 sm:$0xff]  }
 0x884   :  { %2580 = vmatmul.mubr.bf16.vlgmr.msra.gmra.mrb[64].mxu0 %v6190_v2  ;;  %2621 = vmatmul.mubr.bf16.vlgmr.msra.gmra.mrb[64].mxu1 %v6190_v2 }
 0x885   :  { %2630 = vmatpush1.bf16.msra.mxu0 %v5942_v58  ;;  %2671 = vmatpush1.bf16.msra.mxu1 %v5945_v55 }
 0x886   :  { %2661 = vmatprep.mubr.bf16.mxu0 %v6183_v62  ;;  %2702 = vmatprep.mubr.bf16.mxu1 %v6183_v62  ;;  %v6275_v62 = vld [vmem:[#allocation3 + $0x5b8] ss:$60 sps:$4 sm:$0xff]  }
 0x887   :  { %2631 = vmatprep.subr.bf16.mxu0 %v5950_v3  ;;  %2672 = vmatprep.subr.bf16.mxu1 %v5953_v53 }
 0x889   :  { %2632 = vmatpush1.bf16.msra.mxu0 %v5956_v44  ;;  %2673 = vmatpush1.bf16.msra.mxu1 %v5959_v30 }
 0x88a   :  { %2633 = vmatprep.subr.bf16.mxu0 %v5962_v45  ;;  %2674 = vmatprep.subr.bf16.mxu1 %v5965_v31 }
 0x88d   :  { %2634 = vmatpush1.bf16.msra.mxu0 %v5968_v29  ;;  %2675 = vmatpush1.bf16.msra.mxu1 %v5971_v1 }
 0x88e   :  { %2635 = vmatprep.subr.bf16.mxu0 %v5974_v17  ;;  %2676 = vmatprep.subr.bf16.mxu1 %v5977_v57 }
 0x891   :  { %2636 = vmatpush1.bf16.msra.mxu0 %v5980_v50  ;;  %2677 = vmatpush1.bf16.msra.mxu1 %v5983_v18 }
 0x892   :  { %2637 = vmatprep.subr.bf16.mxu0 %v5986_v39  ;;  %2678 = vmatprep.subr.bf16.mxu1 %v5989_v63 }
 0x895   :  { %2638 = vmatpush1.bf16.msra.mxu0 %v5992_v49  ;;  %2679 = vmatpush1.bf16.msra.mxu1 %v7537_v47 }
 0x896   :  { %2639 = vmatprep.subr.bf16.mxu0 %v7538_v27  ;;  %2680 = vmatprep.subr.bf16.mxu1 %v7539_v20 }
 0x899   :  { %2640 = vmatpush1.bf16.msra.mxu0 %v7540_v21  ;;  %2681 = vmatpush1.bf16.msra.mxu1 %v7541_v56 }
 0x89a   :  { %2641 = vmatprep.subr.bf16.mxu0 %v7542_v37  ;;  %2682 = vmatprep.subr.bf16.mxu1 %v7543_v8 }
 0x89d   :  { %2642 = vmatpush1.bf16.msra.mxu0 %v7544_v11  ;;  %2683 = vmatpush1.bf16.msra.mxu1 %v7545_v40 }
 0x89e   :  { %2643 = vmatprep.subr.bf16.mxu0 %v7546_v22  ;;  %2684 = vmatprep.subr.bf16.mxu1 %v7547_v16 }
 0x8a1   :  { %2644 = vmatpush1.bf16.msra.mxu0 %v6028_v0  ;;  %2685 = vmatpush1.bf16.msra.mxu1 %v6031_v51 }
 0x8a2   :  { %2645 = vmatprep.subr.bf16.mxu0 %v6034_v59  ;;  %2686 = vmatprep.subr.bf16.mxu1 %v6037_v42 }
 0x8a5   :  { %2646 = vmatpush1.bf16.msra.mxu0 %v6040_v52  ;;  %2687 = vmatpush1.bf16.msra.mxu1 %v6043_v54 }
 0x8a6   :  { %2647 = vmatprep.subr.bf16.mxu0 %v6230_v15  ;;  %2688 = vmatprep.subr.bf16.mxu1 %v6233_v26 }
 0x8a9   :  { %2648 = vmatpush1.bf16.msra.mxu0 %v6236_v9  ;;  %2689 = vmatpush1.bf16.msra.mxu1 %v6239_v19 }
 0x8aa   :  { %2649 = vmatprep.subr.bf16.mxu0 %v6242_v60  ;;  %2690 = vmatprep.subr.bf16.mxu1 %v6245_v33 }
 0x8ad   :  { %2650 = vmatpush1.bf16.msra.mxu0 %v6248_v7  ;;  %2691 = vmatpush1.bf16.msra.mxu1 %v6251_v24 }
 0x8ae   :  { %2651 = vmatprep.subr.bf16.mxu0 %v6254_v46  ;;  %2692 = vmatprep.subr.bf16.mxu1 %v6257_v23 }
 0x8b1   :  { %2652 = vmatpush1.bf16.msra.mxu0 %v6260_v36  ;;  %2693 = vmatpush1.bf16.msra.mxu1 %v6263_v4 }
 0x8b2   :  { %2653 = vmatprep.subr.bf16.mxu0 %v6266_v35  ;;  %2694 = vmatprep.subr.bf16.mxu1 %v6269_v10 }
 0x8b5   :  { %2654 = vmatpush1.bf16.msra.mxu0 %v6272_v28  ;;  %2695 = vmatpush1.bf16.msra.mxu1 %v6275_v62 }
 0x8b6   :  { %2655 = vmatprep.subr.bf16.mxu0 %v6278_v34  ;;  %2696 = vmatprep.subr.bf16.mxu1 %v6281_v13 }
 0x8b9   :  { %2656 = vmatpush1.bf16.msra.mxu0 %v6284_v61  ;;  %2697 = vmatpush1.bf16.msra.mxu1 %v6287_v48 }
 0x8ba   :  { %2657 = vmatprep.subr.bf16.mxu0 %v6290_v43  ;;  %2698 = vmatprep.subr.bf16.mxu1 %v6293_v41  ;;  %v6311_v41 = vld [vmem:[#allocation3 + $0x720] ss:$60 sps:$4 sm:$0xff]  }
 0x8bd   :  { %2658 = vmatpush1.bf16.msra.mxu0 %v6296_v6  ;;  %2699 = vmatpush1.bf16.msra.mxu1 %v6299_v25 }
 0x8be   :  { %2659 = vmatprep.subr.bf16.mxu0 %v6302_v12  ;;  %2700 = vmatprep.subr.bf16.mxu1 %v6305_v32 }
 0x8c1   :  { %2660 = vmatpush1.bf16.msra.mxu0 %v6308_v5  ;;  %2701 = vmatpush1.bf16.msra.mxu1 %v6311_v41 }
 0x8c2   :  { %2766 = vmatprep.subr.bf16.mxu0 %v6140_v38  ;;  %2807 = vmatprep.subr.bf16.mxu1 %v6143_v14 }
 0x8c4   :  { %2662 = vmatmul.mubr.bf16.vlgmr.msra.gmra.mrb[68].mxu0 %v6190_v2  ;;  %2703 = vmatmul.mubr.bf16.vlgmr.msra.gmra.mrb[68].mxu1 %v6190_v2 }
 0x8c5   :  { %2767 = vmatpush1.bf16.msra.mxu0 %v5942_v58  ;;  %2808 = vmatpush1.bf16.msra.mxu1 %v5945_v55  ;;  %v7549_v58 = vld [vmem:[#allocation107_spill] sm:$0xff] }
 0x8c6   :  { %2768 = vmatprep.subr.bf16.mxu0 %v5950_v3  ;;  %2809 = vmatprep.subr.bf16.mxu1 %v5953_v53  ;;  %v3690_v55 = vld [vmem:[#allocation3 + $0x3f0] ss:$60 sps:$4 sm:$0xff]   ;;  %v7553_v53 = vld [vmem:[#allocation109_spill] sm:$0xff] }
 0x8c9   :  { %2769 = vmatpush1.bf16.msra.mxu0 %v5956_v44  ;;  %2810 = vmatpush1.bf16.msra.mxu1 %v5959_v30  ;;  %v7554_v30 = vld [vmem:[#allocation11_spill] sm:$0xff] }
 0x8ca   :  { %2770 = vmatprep.subr.bf16.mxu0 %v5962_v45  ;;  %2811 = vmatprep.subr.bf16.mxu1 %v5965_v31  ;;  %v7555_v45 = vld [vmem:[#allocation112_spill] sm:$0xff] }
 0x8cb   :  { %v460_v31 = vadd.f32 %v7555_v45, %v7554_v30 }
 0x8cd   :  { %2771 = vmatpush1.bf16.msra.mxu0 %v5968_v29  ;;  %2812 = vmatpush1.bf16.msra.mxu1 %v5971_v1  ;;  %v7556_v29 = vld [vmem:[#allocation12_spill] sm:$0xff]  ;;  %v7557_v1 = vld [vmem:[#allocation113_spill] sm:$0xff] }
 0x8ce   :  { %2772 = vmatprep.subr.bf16.mxu0 %v5974_v17  ;;  %2813 = vmatprep.subr.bf16.mxu1 %v5977_v57  ;;  %v533_v17 = vadd.f32 %v7557_v1, %v7556_v29  ;;  %v7563_v29 = vld [vmem:[#allocation100_spill] sm:$0xff] }
 0x8d1   :  { %2773 = vmatpush1.bf16.msra.mxu0 %v5980_v50  ;;  %2814 = vmatpush1.bf16.msra.mxu1 %v5983_v18 }
 0x8d2   :  { %2774 = vmatprep.subr.bf16.mxu0 %v5986_v39  ;;  %2815 = vmatprep.subr.bf16.mxu1 %v5989_v63 }
 0x8d5   :  { %2775 = vmatpush1.bf16.msra.mxu0 %v5992_v49  ;;  %2816 = vmatpush1.bf16.msra.mxu1 %v7537_v47  ;;  %v7558_v47 = vld [vmem:[#allocation99_spill] sm:$0xff] }
 0x8d6   :  { %2776 = vmatprep.subr.bf16.mxu0 %v7538_v27  ;;  %2817 = vmatprep.subr.bf16.mxu1 %v7539_v20 }
 0x8d9   :  { %2777 = vmatpush1.bf16.msra.mxu0 %v7540_v21  ;;  %2818 = vmatpush1.bf16.msra.mxu1 %v7541_v56 }
 0x8da   :  { %2778 = vmatprep.subr.bf16.mxu0 %v7542_v37  ;;  %2819 = vmatprep.subr.bf16.mxu1 %v7543_v8 }
 0x8dd   :  { %2779 = vmatpush1.bf16.msra.mxu0 %v7544_v11  ;;  %2820 = vmatpush1.bf16.msra.mxu1 %v7545_v40 }
 0x8de   :  { %2780 = vmatprep.subr.bf16.mxu0 %v7546_v22  ;;  %2821 = vmatprep.subr.bf16.mxu1 %v7547_v16 }
 0x8e1   :  { %2781 = vmatpush1.bf16.msra.mxu0 %v6028_v0  ;;  %2822 = vmatpush1.bf16.msra.mxu1 %v6031_v51 }
 0x8e2   :  { %2782 = vmatprep.subr.bf16.mxu0 %v6034_v59  ;;  %2823 = vmatprep.subr.bf16.mxu1 %v6037_v42 }
 0x8e5   :  { %2783 = vmatpush1.bf16.msra.mxu0 %v6040_v52  ;;  %2824 = vmatpush1.bf16.msra.mxu1 %v6043_v54 }
 0x8e6   :  { %2784 = vmatprep.subr.bf16.mxu0 %v6230_v15  ;;  %2825 = vmatprep.subr.bf16.mxu1 %v6233_v26  ;;  %v7559_v15 = vld [vmem:[#allocation13_spill] sm:$0xff] }
 0x8e9   :  { %2785 = vmatpush1.bf16.msra.mxu0 %v6236_v9  ;;  %2826 = vmatpush1.bf16.msra.mxu1 %v6239_v19 }
 0x8ea   :  { %2786 = vmatprep.subr.bf16.mxu0 %v6242_v60  ;;  %2827 = vmatprep.subr.bf16.mxu1 %v6245_v33  ;;  %v7560_v60 = vld [vmem:[#allocation15_spill] sm:$0xff] }
 0x8ed   :  { %2787 = vmatpush1.bf16.msra.mxu0 %v6248_v7  ;;  %2828 = vmatpush1.bf16.msra.mxu1 %v6251_v24 }
 0x8ee   :  { %2788 = vmatprep.subr.bf16.mxu0 %v6254_v46  ;;  %2829 = vmatprep.subr.bf16.mxu1 %v6257_v23 }
 0x8f1   :  { %2789 = vmatpush1.bf16.msra.mxu0 %v6260_v36  ;;  %2830 = vmatpush1.bf16.msra.mxu1 %v6263_v4 }
 0x8f2   :  { %2790 = vmatprep.subr.bf16.mxu0 %v6266_v35  ;;  %2831 = vmatprep.subr.bf16.mxu1 %v6269_v10  ;;  %v7561_v35 = vld [vmem:[#allocation14_spill] sm:$0xff] }
 0x8f5   :  { %2791 = vmatpush1.bf16.msra.mxu0 %v6272_v28  ;;  %2832 = vmatpush1.bf16.msra.mxu1 %v6275_v62  ;;  %v6388_v62 = vpop.permute.xlu1 %304 }
 0x8f6   :  { %2792 = vmatprep.subr.bf16.mxu0 %v6278_v34  ;;  %2833 = vmatprep.subr.bf16.mxu1 %v6281_v13  ;;  %vm306_vm7 = vcmp.eq.s32.totalorder %v6388_v62, 1  ;;  %v3715_v62 = vld [vmem:[#allocation3 + $0xb0] ss:$60 sps:$4 sm:$0xff]  }
 0x8f7   :  { %vm2763_vm8 = vmpackc.low %vm306_vm7, %vm306_vm7 }
 0x8f9   :  { %2793 = vmatpush1.bf16.msra.mxu0 %v6284_v61  ;;  %2834 = vmatpush1.bf16.msra.mxu1 %v6287_v48  ;;  %v7550_v61 = vld [vmem:[#allocation10_spill] sm:$0xff]  ;;  %v7551_v48 = vld [vmem:[#allocation108_spill] sm:$0xff] }
 0x8fa   :  { %2794 = vmatprep.subr.bf16.mxu0 %v6290_v43  ;;  %2835 = vmatprep.subr.bf16.mxu1 %v7549_v58  ;;  %v458_v3 = vadd.f32 %v7551_v48, %v7550_v61  ;;  %v7552_v43 = vld [vmem:[#allocation16_spill] sm:$0xff]  ;;  %v7562_v58 = vld [vmem:[#allocation9_spill] sm:$0xff] }
 0x8fb   :  { %v531_v44 = vadd.f32 %v7553_v53, %v7552_v43 }
 0x8fd   :  { %2795 = vmatpush1.bf16.msra.mxu0 %v6296_v6  ;;  %2836 = vmatpush1.bf16.msra.mxu1 %v6299_v25 }
 0x8fe   :  { %2796 = vmatprep.subr.bf16.mxu0 %v6302_v12  ;;  %2837 = vmatprep.subr.bf16.mxu1 %v6305_v32 }
 0x901   :  { %2797 = vmatpush1.bf16.msra.mxu0 %v6308_v5  ;;  %2838 = vmatpush1.bf16.msra.mxu1 %v6311_v41 }
 0x902   :  { %3399 = vmatprep.subr.bf16.mxu0 %v3690_v55 }
 0x957   :  { %v2581_v57 = vpop.f32.mrb[64].mxu0  ;;  %v2622_v50 = vpop.f32.mrb[64].mxu1 }
 0x958   :  { %v2740_v18 = vadd.f32 %v2581_v57, %v458_v3  ;;  %v2742_v39 = vadd.f32 %v2622_v50, %v531_v44  ;;  %v2583_v63 = vpop.f32.mrb[65].mxu0  ;;  %v2624_v41 = vpop.f32.mrb[65].mxu1  ;;  %v3713_v57 = vld [vmem:[#allocation3 + $0x37c] ss:$60 sps:$4 sm:$0xff]  }
 0x959   :  { %v2741_v49 = vadd.f32 %v2583_v63, %v460_v31  ;;  %v2743_v51 = vadd.f32 %v2624_v41, %v533_v17  ;;  %v2585_v59 = vpop.f32.mrb[66].mxu0  ;;  %v2626_v42 = vpop.f32.mrb[66].mxu1 }
 0x95a   :  { %v2744_v52 = vmul.f32 0.5, %v2740_v18  ;;  %v2586_v54 = vpop.f32.mrb[67].mxu0  ;;  %v2627_v0 = vpop.f32.mrb[67].mxu1  ;;  %v2746_v14 = vmul.f32 0.5, %v2742_v39  ;;  %v3691_v42 = vld [vmem:[#allocation3 + $0x30] ss:$60 sps:$4 sm:$0xff]  }
 0x95b   :  { %v2745_v38 = vmul.f32 0.5, %v2741_v49 }
 0x95c   :  { %3852 = vtanh.f32 %v2744_v52  ;;  %v7565_v52 = vld [vmem:[#allocation106_spill] sm:$0xff] }
 0x95d   :  { %3854 = vtanh.f32 %v2745_v38 }
 0x95e   :  { %3856 = vtanh.f32 %v2743_v51 }
 0x95f   :  { %3858 = vtanh.f32 %v2746_v14  ;;  %v3692_v14 = vld [vmem:[#allocation3 + $0x468] ss:$60 sps:$4 sm:$0xff]  }
 0x966   :  { %v3853_v5 = vpop.eup %3852 }
 0x967   :  { %v2750_v32 = vmul.f32 0.5, %v3853_v5  ;;  %v3855_v12 = vpop.eup %3854  ;;  %v3693_v5 = vld [vmem:[#allocation3 + $0xa8] ss:$60 sps:$4 sm:$0xff]  }
 0x968   :  { %v2751_v34 = vmul.f32 0.5, %v3855_v12  ;;  %v3857_v6 = vpop.eup %3856  ;;  %v3695_v12 = vld [vmem:[#allocation3 + $0x120] ss:$60 sps:$4 sm:$0xff]  }
 0x969   :  { %v2753_v25 = vadd.f32 0.5, %v2750_v32  ;;  %v3859_v56 = vpop.eup %3858  ;;  %v3694_v32 = vld [vmem:[#allocation3 + $0x4e0] ss:$60 sps:$4 sm:$0xff]  }
 0x96a   :  { %v2754_v13 = vadd.f32 0.5, %v2751_v34  ;;  %v2752_v37 = vmul.f32 0.5, %v3859_v56  ;;  %v3697_v34 = vld [vmem:[#allocation3 + $0x198] ss:$60 sps:$4 sm:$0xff]  }
 0x96b   :  { %v2758_v28 = vmul.f32 %v3857_v6, %v2753_v25  ;;  %v3696_v25 = vld [vmem:[#allocation3 + $0x558] ss:$60 sps:$4 sm:$0xff]   ;;  %v3698_v6 = vld [vmem:[#allocation3 + $0x5d0] ss:$60 sps:$4 sm:$0xff]  }
 0x96c   :  { %v2757_v27 = vmul.f32 %v2754_v13, %v7558_v47  ;;  %v2755_v8 = vadd.f32 0.5, %v2752_v37  ;;  %v3699_v13 = vld [vmem:[#allocation3 + $0x210] ss:$60 sps:$4 sm:$0xff]   ;;  %v3705_v56 = vld [vmem:[#allocation3 + $0x378] ss:$60 sps:$4 sm:$0xff]  }
 0x96d   :  { %v3706_v37 = vld [vmem:[#allocation3 + $0x34] ss:$60 sps:$4 sm:$0xff]  }
 0x96e   :  { %v2759_v20 = vadd.f32 %v2758_v28, %v2757_v27  ;;  %v3701_v28 = vld [vmem:[#allocation3 + $0x288] ss:$60 sps:$4 sm:$0xff]   ;;  %v3703_v27 = vld [vmem:[#allocation3 + $0x300] ss:$60 sps:$4 sm:$0xff]  }
 0x970   :  { %3860 = vtanh.f32 %v2759_v20  ;;  %v6395_v21 = vsel %vm306_vm7, %v2759_v20, %v7558_v47  ;;  %v3702_v47 = vld [vmem:[#allocation3 + $0x6c0] ss:$60 sps:$4 sm:$0xff]   ;;  %v3704_v20 = vld [vmem:[#allocation3 + $0x738] ss:$60 sps:$4 sm:$0xff]  }
 0x97a   :  { %v3861_v11 = vpop.eup %3860 }
 0x97b   :  { %v2761_v40 = vmul.f32 %v3861_v11, %v2755_v8  ;;  %v4187_v8 = vmov 0.0   ;;  %v3707_v11 = vld [vmem:[#allocation3 + $0xac] ss:$60 sps:$4 sm:$0xff]  }
 0x97c   :  { %3439 = vmatprep.subr.bf16.mxu1 %v4187_v8 }
 0x97d   :  { %v2762_v51 = vpack.c.bf16 %v2761_v40, %v2761_v40  ;;  %v3708_v40 = vld [vmem:[#allocation3 + $0x124] ss:$60 sps:$4 sm:$0xff]  }
 0x97f   :  { %v2764_v38 = vsel %vm2763_vm8, %v2762_v51, %v6190_v2  ;;  %v3700_v2 = vld [vmem:[#allocation3 + $0x648] ss:$60 sps:$4 sm:$0xff]  }
 0x997   :  { %v2663_v22 = vpop.f32.mrb[68].mxu0  ;;  %v2704_v16 = vpop.f32.mrb[68].mxu1 }
 0x998   :  { %v2711_v26 = vadd.f32 %v2663_v22, %v7559_v15  ;;  %v2665_v9 = vpop.f32.mrb[69].mxu0  ;;  %v2706_v19 = vpop.f32.mrb[69].mxu1  ;;  %v2713_v55 = vadd.f32 %v2704_v16, %v7562_v58  ;;  %v3709_v22 = vld [vmem:[#allocation3 + $0x19c] ss:$60 sps:$4 sm:$0xff]   ;;  %v3710_v16 = vld [vmem:[#allocation3 + $0x214] ss:$60 sps:$4 sm:$0xff]  }
 0x999   :  { %v2712_v33 = vadd.f32 %v2665_v9, %v7560_v60  ;;  %v2667_v7 = vpop.f32.mrb[70].mxu0  ;;  %v2708_v24 = vpop.f32.mrb[70].mxu1  ;;  %v2714_v10 = vadd.f32 %v2706_v19, %v7561_v35 }
 0x99a   :  { %v2715_v46 = vmul.f32 0.5, %v2711_v26  ;;  %v2668_v23 = vpop.f32.mrb[71].mxu0  ;;  %v2709_v36 = vpop.f32.mrb[71].mxu1  ;;  %v2717_v61 = vmul.f32 0.5, %v2713_v55  ;;  %v3711_v26 = vld [vmem:[#allocation3 + $0x28c] ss:$60 sps:$4 sm:$0xff]  }
 0x99b   :  { %v2716_v4 = vmul.f32 0.5, %v2712_v33 }
 0x99c   :  { %3862 = vtanh.f32 %v2715_v46 }
 0x99d   :  { %3864 = vtanh.f32 %v2716_v4 }
 0x99e   :  { %3866 = vtanh.f32 %v2714_v10 }
 0x99f   :  { %3868 = vtanh.f32 %v2717_v61 }
 0x9a6   :  { %v3863_v48 = vpop.eup %3862 }
 0x9a7   :  { %v2721_v3 = vmul.f32 0.5, %v3863_v48  ;;  %v3865_v43 = vpop.eup %3864 }
 0x9a8   :  { %v2722_v44 = vmul.f32 0.5, %v3865_v43  ;;  %v3867_v30 = vpop.eup %3866 }
 0x9a9   :  { %v2724_v53 = vadd.f32 0.5, %v2721_v3  ;;  %v3869_v18 = vpop.eup %3868 }
 0x9aa   :  { %v2725_v45 = vadd.f32 0.5, %v2722_v44  ;;  %v2723_v39 = vmul.f32 0.5, %v3869_v18  ;;  %v3714_v18 = vld [vmem:[#allocation3 + $0x38] ss:$60 sps:$4 sm:$0xff]  }
 0x9ab   :  { %v2729_v31 = vmul.f32 %v3867_v30, %v2724_v53 }
 0x9ac   :  { %v2728_v1 = vmul.f32 %v2725_v45, %v7563_v29  ;;  %v2726_v63 = vadd.f32 0.5, %v2723_v39  ;;  %v3718_v39 = vld [vmem:[#allocation3 + $0x218] ss:$60 sps:$4 sm:$0xff]  }
 0x9ae   :  { %v2730_v17 = vadd.f32 %v2729_v31, %v2728_v1 }
 0x9b0   :  { %3870 = vtanh.f32 %v2730_v17  ;;  %v6405_v50 = vsel %vm300_vm5, %v2730_v17, %v7563_v29  ;;  %v3712_v17 = vld [vmem:[#allocation3 + $0x304] ss:$60 sps:$4 sm:$0xff]  }
 0x9ba   :  { %v3871_v41 = vpop.eup %3870 }
 0x9bb   :  { %v2732_v49 = vmul.f32 %v3871_v41, %v2726_v63  ;;  %v3719_v63 = vld [vmem:[#allocation3 + $0x290] ss:$60 sps:$4 sm:$0xff]  }
 0x9bd   :  { %v2733_v59 = vpack.c.bf16 %v2732_v49, %v2732_v49  ;;  %v3364_v49 = vld [vmem:[%s6469_s4 + $0x8] ss:$0 sm:$0xff] }
 0x9bf   :  { %v2734_v0 = vsel %vm6176_vm6, %v2733_v59, %v7565_v52 }
 0x9c0   :  { %2798 = vmatprep.mubr.bf16.mxu0 %v2734_v0  ;;  %2839 = vmatprep.mubr.bf16.mxu1 %v2734_v0 }
 0x9c1   :  { %2799 = vmatmul.mubr.bf16.vlgmr.msra.gmra.mrb[72].mxu0 %v2764_v38  ;;  %2840 = vmatmul.mubr.bf16.vlgmr.msra.gmra.mrb[72].mxu1 %v2764_v38 }
 0x9c2   :  { %3400 = vmatpush3.bf16.msra.mxu0 %v3691_v42  ;;  %3440 = vmatpush3.bf16.msra.mxu1 %v3706_v37 }
 0x9c3   :  { %3401 = vmatprep.subr.bf16.mxu0 %v3692_v14  ;;  %3441 = vmatprep.subr.bf16.mxu1 %v4187_v8  ;;  %v3720_v14 = vld [vmem:[#allocation3 + $0x308] ss:$60 sps:$4 sm:$0xff]  }
 0x9c4   :  { %3455 = vmatprep.mubr.msk.bf16.mxu1 %vm4188_vm9, %v4187_v8 }
 0x9c6   :  { %3402 = vmatpush3.bf16.msra.mxu0 %v3693_v5  ;;  %3442 = vmatpush3.bf16.msra.mxu1 %v3707_v11  ;;  %v3721_v5 = vld [vmem:[#allocation3 + $0x380] ss:$60 sps:$4 sm:$0xff]  }
 0x9c7   :  { %3403 = vmatprep.subr.bf16.mxu0 %v3694_v32  ;;  %3443 = vmatprep.subr.bf16.mxu1 %v4187_v8  ;;  %v3381_v32 = vld [vmem:[%s6469_s4 + $0x9] ss:$0 sm:$0xff] }
 0x9ca   :  { %3404 = vmatpush3.bf16.msra.mxu0 %v3695_v12  ;;  %3444 = vmatpush3.bf16.msra.mxu1 %v3708_v40  ;;  %v3201_v40 = vld [vmem:[%s6467_s2] sm:$0x3] }
 0x9cb   :  { %3405 = vmatprep.subr.bf16.mxu0 %v3696_v25  ;;  %3445 = vmatprep.subr.bf16.mxu1 %v4187_v8 }
 0x9ce   :  { %3406 = vmatpush3.bf16.msra.mxu0 %v3697_v34  ;;  %3446 = vmatpush3.bf16.msra.mxu1 %v3709_v22 }
 0x9cf   :  { %3407 = vmatprep.subr.bf16.mxu0 %v3698_v6  ;;  %3447 = vmatprep.subr.bf16.mxu1 %v4187_v8 }
 0x9d2   :  { %3408 = vmatpush3.bf16.msra.mxu0 %v3699_v13  ;;  %3448 = vmatpush3.bf16.msra.mxu1 %v3710_v16 }
 0x9d3   :  { %3409 = vmatprep.subr.bf16.mxu0 %v3700_v2  ;;  %3449 = vmatprep.subr.bf16.mxu1 %v4187_v8 }
 0x9d6   :  { %3410 = vmatpush3.bf16.msra.mxu0 %v3701_v28  ;;  %3450 = vmatpush3.bf16.msra.mxu1 %v3711_v26 }
 0x9d7   :  { %3411 = vmatprep.subr.bf16.mxu0 %v3702_v47  ;;  %3451 = vmatprep.subr.bf16.mxu1 %v4187_v8  ;;  %v3390_v47 = vld [vmem:[%s6469_s4 + $0xa] ss:$0 sm:$0xff] }
 0x9da   :  { %3412 = vmatpush3.bf16.msra.mxu0 %v3703_v27  ;;  %3452 = vmatpush3.bf16.msra.mxu1 %v3712_v17 }
 0x9db   :  { %3413 = vmatprep.subr.bf16.mxu0 %v3704_v20  ;;  %3453 = vmatprep.subr.bf16.mxu1 %v4187_v8 }
 0x9de   :  { %3414 = vmatpush3.bf16.msra.mxu0 %v3705_v56  ;;  %3454 = vmatpush3.bf16.msra.mxu1 %v3713_v57 }
 0x9df   :  { %3459 = vmatprep.subr.bf16.mxu0 %v4187_v8 }
 0xa94   :  { %v2800_v9 = vpop.f32.mrb[72].mxu0  ;;  %v2841_v19 = vpop.f32.mrb[72].mxu1 }
 0xa95   :  { %v2847_v33 = vadd.f32 %v2800_v9, %v7559_v15  ;;  %v2802_v7 = vpop.f32.mrb[73].mxu0  ;;  %v2842_v24 = vpop.f32.mrb[73].mxu1 }
 0xa96   :  { %v2848_v46 = vadd.f32 %v2802_v7, %v7560_v60  ;;  %v2804_v23 = vpop.f32.mrb[74].mxu0  ;;  %v2844_v36 = vpop.f32.mrb[74].mxu1  ;;  %v2849_v61 = vadd.f32 %v2842_v24, %v7561_v35  ;;  %v2863_v35 = vpack.c.bf16 %v6395_v21, %v6395_v21  ;;  %v3716_v21 = vld [vmem:[#allocation3 + $0x128] ss:$60 sps:$4 sm:$0xff]  }
 0xa97   :  { %v2850_v4 = vmul.f32 0.5, %v2847_v33  ;;  %v2805_v10 = vpop.f32.mrb[75].mxu0  ;;  %v2845_v58 = vpop.f32.mrb[75].mxu1 }
 0xa98   :  { %v2851_v55 = vmul.f32 0.5, %v2848_v46 }
 0xa99   :  { %3872 = vtanh.f32 %v2850_v4 }
 0xa9a   :  { %3874 = vtanh.f32 %v2851_v55 }
 0xa9b   :  { %3876 = vtanh.f32 %v2849_v61 }
 0xaa3   :  { %v3873_v48 = vpop.eup %3872 }
 0xaa4   :  { %v3875_v3 = vpop.eup %3874  ;;  %v2854_v43 = vmul.f32 0.5, %v3873_v48 }
 0xaa5   :  { %v2855_v53 = vmul.f32 0.5, %v3875_v3  ;;  %v3877_v44 = vpop.eup %3876 }
 0xaa6   :  { %v2856_v15 = vadd.f32 0.5, %v2854_v43 }
 0xaa7   :  { %v2857_v30 = vadd.f32 0.5, %v2855_v53 }
 0xaa8   :  { %v2860_v45 = vmul.f32 %v3877_v44, %v2856_v15 }
 0xaa9   :  { %v2859_v60 = vmul.f32 %v2857_v30, %v6405_v50 }
 0xaab   :  { %v2861_v31 = vadd.f32 %v2860_v45, %v2859_v60 }
 0xaad   :  { %v2862_v29 = vsel %vm306_vm7, %v2861_v31, %v6405_v50  ;;  %v3717_v50 = vld [vmem:[#allocation3 + $0x1a0] ss:$60 sps:$4 sm:$0xff]  }
 0xaae   :  { %v2864_v1 = vpack.c.bf16 %v2862_v29, %v2862_v29 }
 0xab0   :  { %2999 = vmatprep.mubr.bf16.mxu0 %v2864_v1 }
 0xab1   :  { %3000 = vmatmul.mubr.bf16.vlgmr.msra.gmra.mrb[76].mxu0 %v2863_v35 }
 0xab2   :  { %3475 = vmatprep.mubr.msk.bf16.mxu0 %vm4188_vm9, %v4187_v8  ;;  %3460 = vmatpush3.bf16.msra.mxu0 %v3714_v18 }
 0xab3   :  { %3461 = vmatprep.subr.bf16.mxu0 %v4187_v8 }
 0xab6   :  { %3462 = vmatpush3.bf16.msra.mxu0 %v3715_v62 }
 0xab7   :  { %3463 = vmatprep.subr.bf16.mxu0 %v4187_v8 }
 0xaba   :  { %3464 = vmatpush3.bf16.msra.mxu0 %v3716_v21 }
 0xabb   :  { %3465 = vmatprep.subr.bf16.mxu0 %v4187_v8 }
 0xabe   :  { %3466 = vmatpush3.bf16.msra.mxu0 %v3717_v50 }
 0xabf   :  { %3467 = vmatprep.subr.bf16.mxu0 %v4187_v8 }
 0xac2   :  { %3468 = vmatpush3.bf16.msra.mxu0 %v3718_v39 }
 0xac3   :  { %3469 = vmatprep.subr.bf16.mxu0 %v4187_v8 }
 0xac6   :  { %3470 = vmatpush3.bf16.msra.mxu0 %v3719_v63 }
 0xac7   :  { %3471 = vmatprep.subr.bf16.mxu0 %v4187_v8 }
 0xaca   :  { %3472 = vmatpush3.bf16.msra.mxu0 %v3720_v14 }
 0xacb   :  { %3473 = vmatprep.subr.bf16.mxu0 %v4187_v8 }
 0xace   :  { %3474 = vmatpush3.bf16.msra.mxu0 %v3721_v5 }
 0xb84   :  { %v3415_v41 = vpop.f32.mrb[76].mxu0 }
 0xb85   :  { %v3416_v51 = vpop.f32.mrb[77].mxu0 }
 0xb86   :  { %v3417_v59 = vadd.f32 %v3416_v51, %v3415_v41  ;;  %v3418_v42 = vpop.f32.mrb[78].mxu0 }
 0xb87   :  { %v3419_v52 = vpop.f32.mrb[79].mxu0 }
 0xb88   :  { %v3002_v54 = vadd.f32 %v3417_v59, %v3364_v49 }
 0xb8a   :  { %v3007_v0 = vmax.f32 %v3002_v54, 0.0 }
 0xb8c   :  { %v3008_v38 = vpack.c.bf16 %v3007_v0, %v3007_v0 }
 0xb8e   :  { %3456 = vmatmul.mubr.bf16.vlgmr.msra.gmra.mrb[76].mxu1 %v3008_v38 }
 0xc61   :  { %v3097_v12 = vpop.f32.mrb[76].mxu1 }
 0xc62   :  { %v3098_v25 = vadd.f32 %v3381_v32, %v3097_v12  ;;  %v3457_v34 = vpop.f32.mrb[77].mxu1 }
 0xc63   :  { %v3100_v6 = vpop.f32.mrb[78].mxu1 }
 0xc64   :  { %v3103_v13 = vmax.f32 %v3098_v25, 0.0  ;;  %v3458_v2 = vpop.f32.mrb[79].mxu1 }
 0xc66   :  { %v3104_v28 = vpack.c.bf16 %v3103_v13, %v3103_v13 }
 0xc68   :  { %3476 = vmatmul.mubr.bf16.vlgmr.msra.gmra.mrb[80].mxu0 %v3104_v28 }
 0xd3b   :  { %v3193_v27 = vpop.f32.mrb[80].mxu0 }
 0xd3c   :  { %v3194_v20 = vadd.f32 %v3390_v47, %v3193_v27  ;;  %v3477_v56 = vpop.f32.mrb[81].mxu0 }
 0xd3d   :  { %v3196_v37 = vpop.f32.mrb[82].mxu0 }
 0xd3e   :  { %v3199_v8 = vadd.f32 1.0, %v3194_v20  ;;  %v3478_v11 = vpop.f32.mrb[83].mxu0 }
 0xd40   :  { %v3200_v22 = vmax.f32 %v3199_v8, 0.0 }
 0xd42   :  { %v3202_v16 = vmul.f32 %v3201_v40, %v3200_v22 }
 0xd44   :  { %3204 = vst.msk [vmem:[#allocation6] sm:$0x3] %vm3203_vm10, %v3202_v16 }
 0xd45   :  { %4168 = shalt.err (!%p4165_p12)
}
 0xd46   :  { %s4169_s7 = scalar_lea.hbm %s6470_s5, 32 }
 0xd47   :  { %p4170_p13 = scmp.ne.s32.totalorder %s6470_s5, %s4169_s7  ;;  %p4173_p0 = scmp.lt.u32.totalorder %s4169_s7, %s6470_s5 }
 0xd49   :  { %p4175_p1 = pnand %p4173_p0, %p4170_p13 }
 0xd4b   :  { %4178 = shalt.err (!%p4175_p1)
}
 0xd4c   :  { %3214 = dma.vmem_to_hbm [thread:$0]  %s3212_s29, 32, %s6470_s5, [#allocation5]  }
 0xd4d   :  { %4181 = dma.done.wait [#allocation5], 32  }
 0xd4e   :  { %4182 = vsyncadd [#allocation5], 4294967264 }
 0xd4f   :  { %3218 = vsyncpa [#allocation4], 1 }
 0xd50   :  { %3219 = vsyncpa [#allocation5], 1 }

</bundles_post_ra>
